<compile_context>
chip_gen: v7x
topology: tpu7x:2x2x1
jax: 0.10.0
libtpu: 0.0.40
codegen_flags: <defaults>
</compile_context>

<pallas_src>
import functools

import jax
import jax.numpy as jnp
from jax.experimental import pallas as pl
from jax.experimental.pallas import tpu as pltpu


# ----------------------------- Fused Pallas kernel --------------------------------

def _lstm_cell(gates, c_prev, H):
    """gates: (Bp, 4H) pre-activations in PERMUTED order (i, f, o, g)."""
    sig = jax.nn.sigmoid(gates[:, :3 * H])     # one contiguous sigmoid slab
    g = jnp.tanh(gates[:, 3 * H:])             # one contiguous tanh slab
    i = sig[:, 0 * H:1 * H]
    f = sig[:, 1 * H:2 * H]
    o = sig[:, 2 * H:3 * H]
    c = f * c_prev + i * g
    h = o * jnp.tanh(c)
    return h, c


def _fused_imdb_kernel(S, Bp, H, layout,
                       tok_ref, emb_ref, slab_ref, w1_ref, w2_ref,
                       o_ref, hf_a, hr_a, hf_b, hr_b):
    """Single fused forward pass.

    tok_ref : (S*Bp, 1) int32 time-major token ids (row r = t*Bp + b), batch padded to Bp.
    emb_ref : (n_class, E) embedding table.
    slab_ref: (R, 4H) packed LSTM weights, gate columns permuted to (i, f, o, g);
              per (layer, direction) section: [W_ih (In rows) | W_hh (H rows) | bias (8 rows)].
    w1_ref  : (H, H//2), w2_ref: (H//2, 1) head weights (no bias).
    o_ref   : (Bp, 1) sigmoid output (padded rows hold garbage; wrapper slices them off).
    hf_*/hr_*: (S*Bp, H) VMEM scratch (ping-pong per layer) holding each layer's
               forward / reverse hidden sequences.
    """
    num_layers = len(layout)
    SB = S * Bp
    n_class = emb_ref.shape[0]
    f32 = jnp.float32
    bufs = ((hf_a, hr_a), (hf_b, hr_b))

    def load_dir(spec):
        wih_off, in_size, whh_off, b_off = spec
        wih = slab_ref[wih_off:wih_off + in_size, :]
        whh = slab_ref[whh_off:whh_off + H, :]
        b = slab_ref[b_off:b_off + 1, :]
        return wih, whh, b

    # ---- Embedding lookup as a one-hot matmul (exact, gather-free, MXU-mapped). ----
    tok = tok_ref[...]                                                     # (SB, 1) int32
    cls = jax.lax.broadcasted_iota(jnp.int32, (SB, n_class), 1)
    onehot = (cls == tok).astype(f32)                                      # (SB, n_class)
    x0 = jnp.dot(onehot, emb_ref[...], preferred_element_type=f32)         # (SB, E)

    def gx_from_x(wih, b):
        # Layer 0: hoisted input projection straight from the embedded tokens.
        return jnp.dot(x0, wih, preferred_element_type=f32) + b

    def gx_from_hseq(hf, hr, wih, b):
        # Layers >= 1: split W_ih (2H, 4H) into fwd/rev row halves so the previous layer's
        # (S*Bp, H) hidden sequences feed the projection directly — no (S*B, 2H) concat.
        return (jnp.dot(hf, wih[:H, :], preferred_element_type=f32)
                + jnp.dot(hr, wih[H:, :], preferred_element_type=f32) + b)

    # ---- Hidden bidirectional layers (all but the last). ----
    for l in range(num_layers - 1):
        wih_f, whh_f, b_f = load_dir(layout[l][0])
        wih_r, whh_r, b_r = load_dir(layout[l][1])
        if l == 0:
            gx_f = gx_from_x(wih_f, b_f)                                   # (SB, 4H)
            gx_r = gx_from_x(wih_r, b_r)
        else:
            hf_prev, hr_prev = bufs[(l - 1) % 2]
            hf_v, hr_v = hf_prev[...], hr_prev[...]
            gx_f = gx_from_hseq(hf_v, hr_v, wih_f, b_f)
            gx_r = gx_from_hseq(hf_v, hr_v, wih_r, b_r)
        wbuf_f, wbuf_r = bufs[l % 2]

        h_f = jnp.zeros((Bp, H), f32); c_f = jnp.zeros((Bp, H), f32)
        h_r = jnp.zeros((Bp, H), f32); c_r = jnp.zeros((Bp, H), f32)
        # Fully unrolled static time loop; fwd (t = k) and rev (t = S-1-k) chains are
        # independent, so their MXU / EUP / VPU work interleaves.
        for k in range(S):
            tf = k
            tr = S - 1 - k
            gates_f = gx_f[tf * Bp:(tf + 1) * Bp, :] + jnp.dot(
                h_f, whh_f, preferred_element_type=f32)
            gates_r = gx_r[tr * Bp:(tr + 1) * Bp, :] + jnp.dot(
                h_r, whh_r, preferred_element_type=f32)
            h_f, c_f = _lstm_cell(gates_f, c_f, H)
            h_r, c_r = _lstm_cell(gates_r, c_r, H)
            wbuf_f[tf * Bp:(tf + 1) * Bp, :] = h_f
            wbuf_r[tr * Bp:(tr + 1) * Bp, :] = h_r

    # ---- Last layer: only the reverse chain is live (output = h_n[-1]). ----
    wih_r, whh_r, b_r = load_dir(layout[num_layers - 1][0])
    if num_layers == 1:
        gx_r = gx_from_x(wih_r, b_r)
    else:
        hf_prev, hr_prev = bufs[(num_layers - 2) % 2]
        gx_r = gx_from_hseq(hf_prev[...], hr_prev[...], wih_r, b_r)
    h_r = jnp.zeros((Bp, H), f32); c_r = jnp.zeros((Bp, H), f32)
    for k in range(S):
        tr = S - 1 - k
        gates_r = gx_r[tr * Bp:(tr + 1) * Bp, :] + jnp.dot(
            h_r, whh_r, preferred_element_type=f32)
        h_r, c_r = _lstm_cell(gates_r, c_r, H)

    # ---- BinaryOutputLayer: Linear(no bias) -> ReLU -> Linear(no bias) -> Sigmoid. ----
    z = jnp.maximum(jnp.dot(h_r, w1_ref[...], preferred_element_type=f32), 0.0)
    o_ref[...] = jax.nn.sigmoid(jnp.dot(z, w2_ref[...], preferred_element_type=f32))


# ----------------------------- Wrapper --------------------------------

_VMEM = pl.BlockSpec(memory_space=pltpu.MemorySpace.VMEM)


def _permute_gates(w, H):
    """Reorder gate columns from torch's (i, f, g, o) to (i, f, o, g)."""
    return jnp.concatenate(
        [w[..., :2 * H], w[..., 3 * H:4 * H], w[..., 2 * H:3 * H]], axis=-1)


def _slab_layout(E, H, num_layers):
    """Static row layout of the packed weight slab (all sections 8-row aligned)."""
    rows = 0
    layout = []
    for l in range(num_layers):
        in_size = E if l == 0 else 2 * H
        n_dirs = 2 if l < num_layers - 1 else 1       # last layer: reverse direction only
        specs = []
        for _ in range(n_dirs):
            wih_off = rows; rows += in_size
            whh_off = rows; rows += H
            b_off = rows; rows += 8                   # bias padded to one sublane tile
            specs.append((wih_off, in_size, whh_off, b_off))
        layout.append(tuple(specs))
    return rows, tuple(layout)


def _pack_weight_slab(params, num_layers, E, H):
    """Pack all LSTM weights/biases into one (R, 4H) slab (one DMA instead of ~20)."""
    total_rows, layout = _slab_layout(E, H, num_layers)
    pieces = []
    for l in range(num_layers):
        dirs = ("fwd", "rev") if l < num_layers - 1 else ("rev",)
        for d in dirs:
            wih, whh, b = params[f"l{l}_{d}"]
            pieces.append(_permute_gates(wih, H).astype(jnp.float32))
            pieces.append(_permute_gates(whh, H).astype(jnp.float32))
            pieces.append(jnp.concatenate(
                [_permute_gates(b, H).astype(jnp.float32),
                 jnp.zeros((7, 4 * H), jnp.float32)], axis=0))
    slab = jnp.concatenate(pieces, axis=0)
    assert slab.shape == (total_rows, 4 * H), (slab.shape, total_rows)
    return slab, layout


def imdb_forward(tokens, params, num_layers):
    B, S = tokens.shape
    E = params["embedding"].shape[1]
    H = params["out_w1"].shape[0]
    assert E % 8 == 0 and H % 8 == 0, "slab sections must be sublane-tile aligned"

    # Pad batch to the fp32 sublane multiple (8); padded rows are sliced off at the end.
    Bp = max(8, -(-B // 8) * 8)
    tok_p = jnp.zeros((Bp, S), jnp.int32).at[:B, :].set(tokens.astype(jnp.int32))
    tok_tm = tok_p.T.reshape(S * Bp, 1)               # time-major, row r = t*Bp + b

    # NOTE: in a real model the slab would be packed once at init, not per forward call.
    slab, layout = _pack_weight_slab(params, num_layers, E, H)

    out = pl.pallas_call(
        functools.partial(_fused_imdb_kernel, S, Bp, H, layout),
        out_shape=jax.ShapeDtypeStruct((Bp, 1), jnp.float32),
        in_specs=[_VMEM] * 5,
        out_specs=_VMEM,
        scratch_shapes=[pltpu.VMEM((S * Bp, H), jnp.float32)] * 4,
    )(tok_tm,
      params["embedding"].astype(jnp.float32),
      slab,
      params["out_w1"].astype(jnp.float32),
      params["out_w2"].astype(jnp.float32))
    return out[:B]


# ----------------------------- Pure-JAX reference -----------------------------

def _ref_lstm_dir(x_seq, w_ih_t, w_hh_t, b):
    T, B, _ = x_seq.shape
    H = w_hh_t.shape[0]

    def step(carry, x_t):
        h, c = carry
        gates = x_t @ w_ih_t + h @ w_hh_t + b
        i = jax.nn.sigmoid(gates[:, 0 * H:1 * H])
        f = jax.nn.sigmoid(gates[:, 1 * H:2 * H])
        g = jnp.tanh(gates[:, 2 * H:3 * H])
        o = jax.nn.sigmoid(gates[:, 3 * H:4 * H])
        c = f * c + i * g
        h = o * jnp.tanh(c)
        return (h, c), h

    (h_last, _), hseq = jax.lax.scan(
        step, (jnp.zeros((B, H), jnp.float32), jnp.zeros((B, H), jnp.float32)), x_seq)
    return hseq, h_last


def imdb_forward_ref(tokens, params, num_layers):
    emb = params["embedding"][tokens]
    layer_in = jnp.transpose(emb, (1, 0, 2))
    hfin_rev = None
    for l in range(num_layers):
        wih_f, whh_f, b_f = params[f"l{l}_fwd"]
        wih_r, whh_r, b_r = params[f"l{l}_rev"]
        hseq_f, _ = _ref_lstm_dir(layer_in, wih_f, whh_f, b_f)
        hseq_r_rev, hfin_rev = _ref_lstm_dir(layer_in[::-1], wih_r, whh_r, b_r)
        layer_in = jnp.concatenate([hseq_f, hseq_r_rev[::-1]], axis=-1)
    z = jnp.maximum(hfin_rev @ params["out_w1"], 0.0)
    return jax.nn.sigmoid(z @ params["out_w2"])


# ----------------------------- Setup & run -----------------------------

def make_params(key, n_class, embedding_size, hidden_size, num_layers):
    params = {}
    k_emb, k_rest = jax.random.split(key)
    params["embedding"] = (
        jax.random.normal(k_emb, (n_class, embedding_size), jnp.float32) * 0.1)

    H = hidden_size
    keys = jax.random.split(k_rest, num_layers * 2 * 3 + 2)
    ki = 0
    for l in range(num_layers):
        in_size = embedding_size if l == 0 else 2 * hidden_size
        for tag in ("fwd", "rev"):
            w_ih_t = jax.random.normal(keys[ki], (in_size, 4 * H), jnp.float32) * 0.1
            w_hh_t = jax.random.normal(keys[ki + 1], (H, 4 * H), jnp.float32) * 0.1
            b = jax.random.normal(keys[ki + 2], (1, 4 * H), jnp.float32) * 0.1
            params[f"l{l}_{tag}"] = (w_ih_t, w_hh_t, b)
            ki += 3
    params["out_w1"] = jax.random.normal(keys[ki], (H, H // 2), jnp.float32) * 0.1
    params["out_w2"] = jax.random.normal(keys[ki + 1], (H // 2, 1), jnp.float32) * 0.1
    return params


if __name__ == "__main__":
    # Small shapes consistent with the module's forward.
    n_class = 50
    embedding_size = 32
    hidden_size = 32
    num_layers = 3
    batch = 4
    seq_len = 8

    key = jax.random.PRNGKey(0)
    k_params, k_tokens = jax.random.split(key)
    params = make_params(k_params, n_class, embedding_size, hidden_size, num_layers)
    tokens = jax.random.randint(k_tokens, (batch, seq_len), 0, n_class, dtype=jnp.int32)

    fwd = jax.jit(functools.partial(imdb_forward, num_layers=num_layers))
    out = jax.block_until_ready(fwd(tokens, params))

    ref = jax.block_until_ready(imdb_forward_ref(tokens, params, num_layers))
    assert out.shape == (batch, 1), out.shape
    assert jnp.allclose(out, ref, atol=5e-3, rtol=5e-3), (out, ref)

    print("KERNEL_OK")
</pallas_src>

<mosaic_0001>
module attributes {stable_mosaic.version = 11 : i64} {
  func.func @_fused_imdb_kernel(%arg0: memref<64x1xi32, #tpu.memory_space<vmem>>, %arg1: memref<50x32xf32, #tpu.memory_space<vmem>>, %arg2: memref<456x128xf32, #tpu.memory_space<vmem>>, %arg3: memref<32x16xf32, #tpu.memory_space<vmem>>, %arg4: memref<16x1xf32, #tpu.memory_space<vmem>>, %arg5: memref<8x1xf32, #tpu.memory_space<vmem>>, %arg6: memref<64x32xf32, #tpu.memory_space<vmem>>, %arg7: memref<64x32xf32, #tpu.memory_space<vmem>>, %arg8: memref<64x32xf32, #tpu.memory_space<vmem>>, %arg9: memref<64x32xf32, #tpu.memory_space<vmem>>) attributes {dimension_semantics = [], scalar_prefetch = 0 : i64, scratch_operands = 4 : i64, tpu.core_type = #tpu.core_type<tc>} {
    %c0 = arith.constant 0 : index
    %c0_0 = arith.constant 0 : index
    %0 = vector.load %arg0[%c0, %c0_0] : memref<64x1xi32, #tpu.memory_space<vmem>>, vector<64x1xi32>
    %1 = tpu.iota {dimensions = array<i32: 1>} : vector<64x50xi32>
    %2 = vector.broadcast %0 : vector<64x1xi32> to vector<64x50xi32>
    %3 = arith.cmpi eq, %1, %2 : vector<64x50xi32>
    %4 = arith.extui %3 : vector<64x50xi1> to vector<64x50xi32>
    %5 = arith.sitofp %4 : vector<64x50xi32> to vector<64x50xf32>
    %c0_1 = arith.constant 0 : index
    %c0_2 = arith.constant 0 : index
    %6 = vector.load %arg1[%c0_1, %c0_2] : memref<50x32xf32, #tpu.memory_space<vmem>>, vector<50x32xf32>
    %cst = arith.constant dense<0.000000e+00> : vector<64x32xf32>
    %7 = tpu.matmul %5, %6, %cst {dimension_numbers = #tpu.dot_dimension_numbers<[1], [0], [0], [1], [0, 0, 1, 1], [], []>} : vector<64x50xf32>, vector<50x32xf32>, vector<64x32xf32> -> vector<64x32xf32>
    %c0_3 = arith.constant 0 : index
    %c0_4 = arith.constant 0 : index
    %8 = vector.load %arg2[%c0_3, %c0_4] : memref<456x128xf32, #tpu.memory_space<vmem>>, vector<32x128xf32>
    %c32 = arith.constant 32 : index
    %c0_5 = arith.constant 0 : index
    %9 = vector.load %arg2[%c32, %c0_5] : memref<456x128xf32, #tpu.memory_space<vmem>>, vector<32x128xf32>
    %c64 = arith.constant 64 : index
    %c0_6 = arith.constant 0 : index
    %10 = vector.load %arg2[%c64, %c0_6] : memref<456x128xf32, #tpu.memory_space<vmem>>, vector<1x128xf32>
    %c72 = arith.constant 72 : index
    %c0_7 = arith.constant 0 : index
    %11 = vector.load %arg2[%c72, %c0_7] : memref<456x128xf32, #tpu.memory_space<vmem>>, vector<32x128xf32>
    %c104 = arith.constant 104 : index
    %c0_8 = arith.constant 0 : index
    %12 = vector.load %arg2[%c104, %c0_8] : memref<456x128xf32, #tpu.memory_space<vmem>>, vector<32x128xf32>
    %c136 = arith.constant 136 : index
    %c0_9 = arith.constant 0 : index
    %13 = vector.load %arg2[%c136, %c0_9] : memref<456x128xf32, #tpu.memory_space<vmem>>, vector<1x128xf32>
    %cst_10 = arith.constant dense<0.000000e+00> : vector<64x128xf32>
    %14 = tpu.matmul %7, %8, %cst_10 {dimension_numbers = #tpu.dot_dimension_numbers<[1], [0], [0], [1], [0, 0, 1, 1], [], []>} : vector<64x32xf32>, vector<32x128xf32>, vector<64x128xf32> -> vector<64x128xf32>
    %15 = vector.broadcast %10 : vector<1x128xf32> to vector<64x128xf32>
    %16 = arith.addf %14, %15 : vector<64x128xf32>
    %cst_11 = arith.constant dense<0.000000e+00> : vector<64x128xf32>
    %17 = tpu.matmul %7, %11, %cst_11 {dimension_numbers = #tpu.dot_dimension_numbers<[1], [0], [0], [1], [0, 0, 1, 1], [], []>} : vector<64x32xf32>, vector<32x128xf32>, vector<64x128xf32> -> vector<64x128xf32>
    %18 = vector.broadcast %13 : vector<1x128xf32> to vector<64x128xf32>
    %19 = arith.addf %17, %18 : vector<64x128xf32>
    %cst_12 = arith.constant 0.000000e+00 : f32
    %20 = vector.broadcast %cst_12 : f32 to vector<8x32xf32>
    %cst_13 = arith.constant 0.000000e+00 : f32
    %21 = vector.broadcast %cst_13 : f32 to vector<8x32xf32>
    %cst_14 = arith.constant 0.000000e+00 : f32
    %22 = vector.broadcast %cst_14 : f32 to vector<8x32xf32>
    %cst_15 = arith.constant 0.000000e+00 : f32
    %23 = vector.broadcast %cst_15 : f32 to vector<8x32xf32>
    %24 = vector.extract_strided_slice %16 {offsets = [0, 0], sizes = [8, 128], strides = [1, 1]} : vector<64x128xf32> to vector<8x128xf32>
    %cst_16 = arith.constant dense<0.000000e+00> : vector<8x128xf32>
    %25 = tpu.matmul %20, %9, %cst_16 {dimension_numbers = #tpu.dot_dimension_numbers<[1], [0], [0], [1], [0, 0, 1, 1], [], []>} : vector<8x32xf32>, vector<32x128xf32>, vector<8x128xf32> -> vector<8x128xf32>
    %26 = arith.addf %24, %25 : vector<8x128xf32>
    %27 = vector.extract_strided_slice %19 {offsets = [56, 0], sizes = [8, 128], strides = [1, 1]} : vector<64x128xf32> to vector<8x128xf32>
    %cst_17 = arith.constant dense<0.000000e+00> : vector<8x128xf32>
    %28 = tpu.matmul %22, %12, %cst_17 {dimension_numbers = #tpu.dot_dimension_numbers<[1], [0], [0], [1], [0, 0, 1, 1], [], []>} : vector<8x32xf32>, vector<32x128xf32>, vector<8x128xf32> -> vector<8x128xf32>
    %29 = arith.addf %27, %28 : vector<8x128xf32>
    %30 = vector.extract_strided_slice %26 {offsets = [0, 0], sizes = [8, 96], strides = [1, 1]} : vector<8x128xf32> to vector<8x96xf32>
    %31 = arith.negf %30 : vector<8x96xf32>
    %32 = math.exp %31 : vector<8x96xf32>
    %cst_18 = arith.constant 1.000000e+00 : f32
    %33 = vector.broadcast %cst_18 : f32 to vector<8x96xf32>
    %34 = arith.addf %33, %32 : vector<8x96xf32>
    %35 = arith.divf %33, %34 : vector<8x96xf32>
    %36 = vector.extract_strided_slice %26 {offsets = [0, 96], sizes = [8, 32], strides = [1, 1]} : vector<8x128xf32> to vector<8x32xf32>
    %37 = math.tanh %36 : vector<8x32xf32>
    %38 = vector.extract_strided_slice %35 {offsets = [0, 0], sizes = [8, 32], strides = [1, 1]} : vector<8x96xf32> to vector<8x32xf32>
    %39 = vector.extract_strided_slice %35 {offsets = [0, 32], sizes = [8, 32], strides = [1, 1]} : vector<8x96xf32> to vector<8x32xf32>
    %40 = vector.extract_strided_slice %35 {offsets = [0, 64], sizes = [8, 32], strides = [1, 1]} : vector<8x96xf32> to vector<8x32xf32>
    %41 = arith.mulf %39, %21 : vector<8x32xf32>
    %42 = arith.mulf %38, %37 : vector<8x32xf32>
    %43 = arith.addf %41, %42 : vector<8x32xf32>
    %44 = math.tanh %43 : vector<8x32xf32>
    %45 = arith.mulf %40, %44 : vector<8x32xf32>
    %46 = vector.extract_strided_slice %29 {offsets = [0, 0], sizes = [8, 96], strides = [1, 1]} : vector<8x128xf32> to vector<8x96xf32>
    %47 = arith.negf %46 : vector<8x96xf32>
    %48 = math.exp %47 : vector<8x96xf32>
    %cst_19 = arith.constant 1.000000e+00 : f32
    %49 = vector.broadcast %cst_19 : f32 to vector<8x96xf32>
    %50 = arith.addf %49, %48 : vector<8x96xf32>
    %51 = arith.divf %49, %50 : vector<8x96xf32>
    %52 = vector.extract_strided_slice %29 {offsets = [0, 96], sizes = [8, 32], strides = [1, 1]} : vector<8x128xf32> to vector<8x32xf32>
    %53 = math.tanh %52 : vector<8x32xf32>
    %54 = vector.extract_strided_slice %51 {offsets = [0, 0], sizes = [8, 32], strides = [1, 1]} : vector<8x96xf32> to vector<8x32xf32>
    %55 = vector.extract_strided_slice %51 {offsets = [0, 32], sizes = [8, 32], strides = [1, 1]} : vector<8x96xf32> to vector<8x32xf32>
    %56 = vector.extract_strided_slice %51 {offsets = [0, 64], sizes = [8, 32], strides = [1, 1]} : vector<8x96xf32> to vector<8x32xf32>
    %57 = arith.mulf %55, %23 : vector<8x32xf32>
    %58 = arith.mulf %54, %53 : vector<8x32xf32>
    %59 = arith.addf %57, %58 : vector<8x32xf32>
    %60 = math.tanh %59 : vector<8x32xf32>
    %61 = arith.mulf %56, %60 : vector<8x32xf32>
    %c0_20 = arith.constant 0 : index
    %c0_21 = arith.constant 0 : index
    %62 = vector.load %arg6[%c0_20, %c0_21] : memref<64x32xf32, #tpu.memory_space<vmem>>, vector<8x32xf32>
    tpu.vector_store %arg6[%c0_20, %c0_21], %45 {strides = array<i32>} : memref<64x32xf32, #tpu.memory_space<vmem>>, vector<8x32xf32>,
    %c56 = arith.constant 56 : index
    %c0_22 = arith.constant 0 : index
    %63 = vector.load %arg7[%c56, %c0_22] : memref<64x32xf32, #tpu.memory_space<vmem>>, vector<8x32xf32>
    tpu.vector_store %arg7[%c56, %c0_22], %61 {strides = array<i32>} : memref<64x32xf32, #tpu.memory_space<vmem>>, vector<8x32xf32>,
    %64 = vector.extract_strided_slice %16 {offsets = [8, 0], sizes = [8, 128], strides = [1, 1]} : vector<64x128xf32> to vector<8x128xf32>
    %cst_23 = arith.constant dense<0.000000e+00> : vector<8x128xf32>
    %65 = tpu.matmul %45, %9, %cst_23 {dimension_numbers = #tpu.dot_dimension_numbers<[1], [0], [0], [1], [0, 0, 1, 1], [], []>} : vector<8x32xf32>, vector<32x128xf32>, vector<8x128xf32> -> vector<8x128xf32>
    %66 = arith.addf %64, %65 : vector<8x128xf32>
    %67 = vector.extract_strided_slice %19 {offsets = [48, 0], sizes = [8, 128], strides = [1, 1]} : vector<64x128xf32> to vector<8x128xf32>
    %cst_24 = arith.constant dense<0.000000e+00> : vector<8x128xf32>
    %68 = tpu.matmul %61, %12, %cst_24 {dimension_numbers = #tpu.dot_dimension_numbers<[1], [0], [0], [1], [0, 0, 1, 1], [], []>} : vector<8x32xf32>, vector<32x128xf32>, vector<8x128xf32> -> vector<8x128xf32>
    %69 = arith.addf %67, %68 : vector<8x128xf32>
    %70 = vector.extract_strided_slice %66 {offsets = [0, 0], sizes = [8, 96], strides = [1, 1]} : vector<8x128xf32> to vector<8x96xf32>
    %71 = arith.negf %70 : vector<8x96xf32>
    %72 = math.exp %71 : vector<8x96xf32>
    %cst_25 = arith.constant 1.000000e+00 : f32
    %73 = vector.broadcast %cst_25 : f32 to vector<8x96xf32>
    %74 = arith.addf %73, %72 : vector<8x96xf32>
    %75 = arith.divf %73, %74 : vector<8x96xf32>
    %76 = vector.extract_strided_slice %66 {offsets = [0, 96], sizes = [8, 32], strides = [1, 1]} : vector<8x128xf32> to vector<8x32xf32>
    %77 = math.tanh %76 : vector<8x32xf32>
    %78 = vector.extract_strided_slice %75 {offsets = [0, 0], sizes = [8, 32], strides = [1, 1]} : vector<8x96xf32> to vector<8x32xf32>
    %79 = vector.extract_strided_slice %75 {offsets = [0, 32], sizes = [8, 32], strides = [1, 1]} : vector<8x96xf32> to vector<8x32xf32>
    %80 = vector.extract_strided_slice %75 {offsets = [0, 64], sizes = [8, 32], strides = [1, 1]} : vector<8x96xf32> to vector<8x32xf32>
    %81 = arith.mulf %79, %43 : vector<8x32xf32>
    %82 = arith.mulf %78, %77 : vector<8x32xf32>
    %83 = arith.addf %81, %82 : vector<8x32xf32>
    %84 = math.tanh %83 : vector<8x32xf32>
    %85 = arith.mulf %80, %84 : vector<8x32xf32>
    %86 = vector.extract_strided_slice %69 {offsets = [0, 0], sizes = [8, 96], strides = [1, 1]} : vector<8x128xf32> to vector<8x96xf32>
    %87 = arith.negf %86 : vector<8x96xf32>
    %88 = math.exp %87 : vector<8x96xf32>
    %cst_26 = arith.constant 1.000000e+00 : f32
    %89 = vector.broadcast %cst_26 : f32 to vector<8x96xf32>
    %90 = arith.addf %89, %88 : vector<8x96xf32>
    %91 = arith.divf %89, %90 : vector<8x96xf32>
    %92 = vector.extract_strided_slice %69 {offsets = [0, 96], sizes = [8, 32], strides = [1, 1]} : vector<8x128xf32> to vector<8x32xf32>
    %93 = math.tanh %92 : vector<8x32xf32>
    %94 = vector.extract_strided_slice %91 {offsets = [0, 0], sizes = [8, 32], strides = [1, 1]} : vector<8x96xf32> to vector<8x32xf32>
    %95 = vector.extract_strided_slice %91 {offsets = [0, 32], sizes = [8, 32], strides = [1, 1]} : vector<8x96xf32> to vector<8x32xf32>
    %96 = vector.extract_strided_slice %91 {offsets = [0, 64], sizes = [8, 32], strides = [1, 1]} : vector<8x96xf32> to vector<8x32xf32>
    %97 = arith.mulf %95, %59 : vector<8x32xf32>
    %98 = arith.mulf %94, %93 : vector<8x32xf32>
    %99 = arith.addf %97, %98 : vector<8x32xf32>
    %100 = math.tanh %99 : vector<8x32xf32>
    %101 = arith.mulf %96, %100 : vector<8x32xf32>
    %c8 = arith.constant 8 : index
    %c0_27 = arith.constant 0 : index
    %102 = vector.load %arg6[%c8, %c0_27] : memref<64x32xf32, #tpu.memory_space<vmem>>, vector<8x32xf32>
    tpu.vector_store %arg6[%c8, %c0_27], %85 {strides = array<i32>} : memref<64x32xf32, #tpu.memory_space<vmem>>, vector<8x32xf32>,
    %c48 = arith.constant 48 : index
    %c0_28 = arith.constant 0 : index
    %103 = vector.load %arg7[%c48, %c0_28] : memref<64x32xf32, #tpu.memory_space<vmem>>, vector<8x32xf32>
    tpu.vector_store %arg7[%c48, %c0_28], %101 {strides = array<i32>} : memref<64x32xf32, #tpu.memory_space<vmem>>, vector<8x32xf32>,
    %104 = vector.extract_strided_slice %16 {offsets = [16, 0], sizes = [8, 128], strides = [1, 1]} : vector<64x128xf32> to vector<8x128xf32>
    %cst_29 = arith.constant dense<0.000000e+00> : vector<8x128xf32>
    %105 = tpu.matmul %85, %9, %cst_29 {dimension_numbers = #tpu.dot_dimension_numbers<[1], [0], [0], [1], [0, 0, 1, 1], [], []>} : vector<8x32xf32>, vector<32x128xf32>, vector<8x128xf32> -> vector<8x128xf32>
    %106 = arith.addf %104, %105 : vector<8x128xf32>
    %107 = vector.extract_strided_slice %19 {offsets = [40, 0], sizes = [8, 128], strides = [1, 1]} : vector<64x128xf32> to vector<8x128xf32>
    %cst_30 = arith.constant dense<0.000000e+00> : vector<8x128xf32>
    %108 = tpu.matmul %101, %12, %cst_30 {dimension_numbers = #tpu.dot_dimension_numbers<[1], [0], [0], [1], [0, 0, 1, 1], [], []>} : vector<8x32xf32>, vector<32x128xf32>, vector<8x128xf32> -> vector<8x128xf32>
    %109 = arith.addf %107, %108 : vector<8x128xf32>
    %110 = vector.extract_strided_slice %106 {offsets = [0, 0], sizes = [8, 96], strides = [1, 1]} : vector<8x128xf32> to vector<8x96xf32>
    %111 = arith.negf %110 : vector<8x96xf32>
    %112 = math.exp %111 : vector<8x96xf32>
    %cst_31 = arith.constant 1.000000e+00 : f32
    %113 = vector.broadcast %cst_31 : f32 to vector<8x96xf32>
    %114 = arith.addf %113, %112 : vector<8x96xf32>
    %115 = arith.divf %113, %114 : vector<8x96xf32>
    %116 = vector.extract_strided_slice %106 {offsets = [0, 96], sizes = [8, 32], strides = [1, 1]} : vector<8x128xf32> to vector<8x32xf32>
    %117 = math.tanh %116 : vector<8x32xf32>
    %118 = vector.extract_strided_slice %115 {offsets = [0, 0], sizes = [8, 32], strides = [1, 1]} : vector<8x96xf32> to vector<8x32xf32>
    %119 = vector.extract_strided_slice %115 {offsets = [0, 32], sizes = [8, 32], strides = [1, 1]} : vector<8x96xf32> to vector<8x32xf32>
    %120 = vector.extract_strided_slice %115 {offsets = [0, 64], sizes = [8, 32], strides = [1, 1]} : vector<8x96xf32> to vector<8x32xf32>
    %121 = arith.mulf %119, %83 : vector<8x32xf32>
    %122 = arith.mulf %118, %117 : vector<8x32xf32>
    %123 = arith.addf %121, %122 : vector<8x32xf32>
    %124 = math.tanh %123 : vector<8x32xf32>
    %125 = arith.mulf %120, %124 : vector<8x32xf32>
    %126 = vector.extract_strided_slice %109 {offsets = [0, 0], sizes = [8, 96], strides = [1, 1]} : vector<8x128xf32> to vector<8x96xf32>
    %127 = arith.negf %126 : vector<8x96xf32>
    %128 = math.exp %127 : vector<8x96xf32>
    %cst_32 = arith.constant 1.000000e+00 : f32
    %129 = vector.broadcast %cst_32 : f32 to vector<8x96xf32>
    %130 = arith.addf %129, %128 : vector<8x96xf32>
    %131 = arith.divf %129, %130 : vector<8x96xf32>
    %132 = vector.extract_strided_slice %109 {offsets = [0, 96], sizes = [8, 32], strides = [1, 1]} : vector<8x128xf32> to vector<8x32xf32>
    %133 = math.tanh %132 : vector<8x32xf32>
    %134 = vector.extract_strided_slice %131 {offsets = [0, 0], sizes = [8, 32], strides = [1, 1]} : vector<8x96xf32> to vector<8x32xf32>
    %135 = vector.extract_strided_slice %131 {offsets = [0, 32], sizes = [8, 32], strides = [1, 1]} : vector<8x96xf32> to vector<8x32xf32>
    %136 = vector.extract_strided_slice %131 {offsets = [0, 64], sizes = [8, 32], strides = [1, 1]} : vector<8x96xf32> to vector<8x32xf32>
    %137 = arith.mulf %135, %99 : vector<8x32xf32>
    %138 = arith.mulf %134, %133 : vector<8x32xf32>
    %139 = arith.addf %137, %138 : vector<8x32xf32>
    %140 = math.tanh %139 : vector<8x32xf32>
    %141 = arith.mulf %136, %140 : vector<8x32xf32>
    %c16 = arith.constant 16 : index
    %c0_33 = arith.constant 0 : index
    %142 = vector.load %arg6[%c16, %c0_33] : memref<64x32xf32, #tpu.memory_space<vmem>>, vector<8x32xf32>
    tpu.vector_store %arg6[%c16, %c0_33], %125 {strides = array<i32>} : memref<64x32xf32, #tpu.memory_space<vmem>>, vector<8x32xf32>,
    %c40 = arith.constant 40 : index
    %c0_34 = arith.constant 0 : index
    %143 = vector.load %arg7[%c40, %c0_34] : memref<64x32xf32, #tpu.memory_space<vmem>>, vector<8x32xf32>
    tpu.vector_store %arg7[%c40, %c0_34], %141 {strides = array<i32>} : memref<64x32xf32, #tpu.memory_space<vmem>>, vector<8x32xf32>,
    %144 = vector.extract_strided_slice %16 {offsets = [24, 0], sizes = [8, 128], strides = [1, 1]} : vector<64x128xf32> to vector<8x128xf32>
    %cst_35 = arith.constant dense<0.000000e+00> : vector<8x128xf32>
    %145 = tpu.matmul %125, %9, %cst_35 {dimension_numbers = #tpu.dot_dimension_numbers<[1], [0], [0], [1], [0, 0, 1, 1], [], []>} : vector<8x32xf32>, vector<32x128xf32>, vector<8x128xf32> -> vector<8x128xf32>
    %146 = arith.addf %144, %145 : vector<8x128xf32>
    %147 = vector.extract_strided_slice %19 {offsets = [32, 0], sizes = [8, 128], strides = [1, 1]} : vector<64x128xf32> to vector<8x128xf32>
    %cst_36 = arith.constant dense<0.000000e+00> : vector<8x128xf32>
    %148 = tpu.matmul %141, %12, %cst_36 {dimension_numbers = #tpu.dot_dimension_numbers<[1], [0], [0], [1], [0, 0, 1, 1], [], []>} : vector<8x32xf32>, vector<32x128xf32>, vector<8x128xf32> -> vector<8x128xf32>
    %149 = arith.addf %147, %148 : vector<8x128xf32>
    %150 = vector.extract_strided_slice %146 {offsets = [0, 0], sizes = [8, 96], strides = [1, 1]} : vector<8x128xf32> to vector<8x96xf32>
    %151 = arith.negf %150 : vector<8x96xf32>
    %152 = math.exp %151 : vector<8x96xf32>
    %cst_37 = arith.constant 1.000000e+00 : f32
    %153 = vector.broadcast %cst_37 : f32 to vector<8x96xf32>
    %154 = arith.addf %153, %152 : vector<8x96xf32>
    %155 = arith.divf %153, %154 : vector<8x96xf32>
    %156 = vector.extract_strided_slice %146 {offsets = [0, 96], sizes = [8, 32], strides = [1, 1]} : vector<8x128xf32> to vector<8x32xf32>
    %157 = math.tanh %156 : vector<8x32xf32>
    %158 = vector.extract_strided_slice %155 {offsets = [0, 0], sizes = [8, 32], strides = [1, 1]} : vector<8x96xf32> to vector<8x32xf32>
    %159 = vector.extract_strided_slice %155 {offsets = [0, 32], sizes = [8, 32], strides = [1, 1]} : vector<8x96xf32> to vector<8x32xf32>
    %160 = vector.extract_strided_slice %155 {offsets = [0, 64], sizes = [8, 32], strides = [1, 1]} : vector<8x96xf32> to vector<8x32xf32>
    %161 = arith.mulf %159, %123 : vector<8x32xf32>
    %162 = arith.mulf %158, %157 : vector<8x32xf32>
    %163 = arith.addf %161, %162 : vector<8x32xf32>
    %164 = math.tanh %163 : vector<8x32xf32>
    %165 = arith.mulf %160, %164 : vector<8x32xf32>
    %166 = vector.extract_strided_slice %149 {offsets = [0, 0], sizes = [8, 96], strides = [1, 1]} : vector<8x128xf32> to vector<8x96xf32>
    %167 = arith.negf %166 : vector<8x96xf32>
    %168 = math.exp %167 : vector<8x96xf32>
    %cst_38 = arith.constant 1.000000e+00 : f32
    %169 = vector.broadcast %cst_38 : f32 to vector<8x96xf32>
    %170 = arith.addf %169, %168 : vector<8x96xf32>
    %171 = arith.divf %169, %170 : vector<8x96xf32>
    %172 = vector.extract_strided_slice %149 {offsets = [0, 96], sizes = [8, 32], strides = [1, 1]} : vector<8x128xf32> to vector<8x32xf32>
    %173 = math.tanh %172 : vector<8x32xf32>
    %174 = vector.extract_strided_slice %171 {offsets = [0, 0], sizes = [8, 32], strides = [1, 1]} : vector<8x96xf32> to vector<8x32xf32>
    %175 = vector.extract_strided_slice %171 {offsets = [0, 32], sizes = [8, 32], strides = [1, 1]} : vector<8x96xf32> to vector<8x32xf32>
    %176 = vector.extract_strided_slice %171 {offsets = [0, 64], sizes = [8, 32], strides = [1, 1]} : vector<8x96xf32> to vector<8x32xf32>
    %177 = arith.mulf %175, %139 : vector<8x32xf32>
    %178 = arith.mulf %174, %173 : vector<8x32xf32>
    %179 = arith.addf %177, %178 : vector<8x32xf32>
    %180 = math.tanh %179 : vector<8x32xf32>
    %181 = arith.mulf %176, %180 : vector<8x32xf32>
    %c24 = arith.constant 24 : index
    %c0_39 = arith.constant 0 : index
    %182 = vector.load %arg6[%c24, %c0_39] : memref<64x32xf32, #tpu.memory_space<vmem>>, vector<8x32xf32>
    tpu.vector_store %arg6[%c24, %c0_39], %165 {strides = array<i32>} : memref<64x32xf32, #tpu.memory_space<vmem>>, vector<8x32xf32>,
    %c32_40 = arith.constant 32 : index
    %c0_41 = arith.constant 0 : index
    %183 = vector.load %arg7[%c32_40, %c0_41] : memref<64x32xf32, #tpu.memory_space<vmem>>, vector<8x32xf32>
    tpu.vector_store %arg7[%c32_40, %c0_41], %181 {strides = array<i32>} : memref<64x32xf32, #tpu.memory_space<vmem>>, vector<8x32xf32>,
    %184 = vector.extract_strided_slice %16 {offsets = [32, 0], sizes = [8, 128], strides = [1, 1]} : vector<64x128xf32> to vector<8x128xf32>
    %cst_42 = arith.constant dense<0.000000e+00> : vector<8x128xf32>
    %185 = tpu.matmul %165, %9, %cst_42 {dimension_numbers = #tpu.dot_dimension_numbers<[1], [0], [0], [1], [0, 0, 1, 1], [], []>} : vector<8x32xf32>, vector<32x128xf32>, vector<8x128xf32> -> vector<8x128xf32>
    %186 = arith.addf %184, %185 : vector<8x128xf32>
    %187 = vector.extract_strided_slice %19 {offsets = [24, 0], sizes = [8, 128], strides = [1, 1]} : vector<64x128xf32> to vector<8x128xf32>
    %cst_43 = arith.constant dense<0.000000e+00> : vector<8x128xf32>
    %188 = tpu.matmul %181, %12, %cst_43 {dimension_numbers = #tpu.dot_dimension_numbers<[1], [0], [0], [1], [0, 0, 1, 1], [], []>} : vector<8x32xf32>, vector<32x128xf32>, vector<8x128xf32> -> vector<8x128xf32>
    %189 = arith.addf %187, %188 : vector<8x128xf32>
    %190 = vector.extract_strided_slice %186 {offsets = [0, 0], sizes = [8, 96], strides = [1, 1]} : vector<8x128xf32> to vector<8x96xf32>
    %191 = arith.negf %190 : vector<8x96xf32>
    %192 = math.exp %191 : vector<8x96xf32>
    %cst_44 = arith.constant 1.000000e+00 : f32
    %193 = vector.broadcast %cst_44 : f32 to vector<8x96xf32>
    %194 = arith.addf %193, %192 : vector<8x96xf32>
    %195 = arith.divf %193, %194 : vector<8x96xf32>
    %196 = vector.extract_strided_slice %186 {offsets = [0, 96], sizes = [8, 32], strides = [1, 1]} : vector<8x128xf32> to vector<8x32xf32>
    %197 = math.tanh %196 : vector<8x32xf32>
    %198 = vector.extract_strided_slice %195 {offsets = [0, 0], sizes = [8, 32], strides = [1, 1]} : vector<8x96xf32> to vector<8x32xf32>
    %199 = vector.extract_strided_slice %195 {offsets = [0, 32], sizes = [8, 32], strides = [1, 1]} : vector<8x96xf32> to vector<8x32xf32>
    %200 = vector.extract_strided_slice %195 {offsets = [0, 64], sizes = [8, 32], strides = [1, 1]} : vector<8x96xf32> to vector<8x32xf32>
    %201 = arith.mulf %199, %163 : vector<8x32xf32>
    %202 = arith.mulf %198, %197 : vector<8x32xf32>
    %203 = arith.addf %201, %202 : vector<8x32xf32>
    %204 = math.tanh %203 : vector<8x32xf32>
    %205 = arith.mulf %200, %204 : vector<8x32xf32>
    %206 = vector.extract_strided_slice %189 {offsets = [0, 0], sizes = [8, 96], strides = [1, 1]} : vector<8x128xf32> to vector<8x96xf32>
    %207 = arith.negf %206 : vector<8x96xf32>
    %208 = math.exp %207 : vector<8x96xf32>
    %cst_45 = arith.constant 1.000000e+00 : f32
    %209 = vector.broadcast %cst_45 : f32 to vector<8x96xf32>
    %210 = arith.addf %209, %208 : vector<8x96xf32>
    %211 = arith.divf %209, %210 : vector<8x96xf32>
    %212 = vector.extract_strided_slice %189 {offsets = [0, 96], sizes = [8, 32], strides = [1, 1]} : vector<8x128xf32> to vector<8x32xf32>
    %213 = math.tanh %212 : vector<8x32xf32>
    %214 = vector.extract_strided_slice %211 {offsets = [0, 0], sizes = [8, 32], strides = [1, 1]} : vector<8x96xf32> to vector<8x32xf32>
    %215 = vector.extract_strided_slice %211 {offsets = [0, 32], sizes = [8, 32], strides = [1, 1]} : vector<8x96xf32> to vector<8x32xf32>
    %216 = vector.extract_strided_slice %211 {offsets = [0, 64], sizes = [8, 32], strides = [1, 1]} : vector<8x96xf32> to vector<8x32xf32>
    %217 = arith.mulf %215, %179 : vector<8x32xf32>
    %218 = arith.mulf %214, %213 : vector<8x32xf32>
    %219 = arith.addf %217, %218 : vector<8x32xf32>
    %220 = math.tanh %219 : vector<8x32xf32>
    %221 = arith.mulf %216, %220 : vector<8x32xf32>
    %c32_46 = arith.constant 32 : index
    %c0_47 = arith.constant 0 : index
    %222 = vector.load %arg6[%c32_46, %c0_47] : memref<64x32xf32, #tpu.memory_space<vmem>>, vector<8x32xf32>
    tpu.vector_store %arg6[%c32_46, %c0_47], %205 {strides = array<i32>} : memref<64x32xf32, #tpu.memory_space<vmem>>, vector<8x32xf32>,
    %c24_48 = arith.constant 24 : index
    %c0_49 = arith.constant 0 : index
    %223 = vector.load %arg7[%c24_48, %c0_49] : memref<64x32xf32, #tpu.memory_space<vmem>>, vector<8x32xf32>
    tpu.vector_store %arg7[%c24_48, %c0_49], %221 {strides = array<i32>} : memref<64x32xf32, #tpu.memory_space<vmem>>, vector<8x32xf32>,
    %224 = vector.extract_strided_slice %16 {offsets = [40, 0], sizes = [8, 128], strides = [1, 1]} : vector<64x128xf32> to vector<8x128xf32>
    %cst_50 = arith.constant dense<0.000000e+00> : vector<8x128xf32>
    %225 = tpu.matmul %205, %9, %cst_50 {dimension_numbers = #tpu.dot_dimension_numbers<[1], [0], [0], [1], [0, 0, 1, 1], [], []>} : vector<8x32xf32>, vector<32x128xf32>, vector<8x128xf32> -> vector<8x128xf32>
    %226 = arith.addf %224, %225 : vector<8x128xf32>
    %227 = vector.extract_strided_slice %19 {offsets = [16, 0], sizes = [8, 128], strides = [1, 1]} : vector<64x128xf32> to vector<8x128xf32>
    %cst_51 = arith.constant dense<0.000000e+00> : vector<8x128xf32>
    %228 = tpu.matmul %221, %12, %cst_51 {dimension_numbers = #tpu.dot_dimension_numbers<[1], [0], [0], [1], [0, 0, 1, 1], [], []>} : vector<8x32xf32>, vector<32x128xf32>, vector<8x128xf32> -> vector<8x128xf32>
    %229 = arith.addf %227, %228 : vector<8x128xf32>
    %230 = vector.extract_strided_slice %226 {offsets = [0, 0], sizes = [8, 96], strides = [1, 1]} : vector<8x128xf32> to vector<8x96xf32>
    %231 = arith.negf %230 : vector<8x96xf32>
    %232 = math.exp %231 : vector<8x96xf32>
    %cst_52 = arith.constant 1.000000e+00 : f32
    %233 = vector.broadcast %cst_52 : f32 to vector<8x96xf32>
    %234 = arith.addf %233, %232 : vector<8x96xf32>
    %235 = arith.divf %233, %234 : vector<8x96xf32>
    %236 = vector.extract_strided_slice %226 {offsets = [0, 96], sizes = [8, 32], strides = [1, 1]} : vector<8x128xf32> to vector<8x32xf32>
    %237 = math.tanh %236 : vector<8x32xf32>
    %238 = vector.extract_strided_slice %235 {offsets = [0, 0], sizes = [8, 32], strides = [1, 1]} : vector<8x96xf32> to vector<8x32xf32>
    %239 = vector.extract_strided_slice %235 {offsets = [0, 32], sizes = [8, 32], strides = [1, 1]} : vector<8x96xf32> to vector<8x32xf32>
    %240 = vector.extract_strided_slice %235 {offsets = [0, 64], sizes = [8, 32], strides = [1, 1]} : vector<8x96xf32> to vector<8x32xf32>
    %241 = arith.mulf %239, %203 : vector<8x32xf32>
    %242 = arith.mulf %238, %237 : vector<8x32xf32>
    %243 = arith.addf %241, %242 : vector<8x32xf32>
    %244 = math.tanh %243 : vector<8x32xf32>
    %245 = arith.mulf %240, %244 : vector<8x32xf32>
    %246 = vector.extract_strided_slice %229 {offsets = [0, 0], sizes = [8, 96], strides = [1, 1]} : vector<8x128xf32> to vector<8x96xf32>
    %247 = arith.negf %246 : vector<8x96xf32>
    %248 = math.exp %247 : vector<8x96xf32>
    %cst_53 = arith.constant 1.000000e+00 : f32
    %249 = vector.broadcast %cst_53 : f32 to vector<8x96xf32>
    %250 = arith.addf %249, %248 : vector<8x96xf32>
    %251 = arith.divf %249, %250 : vector<8x96xf32>
    %252 = vector.extract_strided_slice %229 {offsets = [0, 96], sizes = [8, 32], strides = [1, 1]} : vector<8x128xf32> to vector<8x32xf32>
    %253 = math.tanh %252 : vector<8x32xf32>
    %254 = vector.extract_strided_slice %251 {offsets = [0, 0], sizes = [8, 32], strides = [1, 1]} : vector<8x96xf32> to vector<8x32xf32>
    %255 = vector.extract_strided_slice %251 {offsets = [0, 32], sizes = [8, 32], strides = [1, 1]} : vector<8x96xf32> to vector<8x32xf32>
    %256 = vector.extract_strided_slice %251 {offsets = [0, 64], sizes = [8, 32], strides = [1, 1]} : vector<8x96xf32> to vector<8x32xf32>
    %257 = arith.mulf %255, %219 : vector<8x32xf32>
    %258 = arith.mulf %254, %253 : vector<8x32xf32>
    %259 = arith.addf %257, %258 : vector<8x32xf32>
    %260 = math.tanh %259 : vector<8x32xf32>
    %261 = arith.mulf %256, %260 : vector<8x32xf32>
    %c40_54 = arith.constant 40 : index
    %c0_55 = arith.constant 0 : index
    %262 = vector.load %arg6[%c40_54, %c0_55] : memref<64x32xf32, #tpu.memory_space<vmem>>, vector<8x32xf32>
    tpu.vector_store %arg6[%c40_54, %c0_55], %245 {strides = array<i32>} : memref<64x32xf32, #tpu.memory_space<vmem>>, vector<8x32xf32>,
    %c16_56 = arith.constant 16 : index
    %c0_57 = arith.constant 0 : index
    %263 = vector.load %arg7[%c16_56, %c0_57] : memref<64x32xf32, #tpu.memory_space<vmem>>, vector<8x32xf32>
    tpu.vector_store %arg7[%c16_56, %c0_57], %261 {strides = array<i32>} : memref<64x32xf32, #tpu.memory_space<vmem>>, vector<8x32xf32>,
    %264 = vector.extract_strided_slice %16 {offsets = [48, 0], sizes = [8, 128], strides = [1, 1]} : vector<64x128xf32> to vector<8x128xf32>
    %cst_58 = arith.constant dense<0.000000e+00> : vector<8x128xf32>
    %265 = tpu.matmul %245, %9, %cst_58 {dimension_numbers = #tpu.dot_dimension_numbers<[1], [0], [0], [1], [0, 0, 1, 1], [], []>} : vector<8x32xf32>, vector<32x128xf32>, vector<8x128xf32> -> vector<8x128xf32>
    %266 = arith.addf %264, %265 : vector<8x128xf32>
    %267 = vector.extract_strided_slice %19 {offsets = [8, 0], sizes = [8, 128], strides = [1, 1]} : vector<64x128xf32> to vector<8x128xf32>
    %cst_59 = arith.constant dense<0.000000e+00> : vector<8x128xf32>
    %268 = tpu.matmul %261, %12, %cst_59 {dimension_numbers = #tpu.dot_dimension_numbers<[1], [0], [0], [1], [0, 0, 1, 1], [], []>} : vector<8x32xf32>, vector<32x128xf32>, vector<8x128xf32> -> vector<8x128xf32>
    %269 = arith.addf %267, %268 : vector<8x128xf32>
    %270 = vector.extract_strided_slice %266 {offsets = [0, 0], sizes = [8, 96], strides = [1, 1]} : vector<8x128xf32> to vector<8x96xf32>
    %271 = arith.negf %270 : vector<8x96xf32>
    %272 = math.exp %271 : vector<8x96xf32>
    %cst_60 = arith.constant 1.000000e+00 : f32
    %273 = vector.broadcast %cst_60 : f32 to vector<8x96xf32>
    %274 = arith.addf %273, %272 : vector<8x96xf32>
    %275 = arith.divf %273, %274 : vector<8x96xf32>
    %276 = vector.extract_strided_slice %266 {offsets = [0, 96], sizes = [8, 32], strides = [1, 1]} : vector<8x128xf32> to vector<8x32xf32>
    %277 = math.tanh %276 : vector<8x32xf32>
    %278 = vector.extract_strided_slice %275 {offsets = [0, 0], sizes = [8, 32], strides = [1, 1]} : vector<8x96xf32> to vector<8x32xf32>
    %279 = vector.extract_strided_slice %275 {offsets = [0, 32], sizes = [8, 32], strides = [1, 1]} : vector<8x96xf32> to vector<8x32xf32>
    %280 = vector.extract_strided_slice %275 {offsets = [0, 64], sizes = [8, 32], strides = [1, 1]} : vector<8x96xf32> to vector<8x32xf32>
    %281 = arith.mulf %279, %243 : vector<8x32xf32>
    %282 = arith.mulf %278, %277 : vector<8x32xf32>
    %283 = arith.addf %281, %282 : vector<8x32xf32>
    %284 = math.tanh %283 : vector<8x32xf32>
    %285 = arith.mulf %280, %284 : vector<8x32xf32>
    %286 = vector.extract_strided_slice %269 {offsets = [0, 0], sizes = [8, 96], strides = [1, 1]} : vector<8x128xf32> to vector<8x96xf32>
    %287 = arith.negf %286 : vector<8x96xf32>
    %288 = math.exp %287 : vector<8x96xf32>
    %cst_61 = arith.constant 1.000000e+00 : f32
    %289 = vector.broadcast %cst_61 : f32 to vector<8x96xf32>
    %290 = arith.addf %289, %288 : vector<8x96xf32>
    %291 = arith.divf %289, %290 : vector<8x96xf32>
    %292 = vector.extract_strided_slice %269 {offsets = [0, 96], sizes = [8, 32], strides = [1, 1]} : vector<8x128xf32> to vector<8x32xf32>
    %293 = math.tanh %292 : vector<8x32xf32>
    %294 = vector.extract_strided_slice %291 {offsets = [0, 0], sizes = [8, 32], strides = [1, 1]} : vector<8x96xf32> to vector<8x32xf32>
    %295 = vector.extract_strided_slice %291 {offsets = [0, 32], sizes = [8, 32], strides = [1, 1]} : vector<8x96xf32> to vector<8x32xf32>
    %296 = vector.extract_strided_slice %291 {offsets = [0, 64], sizes = [8, 32], strides = [1, 1]} : vector<8x96xf32> to vector<8x32xf32>
    %297 = arith.mulf %295, %259 : vector<8x32xf32>
    %298 = arith.mulf %294, %293 : vector<8x32xf32>
    %299 = arith.addf %297, %298 : vector<8x32xf32>
    %300 = math.tanh %299 : vector<8x32xf32>
    %301 = arith.mulf %296, %300 : vector<8x32xf32>
    %c48_62 = arith.constant 48 : index
    %c0_63 = arith.constant 0 : index
    %302 = vector.load %arg6[%c48_62, %c0_63] : memref<64x32xf32, #tpu.memory_space<vmem>>, vector<8x32xf32>
    tpu.vector_store %arg6[%c48_62, %c0_63], %285 {strides = array<i32>} : memref<64x32xf32, #tpu.memory_space<vmem>>, vector<8x32xf32>,
    %c8_64 = arith.constant 8 : index
    %c0_65 = arith.constant 0 : index
    %303 = vector.load %arg7[%c8_64, %c0_65] : memref<64x32xf32, #tpu.memory_space<vmem>>, vector<8x32xf32>
    tpu.vector_store %arg7[%c8_64, %c0_65], %301 {strides = array<i32>} : memref<64x32xf32, #tpu.memory_space<vmem>>, vector<8x32xf32>,
    %304 = vector.extract_strided_slice %16 {offsets = [56, 0], sizes = [8, 128], strides = [1, 1]} : vector<64x128xf32> to vector<8x128xf32>
    %cst_66 = arith.constant dense<0.000000e+00> : vector<8x128xf32>
    %305 = tpu.matmul %285, %9, %cst_66 {dimension_numbers = #tpu.dot_dimension_numbers<[1], [0], [0], [1], [0, 0, 1, 1], [], []>} : vector<8x32xf32>, vector<32x128xf32>, vector<8x128xf32> -> vector<8x128xf32>
    %306 = arith.addf %304, %305 : vector<8x128xf32>
    %307 = vector.extract_strided_slice %19 {offsets = [0, 0], sizes = [8, 128], strides = [1, 1]} : vector<64x128xf32> to vector<8x128xf32>
    %cst_67 = arith.constant dense<0.000000e+00> : vector<8x128xf32>
    %308 = tpu.matmul %301, %12, %cst_67 {dimension_numbers = #tpu.dot_dimension_numbers<[1], [0], [0], [1], [0, 0, 1, 1], [], []>} : vector<8x32xf32>, vector<32x128xf32>, vector<8x128xf32> -> vector<8x128xf32>
    %309 = arith.addf %307, %308 : vector<8x128xf32>
    %310 = vector.extract_strided_slice %306 {offsets = [0, 0], sizes = [8, 96], strides = [1, 1]} : vector<8x128xf32> to vector<8x96xf32>
    %311 = arith.negf %310 : vector<8x96xf32>
    %312 = math.exp %311 : vector<8x96xf32>
    %cst_68 = arith.constant 1.000000e+00 : f32
    %313 = vector.broadcast %cst_68 : f32 to vector<8x96xf32>
    %314 = arith.addf %313, %312 : vector<8x96xf32>
    %315 = arith.divf %313, %314 : vector<8x96xf32>
    %316 = vector.extract_strided_slice %306 {offsets = [0, 96], sizes = [8, 32], strides = [1, 1]} : vector<8x128xf32> to vector<8x32xf32>
    %317 = math.tanh %316 : vector<8x32xf32>
    %318 = vector.extract_strided_slice %315 {offsets = [0, 0], sizes = [8, 32], strides = [1, 1]} : vector<8x96xf32> to vector<8x32xf32>
    %319 = vector.extract_strided_slice %315 {offsets = [0, 32], sizes = [8, 32], strides = [1, 1]} : vector<8x96xf32> to vector<8x32xf32>
    %320 = vector.extract_strided_slice %315 {offsets = [0, 64], sizes = [8, 32], strides = [1, 1]} : vector<8x96xf32> to vector<8x32xf32>
    %321 = arith.mulf %319, %283 : vector<8x32xf32>
    %322 = arith.mulf %318, %317 : vector<8x32xf32>
    %323 = arith.addf %321, %322 : vector<8x32xf32>
    %324 = math.tanh %323 : vector<8x32xf32>
    %325 = arith.mulf %320, %324 : vector<8x32xf32>
    %326 = vector.extract_strided_slice %309 {offsets = [0, 0], sizes = [8, 96], strides = [1, 1]} : vector<8x128xf32> to vector<8x96xf32>
    %327 = arith.negf %326 : vector<8x96xf32>
    %328 = math.exp %327 : vector<8x96xf32>
    %cst_69 = arith.constant 1.000000e+00 : f32
    %329 = vector.broadcast %cst_69 : f32 to vector<8x96xf32>
    %330 = arith.addf %329, %328 : vector<8x96xf32>
    %331 = arith.divf %329, %330 : vector<8x96xf32>
    %332 = vector.extract_strided_slice %309 {offsets = [0, 96], sizes = [8, 32], strides = [1, 1]} : vector<8x128xf32> to vector<8x32xf32>
    %333 = math.tanh %332 : vector<8x32xf32>
    %334 = vector.extract_strided_slice %331 {offsets = [0, 0], sizes = [8, 32], strides = [1, 1]} : vector<8x96xf32> to vector<8x32xf32>
    %335 = vector.extract_strided_slice %331 {offsets = [0, 32], sizes = [8, 32], strides = [1, 1]} : vector<8x96xf32> to vector<8x32xf32>
    %336 = vector.extract_strided_slice %331 {offsets = [0, 64], sizes = [8, 32], strides = [1, 1]} : vector<8x96xf32> to vector<8x32xf32>
    %337 = arith.mulf %335, %299 : vector<8x32xf32>
    %338 = arith.mulf %334, %333 : vector<8x32xf32>
    %339 = arith.addf %337, %338 : vector<8x32xf32>
    %340 = math.tanh %339 : vector<8x32xf32>
    %341 = arith.mulf %336, %340 : vector<8x32xf32>
    %c56_70 = arith.constant 56 : index
    %c0_71 = arith.constant 0 : index
    %342 = vector.load %arg6[%c56_70, %c0_71] : memref<64x32xf32, #tpu.memory_space<vmem>>, vector<8x32xf32>
    tpu.vector_store %arg6[%c56_70, %c0_71], %325 {strides = array<i32>} : memref<64x32xf32, #tpu.memory_space<vmem>>, vector<8x32xf32>,
    %c0_72 = arith.constant 0 : index
    %c0_73 = arith.constant 0 : index
    %343 = vector.load %arg7[%c0_72, %c0_73] : memref<64x32xf32, #tpu.memory_space<vmem>>, vector<8x32xf32>
    tpu.vector_store %arg7[%c0_72, %c0_73], %341 {strides = array<i32>} : memref<64x32xf32, #tpu.memory_space<vmem>>, vector<8x32xf32>,
    %c144 = arith.constant 144 : index
    %c0_74 = arith.constant 0 : index
    %344 = vector.load %arg2[%c144, %c0_74] : memref<456x128xf32, #tpu.memory_space<vmem>>, vector<64x128xf32>
    %c208 = arith.constant 208 : index
    %c0_75 = arith.constant 0 : index
    %345 = vector.load %arg2[%c208, %c0_75] : memref<456x128xf32, #tpu.memory_space<vmem>>, vector<32x128xf32>
    %c240 = arith.constant 240 : index
    %c0_76 = arith.constant 0 : index
    %346 = vector.load %arg2[%c240, %c0_76] : memref<456x128xf32, #tpu.memory_space<vmem>>, vector<1x128xf32>
    %c248 = arith.constant 248 : index
    %c0_77 = arith.constant 0 : index
    %347 = vector.load %arg2[%c248, %c0_77] : memref<456x128xf32, #tpu.memory_space<vmem>>, vector<64x128xf32>
    %c312 = arith.constant 312 : index
    %c0_78 = arith.constant 0 : index
    %348 = vector.load %arg2[%c312, %c0_78] : memref<456x128xf32, #tpu.memory_space<vmem>>, vector<32x128xf32>
    %c344 = arith.constant 344 : index
    %c0_79 = arith.constant 0 : index
    %349 = vector.load %arg2[%c344, %c0_79] : memref<456x128xf32, #tpu.memory_space<vmem>>, vector<1x128xf32>
    %c0_80 = arith.constant 0 : index
    %c0_81 = arith.constant 0 : index
    %350 = vector.load %arg6[%c0_80, %c0_81] : memref<64x32xf32, #tpu.memory_space<vmem>>, vector<64x32xf32>
    %c0_82 = arith.constant 0 : index
    %c0_83 = arith.constant 0 : index
    %351 = vector.load %arg7[%c0_82, %c0_83] : memref<64x32xf32, #tpu.memory_space<vmem>>, vector<64x32xf32>
    %352 = vector.extract_strided_slice %344 {offsets = [0, 0], sizes = [32, 128], strides = [1, 1]} : vector<64x128xf32> to vector<32x128xf32>
    %cst_84 = arith.constant dense<0.000000e+00> : vector<64x128xf32>
    %353 = tpu.matmul %350, %352, %cst_84 {dimension_numbers = #tpu.dot_dimension_numbers<[1], [0], [0], [1], [0, 0, 1, 1], [], []>} : vector<64x32xf32>, vector<32x128xf32>, vector<64x128xf32> -> vector<64x128xf32>
    %354 = vector.extract_strided_slice %344 {offsets = [32, 0], sizes = [32, 128], strides = [1, 1]} : vector<64x128xf32> to vector<32x128xf32>
    %cst_85 = arith.constant dense<0.000000e+00> : vector<64x128xf32>
    %355 = tpu.matmul %351, %354, %cst_85 {dimension_numbers = #tpu.dot_dimension_numbers<[1], [0], [0], [1], [0, 0, 1, 1], [], []>} : vector<64x32xf32>, vector<32x128xf32>, vector<64x128xf32> -> vector<64x128xf32>
    %356 = arith.addf %353, %355 : vector<64x128xf32>
    %357 = vector.broadcast %346 : vector<1x128xf32> to vector<64x128xf32>
    %358 = arith.addf %356, %357 : vector<64x128xf32>
    %359 = vector.extract_strided_slice %347 {offsets = [0, 0], sizes = [32, 128], strides = [1, 1]} : vector<64x128xf32> to vector<32x128xf32>
    %cst_86 = arith.constant dense<0.000000e+00> : vector<64x128xf32>
    %360 = tpu.matmul %350, %359, %cst_86 {dimension_numbers = #tpu.dot_dimension_numbers<[1], [0], [0], [1], [0, 0, 1, 1], [], []>} : vector<64x32xf32>, vector<32x128xf32>, vector<64x128xf32> -> vector<64x128xf32>
    %361 = vector.extract_strided_slice %347 {offsets = [32, 0], sizes = [32, 128], strides = [1, 1]} : vector<64x128xf32> to vector<32x128xf32>
    %cst_87 = arith.constant dense<0.000000e+00> : vector<64x128xf32>
    %362 = tpu.matmul %351, %361, %cst_87 {dimension_numbers = #tpu.dot_dimension_numbers<[1], [0], [0], [1], [0, 0, 1, 1], [], []>} : vector<64x32xf32>, vector<32x128xf32>, vector<64x128xf32> -> vector<64x128xf32>
    %363 = arith.addf %360, %362 : vector<64x128xf32>
    %364 = vector.broadcast %349 : vector<1x128xf32> to vector<64x128xf32>
    %365 = arith.addf %363, %364 : vector<64x128xf32>
    %cst_88 = arith.constant 0.000000e+00 : f32
    %366 = vector.broadcast %cst_88 : f32 to vector<8x32xf32>
    %cst_89 = arith.constant 0.000000e+00 : f32
    %367 = vector.broadcast %cst_89 : f32 to vector<8x32xf32>
    %cst_90 = arith.constant 0.000000e+00 : f32
    %368 = vector.broadcast %cst_90 : f32 to vector<8x32xf32>
    %cst_91 = arith.constant 0.000000e+00 : f32
    %369 = vector.broadcast %cst_91 : f32 to vector<8x32xf32>
    %370 = vector.extract_strided_slice %358 {offsets = [0, 0], sizes = [8, 128], strides = [1, 1]} : vector<64x128xf32> to vector<8x128xf32>
    %cst_92 = arith.constant dense<0.000000e+00> : vector<8x128xf32>
    %371 = tpu.matmul %366, %345, %cst_92 {dimension_numbers = #tpu.dot_dimension_numbers<[1], [0], [0], [1], [0, 0, 1, 1], [], []>} : vector<8x32xf32>, vector<32x128xf32>, vector<8x128xf32> -> vector<8x128xf32>
    %372 = arith.addf %370, %371 : vector<8x128xf32>
    %373 = vector.extract_strided_slice %365 {offsets = [56, 0], sizes = [8, 128], strides = [1, 1]} : vector<64x128xf32> to vector<8x128xf32>
    %cst_93 = arith.constant dense<0.000000e+00> : vector<8x128xf32>
    %374 = tpu.matmul %368, %348, %cst_93 {dimension_numbers = #tpu.dot_dimension_numbers<[1], [0], [0], [1], [0, 0, 1, 1], [], []>} : vector<8x32xf32>, vector<32x128xf32>, vector<8x128xf32> -> vector<8x128xf32>
    %375 = arith.addf %373, %374 : vector<8x128xf32>
    %376 = vector.extract_strided_slice %372 {offsets = [0, 0], sizes = [8, 96], strides = [1, 1]} : vector<8x128xf32> to vector<8x96xf32>
    %377 = arith.negf %376 : vector<8x96xf32>
    %378 = math.exp %377 : vector<8x96xf32>
    %cst_94 = arith.constant 1.000000e+00 : f32
    %379 = vector.broadcast %cst_94 : f32 to vector<8x96xf32>
    %380 = arith.addf %379, %378 : vector<8x96xf32>
    %381 = arith.divf %379, %380 : vector<8x96xf32>
    %382 = vector.extract_strided_slice %372 {offsets = [0, 96], sizes = [8, 32], strides = [1, 1]} : vector<8x128xf32> to vector<8x32xf32>
    %383 = math.tanh %382 : vector<8x32xf32>
    %384 = vector.extract_strided_slice %381 {offsets = [0, 0], sizes = [8, 32], strides = [1, 1]} : vector<8x96xf32> to vector<8x32xf32>
    %385 = vector.extract_strided_slice %381 {offsets = [0, 32], sizes = [8, 32], strides = [1, 1]} : vector<8x96xf32> to vector<8x32xf32>
    %386 = vector.extract_strided_slice %381 {offsets = [0, 64], sizes = [8, 32], strides = [1, 1]} : vector<8x96xf32> to vector<8x32xf32>
    %387 = arith.mulf %385, %367 : vector<8x32xf32>
    %388 = arith.mulf %384, %383 : vector<8x32xf32>
    %389 = arith.addf %387, %388 : vector<8x32xf32>
    %390 = math.tanh %389 : vector<8x32xf32>
    %391 = arith.mulf %386, %390 : vector<8x32xf32>
    %392 = vector.extract_strided_slice %375 {offsets = [0, 0], sizes = [8, 96], strides = [1, 1]} : vector<8x128xf32> to vector<8x96xf32>
    %393 = arith.negf %392 : vector<8x96xf32>
    %394 = math.exp %393 : vector<8x96xf32>
    %cst_95 = arith.constant 1.000000e+00 : f32
    %395 = vector.broadcast %cst_95 : f32 to vector<8x96xf32>
    %396 = arith.addf %395, %394 : vector<8x96xf32>
    %397 = arith.divf %395, %396 : vector<8x96xf32>
    %398 = vector.extract_strided_slice %375 {offsets = [0, 96], sizes = [8, 32], strides = [1, 1]} : vector<8x128xf32> to vector<8x32xf32>
    %399 = math.tanh %398 : vector<8x32xf32>
    %400 = vector.extract_strided_slice %397 {offsets = [0, 0], sizes = [8, 32], strides = [1, 1]} : vector<8x96xf32> to vector<8x32xf32>
    %401 = vector.extract_strided_slice %397 {offsets = [0, 32], sizes = [8, 32], strides = [1, 1]} : vector<8x96xf32> to vector<8x32xf32>
    %402 = vector.extract_strided_slice %397 {offsets = [0, 64], sizes = [8, 32], strides = [1, 1]} : vector<8x96xf32> to vector<8x32xf32>
    %403 = arith.mulf %401, %369 : vector<8x32xf32>
    %404 = arith.mulf %400, %399 : vector<8x32xf32>
    %405 = arith.addf %403, %404 : vector<8x32xf32>
    %406 = math.tanh %405 : vector<8x32xf32>
    %407 = arith.mulf %402, %406 : vector<8x32xf32>
    %c0_96 = arith.constant 0 : index
    %c0_97 = arith.constant 0 : index
    %408 = vector.load %arg8[%c0_96, %c0_97] : memref<64x32xf32, #tpu.memory_space<vmem>>, vector<8x32xf32>
    tpu.vector_store %arg8[%c0_96, %c0_97], %391 {strides = array<i32>} : memref<64x32xf32, #tpu.memory_space<vmem>>, vector<8x32xf32>,
    %c56_98 = arith.constant 56 : index
    %c0_99 = arith.constant 0 : index
    %409 = vector.load %arg9[%c56_98, %c0_99] : memref<64x32xf32, #tpu.memory_space<vmem>>, vector<8x32xf32>
    tpu.vector_store %arg9[%c56_98, %c0_99], %407 {strides = array<i32>} : memref<64x32xf32, #tpu.memory_space<vmem>>, vector<8x32xf32>,
    %410 = vector.extract_strided_slice %358 {offsets = [8, 0], sizes = [8, 128], strides = [1, 1]} : vector<64x128xf32> to vector<8x128xf32>
    %cst_100 = arith.constant dense<0.000000e+00> : vector<8x128xf32>
    %411 = tpu.matmul %391, %345, %cst_100 {dimension_numbers = #tpu.dot_dimension_numbers<[1], [0], [0], [1], [0, 0, 1, 1], [], []>} : vector<8x32xf32>, vector<32x128xf32>, vector<8x128xf32> -> vector<8x128xf32>
    %412 = arith.addf %410, %411 : vector<8x128xf32>
    %413 = vector.extract_strided_slice %365 {offsets = [48, 0], sizes = [8, 128], strides = [1, 1]} : vector<64x128xf32> to vector<8x128xf32>
    %cst_101 = arith.constant dense<0.000000e+00> : vector<8x128xf32>
    %414 = tpu.matmul %407, %348, %cst_101 {dimension_numbers = #tpu.dot_dimension_numbers<[1], [0], [0], [1], [0, 0, 1, 1], [], []>} : vector<8x32xf32>, vector<32x128xf32>, vector<8x128xf32> -> vector<8x128xf32>
    %415 = arith.addf %413, %414 : vector<8x128xf32>
    %416 = vector.extract_strided_slice %412 {offsets = [0, 0], sizes = [8, 96], strides = [1, 1]} : vector<8x128xf32> to vector<8x96xf32>
    %417 = arith.negf %416 : vector<8x96xf32>
    %418 = math.exp %417 : vector<8x96xf32>
    %cst_102 = arith.constant 1.000000e+00 : f32
    %419 = vector.broadcast %cst_102 : f32 to vector<8x96xf32>
    %420 = arith.addf %419, %418 : vector<8x96xf32>
    %421 = arith.divf %419, %420 : vector<8x96xf32>
    %422 = vector.extract_strided_slice %412 {offsets = [0, 96], sizes = [8, 32], strides = [1, 1]} : vector<8x128xf32> to vector<8x32xf32>
    %423 = math.tanh %422 : vector<8x32xf32>
    %424 = vector.extract_strided_slice %421 {offsets = [0, 0], sizes = [8, 32], strides = [1, 1]} : vector<8x96xf32> to vector<8x32xf32>
    %425 = vector.extract_strided_slice %421 {offsets = [0, 32], sizes = [8, 32], strides = [1, 1]} : vector<8x96xf32> to vector<8x32xf32>
    %426 = vector.extract_strided_slice %421 {offsets = [0, 64], sizes = [8, 32], strides = [1, 1]} : vector<8x96xf32> to vector<8x32xf32>
    %427 = arith.mulf %425, %389 : vector<8x32xf32>
    %428 = arith.mulf %424, %423 : vector<8x32xf32>
    %429 = arith.addf %427, %428 : vector<8x32xf32>
    %430 = math.tanh %429 : vector<8x32xf32>
    %431 = arith.mulf %426, %430 : vector<8x32xf32>
    %432 = vector.extract_strided_slice %415 {offsets = [0, 0], sizes = [8, 96], strides = [1, 1]} : vector<8x128xf32> to vector<8x96xf32>
    %433 = arith.negf %432 : vector<8x96xf32>
    %434 = math.exp %433 : vector<8x96xf32>
    %cst_103 = arith.constant 1.000000e+00 : f32
    %435 = vector.broadcast %cst_103 : f32 to vector<8x96xf32>
    %436 = arith.addf %435, %434 : vector<8x96xf32>
    %437 = arith.divf %435, %436 : vector<8x96xf32>
    %438 = vector.extract_strided_slice %415 {offsets = [0, 96], sizes = [8, 32], strides = [1, 1]} : vector<8x128xf32> to vector<8x32xf32>
    %439 = math.tanh %438 : vector<8x32xf32>
    %440 = vector.extract_strided_slice %437 {offsets = [0, 0], sizes = [8, 32], strides = [1, 1]} : vector<8x96xf32> to vector<8x32xf32>
    %441 = vector.extract_strided_slice %437 {offsets = [0, 32], sizes = [8, 32], strides = [1, 1]} : vector<8x96xf32> to vector<8x32xf32>
    %442 = vector.extract_strided_slice %437 {offsets = [0, 64], sizes = [8, 32], strides = [1, 1]} : vector<8x96xf32> to vector<8x32xf32>
    %443 = arith.mulf %441, %405 : vector<8x32xf32>
    %444 = arith.mulf %440, %439 : vector<8x32xf32>
    %445 = arith.addf %443, %444 : vector<8x32xf32>
    %446 = math.tanh %445 : vector<8x32xf32>
    %447 = arith.mulf %442, %446 : vector<8x32xf32>
    %c8_104 = arith.constant 8 : index
    %c0_105 = arith.constant 0 : index
    %448 = vector.load %arg8[%c8_104, %c0_105] : memref<64x32xf32, #tpu.memory_space<vmem>>, vector<8x32xf32>
    tpu.vector_store %arg8[%c8_104, %c0_105], %431 {strides = array<i32>} : memref<64x32xf32, #tpu.memory_space<vmem>>, vector<8x32xf32>,
    %c48_106 = arith.constant 48 : index
    %c0_107 = arith.constant 0 : index
    %449 = vector.load %arg9[%c48_106, %c0_107] : memref<64x32xf32, #tpu.memory_space<vmem>>, vector<8x32xf32>
    tpu.vector_store %arg9[%c48_106, %c0_107], %447 {strides = array<i32>} : memref<64x32xf32, #tpu.memory_space<vmem>>, vector<8x32xf32>,
    %450 = vector.extract_strided_slice %358 {offsets = [16, 0], sizes = [8, 128], strides = [1, 1]} : vector<64x128xf32> to vector<8x128xf32>
    %cst_108 = arith.constant dense<0.000000e+00> : vector<8x128xf32>
    %451 = tpu.matmul %431, %345, %cst_108 {dimension_numbers = #tpu.dot_dimension_numbers<[1], [0], [0], [1], [0, 0, 1, 1], [], []>} : vector<8x32xf32>, vector<32x128xf32>, vector<8x128xf32> -> vector<8x128xf32>
    %452 = arith.addf %450, %451 : vector<8x128xf32>
    %453 = vector.extract_strided_slice %365 {offsets = [40, 0], sizes = [8, 128], strides = [1, 1]} : vector<64x128xf32> to vector<8x128xf32>
    %cst_109 = arith.constant dense<0.000000e+00> : vector<8x128xf32>
    %454 = tpu.matmul %447, %348, %cst_109 {dimension_numbers = #tpu.dot_dimension_numbers<[1], [0], [0], [1], [0, 0, 1, 1], [], []>} : vector<8x32xf32>, vector<32x128xf32>, vector<8x128xf32> -> vector<8x128xf32>
    %455 = arith.addf %453, %454 : vector<8x128xf32>
    %456 = vector.extract_strided_slice %452 {offsets = [0, 0], sizes = [8, 96], strides = [1, 1]} : vector<8x128xf32> to vector<8x96xf32>
    %457 = arith.negf %456 : vector<8x96xf32>
    %458 = math.exp %457 : vector<8x96xf32>
    %cst_110 = arith.constant 1.000000e+00 : f32
    %459 = vector.broadcast %cst_110 : f32 to vector<8x96xf32>
    %460 = arith.addf %459, %458 : vector<8x96xf32>
    %461 = arith.divf %459, %460 : vector<8x96xf32>
    %462 = vector.extract_strided_slice %452 {offsets = [0, 96], sizes = [8, 32], strides = [1, 1]} : vector<8x128xf32> to vector<8x32xf32>
    %463 = math.tanh %462 : vector<8x32xf32>
    %464 = vector.extract_strided_slice %461 {offsets = [0, 0], sizes = [8, 32], strides = [1, 1]} : vector<8x96xf32> to vector<8x32xf32>
    %465 = vector.extract_strided_slice %461 {offsets = [0, 32], sizes = [8, 32], strides = [1, 1]} : vector<8x96xf32> to vector<8x32xf32>
    %466 = vector.extract_strided_slice %461 {offsets = [0, 64], sizes = [8, 32], strides = [1, 1]} : vector<8x96xf32> to vector<8x32xf32>
    %467 = arith.mulf %465, %429 : vector<8x32xf32>
    %468 = arith.mulf %464, %463 : vector<8x32xf32>
    %469 = arith.addf %467, %468 : vector<8x32xf32>
    %470 = math.tanh %469 : vector<8x32xf32>
    %471 = arith.mulf %466, %470 : vector<8x32xf32>
    %472 = vector.extract_strided_slice %455 {offsets = [0, 0], sizes = [8, 96], strides = [1, 1]} : vector<8x128xf32> to vector<8x96xf32>
    %473 = arith.negf %472 : vector<8x96xf32>
    %474 = math.exp %473 : vector<8x96xf32>
    %cst_111 = arith.constant 1.000000e+00 : f32
    %475 = vector.broadcast %cst_111 : f32 to vector<8x96xf32>
    %476 = arith.addf %475, %474 : vector<8x96xf32>
    %477 = arith.divf %475, %476 : vector<8x96xf32>
    %478 = vector.extract_strided_slice %455 {offsets = [0, 96], sizes = [8, 32], strides = [1, 1]} : vector<8x128xf32> to vector<8x32xf32>
    %479 = math.tanh %478 : vector<8x32xf32>
    %480 = vector.extract_strided_slice %477 {offsets = [0, 0], sizes = [8, 32], strides = [1, 1]} : vector<8x96xf32> to vector<8x32xf32>
    %481 = vector.extract_strided_slice %477 {offsets = [0, 32], sizes = [8, 32], strides = [1, 1]} : vector<8x96xf32> to vector<8x32xf32>
    %482 = vector.extract_strided_slice %477 {offsets = [0, 64], sizes = [8, 32], strides = [1, 1]} : vector<8x96xf32> to vector<8x32xf32>
    %483 = arith.mulf %481, %445 : vector<8x32xf32>
    %484 = arith.mulf %480, %479 : vector<8x32xf32>
    %485 = arith.addf %483, %484 : vector<8x32xf32>
    %486 = math.tanh %485 : vector<8x32xf32>
    %487 = arith.mulf %482, %486 : vector<8x32xf32>
    %c16_112 = arith.constant 16 : index
    %c0_113 = arith.constant 0 : index
    %488 = vector.load %arg8[%c16_112, %c0_113] : memref<64x32xf32, #tpu.memory_space<vmem>>, vector<8x32xf32>
    tpu.vector_store %arg8[%c16_112, %c0_113], %471 {strides = array<i32>} : memref<64x32xf32, #tpu.memory_space<vmem>>, vector<8x32xf32>,
    %c40_114 = arith.constant 40 : index
    %c0_115 = arith.constant 0 : index
    %489 = vector.load %arg9[%c40_114, %c0_115] : memref<64x32xf32, #tpu.memory_space<vmem>>, vector<8x32xf32>
    tpu.vector_store %arg9[%c40_114, %c0_115], %487 {strides = array<i32>} : memref<64x32xf32, #tpu.memory_space<vmem>>, vector<8x32xf32>,
    %490 = vector.extract_strided_slice %358 {offsets = [24, 0], sizes = [8, 128], strides = [1, 1]} : vector<64x128xf32> to vector<8x128xf32>
    %cst_116 = arith.constant dense<0.000000e+00> : vector<8x128xf32>
    %491 = tpu.matmul %471, %345, %cst_116 {dimension_numbers = #tpu.dot_dimension_numbers<[1], [0], [0], [1], [0, 0, 1, 1], [], []>} : vector<8x32xf32>, vector<32x128xf32>, vector<8x128xf32> -> vector<8x128xf32>
    %492 = arith.addf %490, %491 : vector<8x128xf32>
    %493 = vector.extract_strided_slice %365 {offsets = [32, 0], sizes = [8, 128], strides = [1, 1]} : vector<64x128xf32> to vector<8x128xf32>
    %cst_117 = arith.constant dense<0.000000e+00> : vector<8x128xf32>
    %494 = tpu.matmul %487, %348, %cst_117 {dimension_numbers = #tpu.dot_dimension_numbers<[1], [0], [0], [1], [0, 0, 1, 1], [], []>} : vector<8x32xf32>, vector<32x128xf32>, vector<8x128xf32> -> vector<8x128xf32>
    %495 = arith.addf %493, %494 : vector<8x128xf32>
    %496 = vector.extract_strided_slice %492 {offsets = [0, 0], sizes = [8, 96], strides = [1, 1]} : vector<8x128xf32> to vector<8x96xf32>
    %497 = arith.negf %496 : vector<8x96xf32>
    %498 = math.exp %497 : vector<8x96xf32>
    %cst_118 = arith.constant 1.000000e+00 : f32
    %499 = vector.broadcast %cst_118 : f32 to vector<8x96xf32>
    %500 = arith.addf %499, %498 : vector<8x96xf32>
    %501 = arith.divf %499, %500 : vector<8x96xf32>
    %502 = vector.extract_strided_slice %492 {offsets = [0, 96], sizes = [8, 32], strides = [1, 1]} : vector<8x128xf32> to vector<8x32xf32>
    %503 = math.tanh %502 : vector<8x32xf32>
    %504 = vector.extract_strided_slice %501 {offsets = [0, 0], sizes = [8, 32], strides = [1, 1]} : vector<8x96xf32> to vector<8x32xf32>
    %505 = vector.extract_strided_slice %501 {offsets = [0, 32], sizes = [8, 32], strides = [1, 1]} : vector<8x96xf32> to vector<8x32xf32>
    %506 = vector.extract_strided_slice %501 {offsets = [0, 64], sizes = [8, 32], strides = [1, 1]} : vector<8x96xf32> to vector<8x32xf32>
    %507 = arith.mulf %505, %469 : vector<8x32xf32>
    %508 = arith.mulf %504, %503 : vector<8x32xf32>
    %509 = arith.addf %507, %508 : vector<8x32xf32>
    %510 = math.tanh %509 : vector<8x32xf32>
    %511 = arith.mulf %506, %510 : vector<8x32xf32>
    %512 = vector.extract_strided_slice %495 {offsets = [0, 0], sizes = [8, 96], strides = [1, 1]} : vector<8x128xf32> to vector<8x96xf32>
    %513 = arith.negf %512 : vector<8x96xf32>
    %514 = math.exp %513 : vector<8x96xf32>
    %cst_119 = arith.constant 1.000000e+00 : f32
    %515 = vector.broadcast %cst_119 : f32 to vector<8x96xf32>
    %516 = arith.addf %515, %514 : vector<8x96xf32>
    %517 = arith.divf %515, %516 : vector<8x96xf32>
    %518 = vector.extract_strided_slice %495 {offsets = [0, 96], sizes = [8, 32], strides = [1, 1]} : vector<8x128xf32> to vector<8x32xf32>
    %519 = math.tanh %518 : vector<8x32xf32>
    %520 = vector.extract_strided_slice %517 {offsets = [0, 0], sizes = [8, 32], strides = [1, 1]} : vector<8x96xf32> to vector<8x32xf32>
    %521 = vector.extract_strided_slice %517 {offsets = [0, 32], sizes = [8, 32], strides = [1, 1]} : vector<8x96xf32> to vector<8x32xf32>
    %522 = vector.extract_strided_slice %517 {offsets = [0, 64], sizes = [8, 32], strides = [1, 1]} : vector<8x96xf32> to vector<8x32xf32>
    %523 = arith.mulf %521, %485 : vector<8x32xf32>
    %524 = arith.mulf %520, %519 : vector<8x32xf32>
    %525 = arith.addf %523, %524 : vector<8x32xf32>
    %526 = math.tanh %525 : vector<8x32xf32>
    %527 = arith.mulf %522, %526 : vector<8x32xf32>
    %c24_120 = arith.constant 24 : index
    %c0_121 = arith.constant 0 : index
    %528 = vector.load %arg8[%c24_120, %c0_121] : memref<64x32xf32, #tpu.memory_space<vmem>>, vector<8x32xf32>
    tpu.vector_store %arg8[%c24_120, %c0_121], %511 {strides = array<i32>} : memref<64x32xf32, #tpu.memory_space<vmem>>, vector<8x32xf32>,
    %c32_122 = arith.constant 32 : index
    %c0_123 = arith.constant 0 : index
    %529 = vector.load %arg9[%c32_122, %c0_123] : memref<64x32xf32, #tpu.memory_space<vmem>>, vector<8x32xf32>
    tpu.vector_store %arg9[%c32_122, %c0_123], %527 {strides = array<i32>} : memref<64x32xf32, #tpu.memory_space<vmem>>, vector<8x32xf32>,
    %530 = vector.extract_strided_slice %358 {offsets = [32, 0], sizes = [8, 128], strides = [1, 1]} : vector<64x128xf32> to vector<8x128xf32>
    %cst_124 = arith.constant dense<0.000000e+00> : vector<8x128xf32>
    %531 = tpu.matmul %511, %345, %cst_124 {dimension_numbers = #tpu.dot_dimension_numbers<[1], [0], [0], [1], [0, 0, 1, 1], [], []>} : vector<8x32xf32>, vector<32x128xf32>, vector<8x128xf32> -> vector<8x128xf32>
    %532 = arith.addf %530, %531 : vector<8x128xf32>
    %533 = vector.extract_strided_slice %365 {offsets = [24, 0], sizes = [8, 128], strides = [1, 1]} : vector<64x128xf32> to vector<8x128xf32>
    %cst_125 = arith.constant dense<0.000000e+00> : vector<8x128xf32>
    %534 = tpu.matmul %527, %348, %cst_125 {dimension_numbers = #tpu.dot_dimension_numbers<[1], [0], [0], [1], [0, 0, 1, 1], [], []>} : vector<8x32xf32>, vector<32x128xf32>, vector<8x128xf32> -> vector<8x128xf32>
    %535 = arith.addf %533, %534 : vector<8x128xf32>
    %536 = vector.extract_strided_slice %532 {offsets = [0, 0], sizes = [8, 96], strides = [1, 1]} : vector<8x128xf32> to vector<8x96xf32>
    %537 = arith.negf %536 : vector<8x96xf32>
    %538 = math.exp %537 : vector<8x96xf32>
    %cst_126 = arith.constant 1.000000e+00 : f32
    %539 = vector.broadcast %cst_126 : f32 to vector<8x96xf32>
    %540 = arith.addf %539, %538 : vector<8x96xf32>
    %541 = arith.divf %539, %540 : vector<8x96xf32>
    %542 = vector.extract_strided_slice %532 {offsets = [0, 96], sizes = [8, 32], strides = [1, 1]} : vector<8x128xf32> to vector<8x32xf32>
    %543 = math.tanh %542 : vector<8x32xf32>
    %544 = vector.extract_strided_slice %541 {offsets = [0, 0], sizes = [8, 32], strides = [1, 1]} : vector<8x96xf32> to vector<8x32xf32>
    %545 = vector.extract_strided_slice %541 {offsets = [0, 32], sizes = [8, 32], strides = [1, 1]} : vector<8x96xf32> to vector<8x32xf32>
    %546 = vector.extract_strided_slice %541 {offsets = [0, 64], sizes = [8, 32], strides = [1, 1]} : vector<8x96xf32> to vector<8x32xf32>
    %547 = arith.mulf %545, %509 : vector<8x32xf32>
    %548 = arith.mulf %544, %543 : vector<8x32xf32>
    %549 = arith.addf %547, %548 : vector<8x32xf32>
    %550 = math.tanh %549 : vector<8x32xf32>
    %551 = arith.mulf %546, %550 : vector<8x32xf32>
    %552 = vector.extract_strided_slice %535 {offsets = [0, 0], sizes = [8, 96], strides = [1, 1]} : vector<8x128xf32> to vector<8x96xf32>
    %553 = arith.negf %552 : vector<8x96xf32>
    %554 = math.exp %553 : vector<8x96xf32>
    %cst_127 = arith.constant 1.000000e+00 : f32
    %555 = vector.broadcast %cst_127 : f32 to vector<8x96xf32>
    %556 = arith.addf %555, %554 : vector<8x96xf32>
    %557 = arith.divf %555, %556 : vector<8x96xf32>
    %558 = vector.extract_strided_slice %535 {offsets = [0, 96], sizes = [8, 32], strides = [1, 1]} : vector<8x128xf32> to vector<8x32xf32>
    %559 = math.tanh %558 : vector<8x32xf32>
    %560 = vector.extract_strided_slice %557 {offsets = [0, 0], sizes = [8, 32], strides = [1, 1]} : vector<8x96xf32> to vector<8x32xf32>
    %561 = vector.extract_strided_slice %557 {offsets = [0, 32], sizes = [8, 32], strides = [1, 1]} : vector<8x96xf32> to vector<8x32xf32>
    %562 = vector.extract_strided_slice %557 {offsets = [0, 64], sizes = [8, 32], strides = [1, 1]} : vector<8x96xf32> to vector<8x32xf32>
    %563 = arith.mulf %561, %525 : vector<8x32xf32>
    %564 = arith.mulf %560, %559 : vector<8x32xf32>
    %565 = arith.addf %563, %564 : vector<8x32xf32>
    %566 = math.tanh %565 : vector<8x32xf32>
    %567 = arith.mulf %562, %566 : vector<8x32xf32>
    %c32_128 = arith.constant 32 : index
    %c0_129 = arith.constant 0 : index
    %568 = vector.load %arg8[%c32_128, %c0_129] : memref<64x32xf32, #tpu.memory_space<vmem>>, vector<8x32xf32>
    tpu.vector_store %arg8[%c32_128, %c0_129], %551 {strides = array<i32>} : memref<64x32xf32, #tpu.memory_space<vmem>>, vector<8x32xf32>,
    %c24_130 = arith.constant 24 : index
    %c0_131 = arith.constant 0 : index
    %569 = vector.load %arg9[%c24_130, %c0_131] : memref<64x32xf32, #tpu.memory_space<vmem>>, vector<8x32xf32>
    tpu.vector_store %arg9[%c24_130, %c0_131], %567 {strides = array<i32>} : memref<64x32xf32, #tpu.memory_space<vmem>>, vector<8x32xf32>,
    %570 = vector.extract_strided_slice %358 {offsets = [40, 0], sizes = [8, 128], strides = [1, 1]} : vector<64x128xf32> to vector<8x128xf32>
    %cst_132 = arith.constant dense<0.000000e+00> : vector<8x128xf32>
    %571 = tpu.matmul %551, %345, %cst_132 {dimension_numbers = #tpu.dot_dimension_numbers<[1], [0], [0], [1], [0, 0, 1, 1], [], []>} : vector<8x32xf32>, vector<32x128xf32>, vector<8x128xf32> -> vector<8x128xf32>
    %572 = arith.addf %570, %571 : vector<8x128xf32>
    %573 = vector.extract_strided_slice %365 {offsets = [16, 0], sizes = [8, 128], strides = [1, 1]} : vector<64x128xf32> to vector<8x128xf32>
    %cst_133 = arith.constant dense<0.000000e+00> : vector<8x128xf32>
    %574 = tpu.matmul %567, %348, %cst_133 {dimension_numbers = #tpu.dot_dimension_numbers<[1], [0], [0], [1], [0, 0, 1, 1], [], []>} : vector<8x32xf32>, vector<32x128xf32>, vector<8x128xf32> -> vector<8x128xf32>
    %575 = arith.addf %573, %574 : vector<8x128xf32>
    %576 = vector.extract_strided_slice %572 {offsets = [0, 0], sizes = [8, 96], strides = [1, 1]} : vector<8x128xf32> to vector<8x96xf32>
    %577 = arith.negf %576 : vector<8x96xf32>
    %578 = math.exp %577 : vector<8x96xf32>
    %cst_134 = arith.constant 1.000000e+00 : f32
    %579 = vector.broadcast %cst_134 : f32 to vector<8x96xf32>
    %580 = arith.addf %579, %578 : vector<8x96xf32>
    %581 = arith.divf %579, %580 : vector<8x96xf32>
    %582 = vector.extract_strided_slice %572 {offsets = [0, 96], sizes = [8, 32], strides = [1, 1]} : vector<8x128xf32> to vector<8x32xf32>
    %583 = math.tanh %582 : vector<8x32xf32>
    %584 = vector.extract_strided_slice %581 {offsets = [0, 0], sizes = [8, 32], strides = [1, 1]} : vector<8x96xf32> to vector<8x32xf32>
    %585 = vector.extract_strided_slice %581 {offsets = [0, 32], sizes = [8, 32], strides = [1, 1]} : vector<8x96xf32> to vector<8x32xf32>
    %586 = vector.extract_strided_slice %581 {offsets = [0, 64], sizes = [8, 32], strides = [1, 1]} : vector<8x96xf32> to vector<8x32xf32>
    %587 = arith.mulf %585, %549 : vector<8x32xf32>
    %588 = arith.mulf %584, %583 : vector<8x32xf32>
    %589 = arith.addf %587, %588 : vector<8x32xf32>
    %590 = math.tanh %589 : vector<8x32xf32>
    %591 = arith.mulf %586, %590 : vector<8x32xf32>
    %592 = vector.extract_strided_slice %575 {offsets = [0, 0], sizes = [8, 96], strides = [1, 1]} : vector<8x128xf32> to vector<8x96xf32>
    %593 = arith.negf %592 : vector<8x96xf32>
    %594 = math.exp %593 : vector<8x96xf32>
    %cst_135 = arith.constant 1.000000e+00 : f32
    %595 = vector.broadcast %cst_135 : f32 to vector<8x96xf32>
    %596 = arith.addf %595, %594 : vector<8x96xf32>
    %597 = arith.divf %595, %596 : vector<8x96xf32>
    %598 = vector.extract_strided_slice %575 {offsets = [0, 96], sizes = [8, 32], strides = [1, 1]} : vector<8x128xf32> to vector<8x32xf32>
    %599 = math.tanh %598 : vector<8x32xf32>
    %600 = vector.extract_strided_slice %597 {offsets = [0, 0], sizes = [8, 32], strides = [1, 1]} : vector<8x96xf32> to vector<8x32xf32>
    %601 = vector.extract_strided_slice %597 {offsets = [0, 32], sizes = [8, 32], strides = [1, 1]} : vector<8x96xf32> to vector<8x32xf32>
    %602 = vector.extract_strided_slice %597 {offsets = [0, 64], sizes = [8, 32], strides = [1, 1]} : vector<8x96xf32> to vector<8x32xf32>
    %603 = arith.mulf %601, %565 : vector<8x32xf32>
    %604 = arith.mulf %600, %599 : vector<8x32xf32>
    %605 = arith.addf %603, %604 : vector<8x32xf32>
    %606 = math.tanh %605 : vector<8x32xf32>
    %607 = arith.mulf %602, %606 : vector<8x32xf32>
    %c40_136 = arith.constant 40 : index
    %c0_137 = arith.constant 0 : index
    %608 = vector.load %arg8[%c40_136, %c0_137] : memref<64x32xf32, #tpu.memory_space<vmem>>, vector<8x32xf32>
    tpu.vector_store %arg8[%c40_136, %c0_137], %591 {strides = array<i32>} : memref<64x32xf32, #tpu.memory_space<vmem>>, vector<8x32xf32>,
    %c16_138 = arith.constant 16 : index
    %c0_139 = arith.constant 0 : index
    %609 = vector.load %arg9[%c16_138, %c0_139] : memref<64x32xf32, #tpu.memory_space<vmem>>, vector<8x32xf32>
    tpu.vector_store %arg9[%c16_138, %c0_139], %607 {strides = array<i32>} : memref<64x32xf32, #tpu.memory_space<vmem>>, vector<8x32xf32>,
    %610 = vector.extract_strided_slice %358 {offsets = [48, 0], sizes = [8, 128], strides = [1, 1]} : vector<64x128xf32> to vector<8x128xf32>
    %cst_140 = arith.constant dense<0.000000e+00> : vector<8x128xf32>
    %611 = tpu.matmul %591, %345, %cst_140 {dimension_numbers = #tpu.dot_dimension_numbers<[1], [0], [0], [1], [0, 0, 1, 1], [], []>} : vector<8x32xf32>, vector<32x128xf32>, vector<8x128xf32> -> vector<8x128xf32>
    %612 = arith.addf %610, %611 : vector<8x128xf32>
    %613 = vector.extract_strided_slice %365 {offsets = [8, 0], sizes = [8, 128], strides = [1, 1]} : vector<64x128xf32> to vector<8x128xf32>
    %cst_141 = arith.constant dense<0.000000e+00> : vector<8x128xf32>
    %614 = tpu.matmul %607, %348, %cst_141 {dimension_numbers = #tpu.dot_dimension_numbers<[1], [0], [0], [1], [0, 0, 1, 1], [], []>} : vector<8x32xf32>, vector<32x128xf32>, vector<8x128xf32> -> vector<8x128xf32>
    %615 = arith.addf %613, %614 : vector<8x128xf32>
    %616 = vector.extract_strided_slice %612 {offsets = [0, 0], sizes = [8, 96], strides = [1, 1]} : vector<8x128xf32> to vector<8x96xf32>
    %617 = arith.negf %616 : vector<8x96xf32>
    %618 = math.exp %617 : vector<8x96xf32>
    %cst_142 = arith.constant 1.000000e+00 : f32
    %619 = vector.broadcast %cst_142 : f32 to vector<8x96xf32>
    %620 = arith.addf %619, %618 : vector<8x96xf32>
    %621 = arith.divf %619, %620 : vector<8x96xf32>
    %622 = vector.extract_strided_slice %612 {offsets = [0, 96], sizes = [8, 32], strides = [1, 1]} : vector<8x128xf32> to vector<8x32xf32>
    %623 = math.tanh %622 : vector<8x32xf32>
    %624 = vector.extract_strided_slice %621 {offsets = [0, 0], sizes = [8, 32], strides = [1, 1]} : vector<8x96xf32> to vector<8x32xf32>
    %625 = vector.extract_strided_slice %621 {offsets = [0, 32], sizes = [8, 32], strides = [1, 1]} : vector<8x96xf32> to vector<8x32xf32>
    %626 = vector.extract_strided_slice %621 {offsets = [0, 64], sizes = [8, 32], strides = [1, 1]} : vector<8x96xf32> to vector<8x32xf32>
    %627 = arith.mulf %625, %589 : vector<8x32xf32>
    %628 = arith.mulf %624, %623 : vector<8x32xf32>
    %629 = arith.addf %627, %628 : vector<8x32xf32>
    %630 = math.tanh %629 : vector<8x32xf32>
    %631 = arith.mulf %626, %630 : vector<8x32xf32>
    %632 = vector.extract_strided_slice %615 {offsets = [0, 0], sizes = [8, 96], strides = [1, 1]} : vector<8x128xf32> to vector<8x96xf32>
    %633 = arith.negf %632 : vector<8x96xf32>
    %634 = math.exp %633 : vector<8x96xf32>
    %cst_143 = arith.constant 1.000000e+00 : f32
    %635 = vector.broadcast %cst_143 : f32 to vector<8x96xf32>
    %636 = arith.addf %635, %634 : vector<8x96xf32>
    %637 = arith.divf %635, %636 : vector<8x96xf32>
    %638 = vector.extract_strided_slice %615 {offsets = [0, 96], sizes = [8, 32], strides = [1, 1]} : vector<8x128xf32> to vector<8x32xf32>
    %639 = math.tanh %638 : vector<8x32xf32>
    %640 = vector.extract_strided_slice %637 {offsets = [0, 0], sizes = [8, 32], strides = [1, 1]} : vector<8x96xf32> to vector<8x32xf32>
    %641 = vector.extract_strided_slice %637 {offsets = [0, 32], sizes = [8, 32], strides = [1, 1]} : vector<8x96xf32> to vector<8x32xf32>
    %642 = vector.extract_strided_slice %637 {offsets = [0, 64], sizes = [8, 32], strides = [1, 1]} : vector<8x96xf32> to vector<8x32xf32>
    %643 = arith.mulf %641, %605 : vector<8x32xf32>
    %644 = arith.mulf %640, %639 : vector<8x32xf32>
    %645 = arith.addf %643, %644 : vector<8x32xf32>
    %646 = math.tanh %645 : vector<8x32xf32>
    %647 = arith.mulf %642, %646 : vector<8x32xf32>
    %c48_144 = arith.constant 48 : index
    %c0_145 = arith.constant 0 : index
    %648 = vector.load %arg8[%c48_144, %c0_145] : memref<64x32xf32, #tpu.memory_space<vmem>>, vector<8x32xf32>
    tpu.vector_store %arg8[%c48_144, %c0_145], %631 {strides = array<i32>} : memref<64x32xf32, #tpu.memory_space<vmem>>, vector<8x32xf32>,
    %c8_146 = arith.constant 8 : index
    %c0_147 = arith.constant 0 : index
    %649 = vector.load %arg9[%c8_146, %c0_147] : memref<64x32xf32, #tpu.memory_space<vmem>>, vector<8x32xf32>
    tpu.vector_store %arg9[%c8_146, %c0_147], %647 {strides = array<i32>} : memref<64x32xf32, #tpu.memory_space<vmem>>, vector<8x32xf32>,
    %650 = vector.extract_strided_slice %358 {offsets = [56, 0], sizes = [8, 128], strides = [1, 1]} : vector<64x128xf32> to vector<8x128xf32>
    %cst_148 = arith.constant dense<0.000000e+00> : vector<8x128xf32>
    %651 = tpu.matmul %631, %345, %cst_148 {dimension_numbers = #tpu.dot_dimension_numbers<[1], [0], [0], [1], [0, 0, 1, 1], [], []>} : vector<8x32xf32>, vector<32x128xf32>, vector<8x128xf32> -> vector<8x128xf32>
    %652 = arith.addf %650, %651 : vector<8x128xf32>
    %653 = vector.extract_strided_slice %365 {offsets = [0, 0], sizes = [8, 128], strides = [1, 1]} : vector<64x128xf32> to vector<8x128xf32>
    %cst_149 = arith.constant dense<0.000000e+00> : vector<8x128xf32>
    %654 = tpu.matmul %647, %348, %cst_149 {dimension_numbers = #tpu.dot_dimension_numbers<[1], [0], [0], [1], [0, 0, 1, 1], [], []>} : vector<8x32xf32>, vector<32x128xf32>, vector<8x128xf32> -> vector<8x128xf32>
    %655 = arith.addf %653, %654 : vector<8x128xf32>
    %656 = vector.extract_strided_slice %652 {offsets = [0, 0], sizes = [8, 96], strides = [1, 1]} : vector<8x128xf32> to vector<8x96xf32>
    %657 = arith.negf %656 : vector<8x96xf32>
    %658 = math.exp %657 : vector<8x96xf32>
    %cst_150 = arith.constant 1.000000e+00 : f32
    %659 = vector.broadcast %cst_150 : f32 to vector<8x96xf32>
    %660 = arith.addf %659, %658 : vector<8x96xf32>
    %661 = arith.divf %659, %660 : vector<8x96xf32>
    %662 = vector.extract_strided_slice %652 {offsets = [0, 96], sizes = [8, 32], strides = [1, 1]} : vector<8x128xf32> to vector<8x32xf32>
    %663 = math.tanh %662 : vector<8x32xf32>
    %664 = vector.extract_strided_slice %661 {offsets = [0, 0], sizes = [8, 32], strides = [1, 1]} : vector<8x96xf32> to vector<8x32xf32>
    %665 = vector.extract_strided_slice %661 {offsets = [0, 32], sizes = [8, 32], strides = [1, 1]} : vector<8x96xf32> to vector<8x32xf32>
    %666 = vector.extract_strided_slice %661 {offsets = [0, 64], sizes = [8, 32], strides = [1, 1]} : vector<8x96xf32> to vector<8x32xf32>
    %667 = arith.mulf %665, %629 : vector<8x32xf32>
    %668 = arith.mulf %664, %663 : vector<8x32xf32>
    %669 = arith.addf %667, %668 : vector<8x32xf32>
    %670 = math.tanh %669 : vector<8x32xf32>
    %671 = arith.mulf %666, %670 : vector<8x32xf32>
    %672 = vector.extract_strided_slice %655 {offsets = [0, 0], sizes = [8, 96], strides = [1, 1]} : vector<8x128xf32> to vector<8x96xf32>
    %673 = arith.negf %672 : vector<8x96xf32>
    %674 = math.exp %673 : vector<8x96xf32>
    %cst_151 = arith.constant 1.000000e+00 : f32
    %675 = vector.broadcast %cst_151 : f32 to vector<8x96xf32>
    %676 = arith.addf %675, %674 : vector<8x96xf32>
    %677 = arith.divf %675, %676 : vector<8x96xf32>
    %678 = vector.extract_strided_slice %655 {offsets = [0, 96], sizes = [8, 32], strides = [1, 1]} : vector<8x128xf32> to vector<8x32xf32>
    %679 = math.tanh %678 : vector<8x32xf32>
    %680 = vector.extract_strided_slice %677 {offsets = [0, 0], sizes = [8, 32], strides = [1, 1]} : vector<8x96xf32> to vector<8x32xf32>
    %681 = vector.extract_strided_slice %677 {offsets = [0, 32], sizes = [8, 32], strides = [1, 1]} : vector<8x96xf32> to vector<8x32xf32>
    %682 = vector.extract_strided_slice %677 {offsets = [0, 64], sizes = [8, 32], strides = [1, 1]} : vector<8x96xf32> to vector<8x32xf32>
    %683 = arith.mulf %681, %645 : vector<8x32xf32>
    %684 = arith.mulf %680, %679 : vector<8x32xf32>
    %685 = arith.addf %683, %684 : vector<8x32xf32>
    %686 = math.tanh %685 : vector<8x32xf32>
    %687 = arith.mulf %682, %686 : vector<8x32xf32>
    %c56_152 = arith.constant 56 : index
    %c0_153 = arith.constant 0 : index
    %688 = vector.load %arg8[%c56_152, %c0_153] : memref<64x32xf32, #tpu.memory_space<vmem>>, vector<8x32xf32>
    tpu.vector_store %arg8[%c56_152, %c0_153], %671 {strides = array<i32>} : memref<64x32xf32, #tpu.memory_space<vmem>>, vector<8x32xf32>,
    %c0_154 = arith.constant 0 : index
    %c0_155 = arith.constant 0 : index
    %689 = vector.load %arg9[%c0_154, %c0_155] : memref<64x32xf32, #tpu.memory_space<vmem>>, vector<8x32xf32>
    tpu.vector_store %arg9[%c0_154, %c0_155], %687 {strides = array<i32>} : memref<64x32xf32, #tpu.memory_space<vmem>>, vector<8x32xf32>,
    %c352 = arith.constant 352 : index
    %c0_156 = arith.constant 0 : index
    %690 = vector.load %arg2[%c352, %c0_156] : memref<456x128xf32, #tpu.memory_space<vmem>>, vector<64x128xf32>
    %c416 = arith.constant 416 : index
    %c0_157 = arith.constant 0 : index
    %691 = vector.load %arg2[%c416, %c0_157] : memref<456x128xf32, #tpu.memory_space<vmem>>, vector<32x128xf32>
    %c448 = arith.constant 448 : index
    %c0_158 = arith.constant 0 : index
    %692 = vector.load %arg2[%c448, %c0_158] : memref<456x128xf32, #tpu.memory_space<vmem>>, vector<1x128xf32>
    %c0_159 = arith.constant 0 : index
    %c0_160 = arith.constant 0 : index
    %693 = vector.load %arg8[%c0_159, %c0_160] : memref<64x32xf32, #tpu.memory_space<vmem>>, vector<64x32xf32>
    %c0_161 = arith.constant 0 : index
    %c0_162 = arith.constant 0 : index
    %694 = vector.load %arg9[%c0_161, %c0_162] : memref<64x32xf32, #tpu.memory_space<vmem>>, vector<64x32xf32>
    %695 = vector.extract_strided_slice %690 {offsets = [0, 0], sizes = [32, 128], strides = [1, 1]} : vector<64x128xf32> to vector<32x128xf32>
    %cst_163 = arith.constant dense<0.000000e+00> : vector<64x128xf32>
    %696 = tpu.matmul %693, %695, %cst_163 {dimension_numbers = #tpu.dot_dimension_numbers<[1], [0], [0], [1], [0, 0, 1, 1], [], []>} : vector<64x32xf32>, vector<32x128xf32>, vector<64x128xf32> -> vector<64x128xf32>
    %697 = vector.extract_strided_slice %690 {offsets = [32, 0], sizes = [32, 128], strides = [1, 1]} : vector<64x128xf32> to vector<32x128xf32>
    %cst_164 = arith.constant dense<0.000000e+00> : vector<64x128xf32>
    %698 = tpu.matmul %694, %697, %cst_164 {dimension_numbers = #tpu.dot_dimension_numbers<[1], [0], [0], [1], [0, 0, 1, 1], [], []>} : vector<64x32xf32>, vector<32x128xf32>, vector<64x128xf32> -> vector<64x128xf32>
    %699 = arith.addf %696, %698 : vector<64x128xf32>
    %700 = vector.broadcast %692 : vector<1x128xf32> to vector<64x128xf32>
    %701 = arith.addf %699, %700 : vector<64x128xf32>
    %cst_165 = arith.constant 0.000000e+00 : f32
    %702 = vector.broadcast %cst_165 : f32 to vector<8x32xf32>
    %cst_166 = arith.constant 0.000000e+00 : f32
    %703 = vector.broadcast %cst_166 : f32 to vector<8x32xf32>
    %704 = vector.extract_strided_slice %701 {offsets = [56, 0], sizes = [8, 128], strides = [1, 1]} : vector<64x128xf32> to vector<8x128xf32>
    %cst_167 = arith.constant dense<0.000000e+00> : vector<8x128xf32>
    %705 = tpu.matmul %702, %691, %cst_167 {dimension_numbers = #tpu.dot_dimension_numbers<[1], [0], [0], [1], [0, 0, 1, 1], [], []>} : vector<8x32xf32>, vector<32x128xf32>, vector<8x128xf32> -> vector<8x128xf32>
    %706 = arith.addf %704, %705 : vector<8x128xf32>
    %707 = vector.extract_strided_slice %706 {offsets = [0, 0], sizes = [8, 96], strides = [1, 1]} : vector<8x128xf32> to vector<8x96xf32>
    %708 = arith.negf %707 : vector<8x96xf32>
    %709 = math.exp %708 : vector<8x96xf32>
    %cst_168 = arith.constant 1.000000e+00 : f32
    %710 = vector.broadcast %cst_168 : f32 to vector<8x96xf32>
    %711 = arith.addf %710, %709 : vector<8x96xf32>
    %712 = arith.divf %710, %711 : vector<8x96xf32>
    %713 = vector.extract_strided_slice %706 {offsets = [0, 96], sizes = [8, 32], strides = [1, 1]} : vector<8x128xf32> to vector<8x32xf32>
    %714 = math.tanh %713 : vector<8x32xf32>
    %715 = vector.extract_strided_slice %712 {offsets = [0, 0], sizes = [8, 32], strides = [1, 1]} : vector<8x96xf32> to vector<8x32xf32>
    %716 = vector.extract_strided_slice %712 {offsets = [0, 32], sizes = [8, 32], strides = [1, 1]} : vector<8x96xf32> to vector<8x32xf32>
    %717 = vector.extract_strided_slice %712 {offsets = [0, 64], sizes = [8, 32], strides = [1, 1]} : vector<8x96xf32> to vector<8x32xf32>
    %718 = arith.mulf %716, %703 : vector<8x32xf32>
    %719 = arith.mulf %715, %714 : vector<8x32xf32>
    %720 = arith.addf %718, %719 : vector<8x32xf32>
    %721 = math.tanh %720 : vector<8x32xf32>
    %722 = arith.mulf %717, %721 : vector<8x32xf32>
    %723 = vector.extract_strided_slice %701 {offsets = [48, 0], sizes = [8, 128], strides = [1, 1]} : vector<64x128xf32> to vector<8x128xf32>
    %cst_169 = arith.constant dense<0.000000e+00> : vector<8x128xf32>
    %724 = tpu.matmul %722, %691, %cst_169 {dimension_numbers = #tpu.dot_dimension_numbers<[1], [0], [0], [1], [0, 0, 1, 1], [], []>} : vector<8x32xf32>, vector<32x128xf32>, vector<8x128xf32> -> vector<8x128xf32>
    %725 = arith.addf %723, %724 : vector<8x128xf32>
    %726 = vector.extract_strided_slice %725 {offsets = [0, 0], sizes = [8, 96], strides = [1, 1]} : vector<8x128xf32> to vector<8x96xf32>
    %727 = arith.negf %726 : vector<8x96xf32>
    %728 = math.exp %727 : vector<8x96xf32>
    %cst_170 = arith.constant 1.000000e+00 : f32
    %729 = vector.broadcast %cst_170 : f32 to vector<8x96xf32>
    %730 = arith.addf %729, %728 : vector<8x96xf32>
    %731 = arith.divf %729, %730 : vector<8x96xf32>
    %732 = vector.extract_strided_slice %725 {offsets = [0, 96], sizes = [8, 32], strides = [1, 1]} : vector<8x128xf32> to vector<8x32xf32>
    %733 = math.tanh %732 : vector<8x32xf32>
    %734 = vector.extract_strided_slice %731 {offsets = [0, 0], sizes = [8, 32], strides = [1, 1]} : vector<8x96xf32> to vector<8x32xf32>
    %735 = vector.extract_strided_slice %731 {offsets = [0, 32], sizes = [8, 32], strides = [1, 1]} : vector<8x96xf32> to vector<8x32xf32>
    %736 = vector.extract_strided_slice %731 {offsets = [0, 64], sizes = [8, 32], strides = [1, 1]} : vector<8x96xf32> to vector<8x32xf32>
    %737 = arith.mulf %735, %720 : vector<8x32xf32>
    %738 = arith.mulf %734, %733 : vector<8x32xf32>
    %739 = arith.addf %737, %738 : vector<8x32xf32>
    %740 = math.tanh %739 : vector<8x32xf32>
    %741 = arith.mulf %736, %740 : vector<8x32xf32>
    %742 = vector.extract_strided_slice %701 {offsets = [40, 0], sizes = [8, 128], strides = [1, 1]} : vector<64x128xf32> to vector<8x128xf32>
    %cst_171 = arith.constant dense<0.000000e+00> : vector<8x128xf32>
    %743 = tpu.matmul %741, %691, %cst_171 {dimension_numbers = #tpu.dot_dimension_numbers<[1], [0], [0], [1], [0, 0, 1, 1], [], []>} : vector<8x32xf32>, vector<32x128xf32>, vector<8x128xf32> -> vector<8x128xf32>
    %744 = arith.addf %742, %743 : vector<8x128xf32>
    %745 = vector.extract_strided_slice %744 {offsets = [0, 0], sizes = [8, 96], strides = [1, 1]} : vector<8x128xf32> to vector<8x96xf32>
    %746 = arith.negf %745 : vector<8x96xf32>
    %747 = math.exp %746 : vector<8x96xf32>
    %cst_172 = arith.constant 1.000000e+00 : f32
    %748 = vector.broadcast %cst_172 : f32 to vector<8x96xf32>
    %749 = arith.addf %748, %747 : vector<8x96xf32>
    %750 = arith.divf %748, %749 : vector<8x96xf32>
    %751 = vector.extract_strided_slice %744 {offsets = [0, 96], sizes = [8, 32], strides = [1, 1]} : vector<8x128xf32> to vector<8x32xf32>
    %752 = math.tanh %751 : vector<8x32xf32>
    %753 = vector.extract_strided_slice %750 {offsets = [0, 0], sizes = [8, 32], strides = [1, 1]} : vector<8x96xf32> to vector<8x32xf32>
    %754 = vector.extract_strided_slice %750 {offsets = [0, 32], sizes = [8, 32], strides = [1, 1]} : vector<8x96xf32> to vector<8x32xf32>
    %755 = vector.extract_strided_slice %750 {offsets = [0, 64], sizes = [8, 32], strides = [1, 1]} : vector<8x96xf32> to vector<8x32xf32>
    %756 = arith.mulf %754, %739 : vector<8x32xf32>
    %757 = arith.mulf %753, %752 : vector<8x32xf32>
    %758 = arith.addf %756, %757 : vector<8x32xf32>
    %759 = math.tanh %758 : vector<8x32xf32>
    %760 = arith.mulf %755, %759 : vector<8x32xf32>
    %761 = vector.extract_strided_slice %701 {offsets = [32, 0], sizes = [8, 128], strides = [1, 1]} : vector<64x128xf32> to vector<8x128xf32>
    %cst_173 = arith.constant dense<0.000000e+00> : vector<8x128xf32>
    %762 = tpu.matmul %760, %691, %cst_173 {dimension_numbers = #tpu.dot_dimension_numbers<[1], [0], [0], [1], [0, 0, 1, 1], [], []>} : vector<8x32xf32>, vector<32x128xf32>, vector<8x128xf32> -> vector<8x128xf32>
    %763 = arith.addf %761, %762 : vector<8x128xf32>
    %764 = vector.extract_strided_slice %763 {offsets = [0, 0], sizes = [8, 96], strides = [1, 1]} : vector<8x128xf32> to vector<8x96xf32>
    %765 = arith.negf %764 : vector<8x96xf32>
    %766 = math.exp %765 : vector<8x96xf32>
    %cst_174 = arith.constant 1.000000e+00 : f32
    %767 = vector.broadcast %cst_174 : f32 to vector<8x96xf32>
    %768 = arith.addf %767, %766 : vector<8x96xf32>
    %769 = arith.divf %767, %768 : vector<8x96xf32>
    %770 = vector.extract_strided_slice %763 {offsets = [0, 96], sizes = [8, 32], strides = [1, 1]} : vector<8x128xf32> to vector<8x32xf32>
    %771 = math.tanh %770 : vector<8x32xf32>
    %772 = vector.extract_strided_slice %769 {offsets = [0, 0], sizes = [8, 32], strides = [1, 1]} : vector<8x96xf32> to vector<8x32xf32>
    %773 = vector.extract_strided_slice %769 {offsets = [0, 32], sizes = [8, 32], strides = [1, 1]} : vector<8x96xf32> to vector<8x32xf32>
    %774 = vector.extract_strided_slice %769 {offsets = [0, 64], sizes = [8, 32], strides = [1, 1]} : vector<8x96xf32> to vector<8x32xf32>
    %775 = arith.mulf %773, %758 : vector<8x32xf32>
    %776 = arith.mulf %772, %771 : vector<8x32xf32>
    %777 = arith.addf %775, %776 : vector<8x32xf32>
    %778 = math.tanh %777 : vector<8x32xf32>
    %779 = arith.mulf %774, %778 : vector<8x32xf32>
    %780 = vector.extract_strided_slice %701 {offsets = [24, 0], sizes = [8, 128], strides = [1, 1]} : vector<64x128xf32> to vector<8x128xf32>
    %cst_175 = arith.constant dense<0.000000e+00> : vector<8x128xf32>
    %781 = tpu.matmul %779, %691, %cst_175 {dimension_numbers = #tpu.dot_dimension_numbers<[1], [0], [0], [1], [0, 0, 1, 1], [], []>} : vector<8x32xf32>, vector<32x128xf32>, vector<8x128xf32> -> vector<8x128xf32>
    %782 = arith.addf %780, %781 : vector<8x128xf32>
    %783 = vector.extract_strided_slice %782 {offsets = [0, 0], sizes = [8, 96], strides = [1, 1]} : vector<8x128xf32> to vector<8x96xf32>
    %784 = arith.negf %783 : vector<8x96xf32>
    %785 = math.exp %784 : vector<8x96xf32>
    %cst_176 = arith.constant 1.000000e+00 : f32
    %786 = vector.broadcast %cst_176 : f32 to vector<8x96xf32>
    %787 = arith.addf %786, %785 : vector<8x96xf32>
    %788 = arith.divf %786, %787 : vector<8x96xf32>
    %789 = vector.extract_strided_slice %782 {offsets = [0, 96], sizes = [8, 32], strides = [1, 1]} : vector<8x128xf32> to vector<8x32xf32>
    %790 = math.tanh %789 : vector<8x32xf32>
    %791 = vector.extract_strided_slice %788 {offsets = [0, 0], sizes = [8, 32], strides = [1, 1]} : vector<8x96xf32> to vector<8x32xf32>
    %792 = vector.extract_strided_slice %788 {offsets = [0, 32], sizes = [8, 32], strides = [1, 1]} : vector<8x96xf32> to vector<8x32xf32>
    %793 = vector.extract_strided_slice %788 {offsets = [0, 64], sizes = [8, 32], strides = [1, 1]} : vector<8x96xf32> to vector<8x32xf32>
    %794 = arith.mulf %792, %777 : vector<8x32xf32>
    %795 = arith.mulf %791, %790 : vector<8x32xf32>
    %796 = arith.addf %794, %795 : vector<8x32xf32>
    %797 = math.tanh %796 : vector<8x32xf32>
    %798 = arith.mulf %793, %797 : vector<8x32xf32>
    %799 = vector.extract_strided_slice %701 {offsets = [16, 0], sizes = [8, 128], strides = [1, 1]} : vector<64x128xf32> to vector<8x128xf32>
    %cst_177 = arith.constant dense<0.000000e+00> : vector<8x128xf32>
    %800 = tpu.matmul %798, %691, %cst_177 {dimension_numbers = #tpu.dot_dimension_numbers<[1], [0], [0], [1], [0, 0, 1, 1], [], []>} : vector<8x32xf32>, vector<32x128xf32>, vector<8x128xf32> -> vector<8x128xf32>
    %801 = arith.addf %799, %800 : vector<8x128xf32>
    %802 = vector.extract_strided_slice %801 {offsets = [0, 0], sizes = [8, 96], strides = [1, 1]} : vector<8x128xf32> to vector<8x96xf32>
    %803 = arith.negf %802 : vector<8x96xf32>
    %804 = math.exp %803 : vector<8x96xf32>
    %cst_178 = arith.constant 1.000000e+00 : f32
    %805 = vector.broadcast %cst_178 : f32 to vector<8x96xf32>
    %806 = arith.addf %805, %804 : vector<8x96xf32>
    %807 = arith.divf %805, %806 : vector<8x96xf32>
    %808 = vector.extract_strided_slice %801 {offsets = [0, 96], sizes = [8, 32], strides = [1, 1]} : vector<8x128xf32> to vector<8x32xf32>
    %809 = math.tanh %808 : vector<8x32xf32>
    %810 = vector.extract_strided_slice %807 {offsets = [0, 0], sizes = [8, 32], strides = [1, 1]} : vector<8x96xf32> to vector<8x32xf32>
    %811 = vector.extract_strided_slice %807 {offsets = [0, 32], sizes = [8, 32], strides = [1, 1]} : vector<8x96xf32> to vector<8x32xf32>
    %812 = vector.extract_strided_slice %807 {offsets = [0, 64], sizes = [8, 32], strides = [1, 1]} : vector<8x96xf32> to vector<8x32xf32>
    %813 = arith.mulf %811, %796 : vector<8x32xf32>
    %814 = arith.mulf %810, %809 : vector<8x32xf32>
    %815 = arith.addf %813, %814 : vector<8x32xf32>
    %816 = math.tanh %815 : vector<8x32xf32>
    %817 = arith.mulf %812, %816 : vector<8x32xf32>
    %818 = vector.extract_strided_slice %701 {offsets = [8, 0], sizes = [8, 128], strides = [1, 1]} : vector<64x128xf32> to vector<8x128xf32>
    %cst_179 = arith.constant dense<0.000000e+00> : vector<8x128xf32>
    %819 = tpu.matmul %817, %691, %cst_179 {dimension_numbers = #tpu.dot_dimension_numbers<[1], [0], [0], [1], [0, 0, 1, 1], [], []>} : vector<8x32xf32>, vector<32x128xf32>, vector<8x128xf32> -> vector<8x128xf32>
    %820 = arith.addf %818, %819 : vector<8x128xf32>
    %821 = vector.extract_strided_slice %820 {offsets = [0, 0], sizes = [8, 96], strides = [1, 1]} : vector<8x128xf32> to vector<8x96xf32>
    %822 = arith.negf %821 : vector<8x96xf32>
    %823 = math.exp %822 : vector<8x96xf32>
    %cst_180 = arith.constant 1.000000e+00 : f32
    %824 = vector.broadcast %cst_180 : f32 to vector<8x96xf32>
    %825 = arith.addf %824, %823 : vector<8x96xf32>
    %826 = arith.divf %824, %825 : vector<8x96xf32>
    %827 = vector.extract_strided_slice %820 {offsets = [0, 96], sizes = [8, 32], strides = [1, 1]} : vector<8x128xf32> to vector<8x32xf32>
    %828 = math.tanh %827 : vector<8x32xf32>
    %829 = vector.extract_strided_slice %826 {offsets = [0, 0], sizes = [8, 32], strides = [1, 1]} : vector<8x96xf32> to vector<8x32xf32>
    %830 = vector.extract_strided_slice %826 {offsets = [0, 32], sizes = [8, 32], strides = [1, 1]} : vector<8x96xf32> to vector<8x32xf32>
    %831 = vector.extract_strided_slice %826 {offsets = [0, 64], sizes = [8, 32], strides = [1, 1]} : vector<8x96xf32> to vector<8x32xf32>
    %832 = arith.mulf %830, %815 : vector<8x32xf32>
    %833 = arith.mulf %829, %828 : vector<8x32xf32>
    %834 = arith.addf %832, %833 : vector<8x32xf32>
    %835 = math.tanh %834 : vector<8x32xf32>
    %836 = arith.mulf %831, %835 : vector<8x32xf32>
    %837 = vector.extract_strided_slice %701 {offsets = [0, 0], sizes = [8, 128], strides = [1, 1]} : vector<64x128xf32> to vector<8x128xf32>
    %cst_181 = arith.constant dense<0.000000e+00> : vector<8x128xf32>
    %838 = tpu.matmul %836, %691, %cst_181 {dimension_numbers = #tpu.dot_dimension_numbers<[1], [0], [0], [1], [0, 0, 1, 1], [], []>} : vector<8x32xf32>, vector<32x128xf32>, vector<8x128xf32> -> vector<8x128xf32>
    %839 = arith.addf %837, %838 : vector<8x128xf32>
    %840 = vector.extract_strided_slice %839 {offsets = [0, 0], sizes = [8, 96], strides = [1, 1]} : vector<8x128xf32> to vector<8x96xf32>
    %841 = arith.negf %840 : vector<8x96xf32>
    %842 = math.exp %841 : vector<8x96xf32>
    %cst_182 = arith.constant 1.000000e+00 : f32
    %843 = vector.broadcast %cst_182 : f32 to vector<8x96xf32>
    %844 = arith.addf %843, %842 : vector<8x96xf32>
    %845 = arith.divf %843, %844 : vector<8x96xf32>
    %846 = vector.extract_strided_slice %839 {offsets = [0, 96], sizes = [8, 32], strides = [1, 1]} : vector<8x128xf32> to vector<8x32xf32>
    %847 = math.tanh %846 : vector<8x32xf32>
    %848 = vector.extract_strided_slice %845 {offsets = [0, 0], sizes = [8, 32], strides = [1, 1]} : vector<8x96xf32> to vector<8x32xf32>
    %849 = vector.extract_strided_slice %845 {offsets = [0, 32], sizes = [8, 32], strides = [1, 1]} : vector<8x96xf32> to vector<8x32xf32>
    %850 = vector.extract_strided_slice %845 {offsets = [0, 64], sizes = [8, 32], strides = [1, 1]} : vector<8x96xf32> to vector<8x32xf32>
    %851 = arith.mulf %849, %834 : vector<8x32xf32>
    %852 = arith.mulf %848, %847 : vector<8x32xf32>
    %853 = arith.addf %851, %852 : vector<8x32xf32>
    %854 = math.tanh %853 : vector<8x32xf32>
    %855 = arith.mulf %850, %854 : vector<8x32xf32>
    %c0_183 = arith.constant 0 : index
    %c0_184 = arith.constant 0 : index
    %856 = vector.load %arg3[%c0_183, %c0_184] : memref<32x16xf32, #tpu.memory_space<vmem>>, vector<32x16xf32>
    %cst_185 = arith.constant dense<0.000000e+00> : vector<8x16xf32>
    %857 = tpu.matmul %855, %856, %cst_185 {dimension_numbers = #tpu.dot_dimension_numbers<[1], [0], [0], [1], [0, 0, 1, 1], [], []>} : vector<8x32xf32>, vector<32x16xf32>, vector<8x16xf32> -> vector<8x16xf32>
    %cst_186 = arith.constant 0.000000e+00 : f32
    %858 = vector.broadcast %cst_186 : f32 to vector<8x16xf32>
    %859 = arith.maximumf %857, %858 : vector<8x16xf32>
    %c0_187 = arith.constant 0 : index
    %c0_188 = arith.constant 0 : index
    %860 = vector.load %arg4[%c0_187, %c0_188] : memref<16x1xf32, #tpu.memory_space<vmem>>, vector<16x1xf32>
    %cst_189 = arith.constant dense<0.000000e+00> : vector<8x1xf32>
    %861 = tpu.matmul %859, %860, %cst_189 {dimension_numbers = #tpu.dot_dimension_numbers<[1], [0], [0], [1], [0, 0, 1, 1], [], []>} : vector<8x16xf32>, vector<16x1xf32>, vector<8x1xf32> -> vector<8x1xf32>
    %862 = arith.negf %861 : vector<8x1xf32>
    %863 = math.exp %862 : vector<8x1xf32>
    %cst_190 = arith.constant 1.000000e+00 : f32
    %864 = vector.broadcast %cst_190 : f32 to vector<8x1xf32>
    %865 = arith.addf %864, %863 : vector<8x1xf32>
    %866 = arith.divf %864, %865 : vector<8x1xf32>
    %c0_191 = arith.constant 0 : index
    %c0_192 = arith.constant 0 : index
    %867 = vector.load %arg5[%c0_191, %c0_192] : memref<8x1xf32, #tpu.memory_space<vmem>>, vector<8x1xf32>
    tpu.vector_store %arg5[%c0_191, %c0_192], %866 {strides = array<i32>} : memref<8x1xf32, #tpu.memory_space<vmem>>, vector<8x1xf32>,
    return
  }
}

</mosaic_0001>

<bundles_post_ra>
// kernel: imdb_forward.1
= control target key start
LH: loop header
LB: loop body
LE: loop exit
PB: predicated region body
PF: predicated region fallthrough
CT: control target
= control target key end

     0   :  { %v7343_v0 = vmov 0   ;;  %vm110_vm0 = vcmask 1041408   ;;  %v7344_v22 = vmov 0.0|0.0   ;;  %v28_v26 = vlaneseq  ;;  %s7347_s30 = smov 32   ;;  %s7348_s6 = smov 64   ;;  %s8306_s0 = inlined_call_operand.vmem [shape: s32[64,1], index: 0, kind: input, shape index: {}]   ;;  %s8307_s1 = inlined_call_operand.vmem [shape: f32[50,32], index: 1, kind: input, shape index: {}]   ;;  %s8308_s2 = inlined_call_operand.vmem [shape: f32[456,128], index: 2, kind: input, shape index: {}]   ;;  %s8309_s3 = inlined_call_operand.vmem [shape: f32[32,16], index: 3, kind: input, shape index: {}]   ;;  %s8310_s4 = inlined_call_operand.vmem [shape: f32[16,1], index: 4, kind: input, shape index: {}]   ;;  %s8311_s5 = inlined_call_operand.vmem [shape: f32[8,1], index: 5, kind: output, shape index: {}]  }
   0x1   :  { %7018 = vset.pattern.permute.xlu1 %v7343_v0  ;;  %7017 = vset.pattern.permute.xlu0 %v7343_v0  ;;  %v22_v1 = vld [vmem:[%s8306_s0 + $0x10] sm:$0xff]  ;;  %v20_v2 = vld [vmem:[%s8306_s0] sm:$0xff]  ;;  %v23_v3 = vld [vmem:[%s8306_s0 + $0x18] sm:$0xff]  ;;  %vm85_vm1 = vcmask 408576   ;;  %v7345_v32 = vmov 0.0   ;;  %vm7346_vm10 = vmmov 0  }
   0x2   :  { %37 = vperm.xlu1 %7018, %v22_v1   ;;  %31 = vperm.xlu0 %7017, %v20_v2   ;;  %v21_v4 = vld [vmem:[%s8306_s0 + $0x8] sm:$0xff]  ;;  %v78_v5 = vld [vmem:[%s8307_s1] sm:$0xff]  ;;  %v80_v7 = vld [vmem:[%s8307_s1 + $0x10] sm:$0xff]  ;;  %v29_v27 = vand.u32 127, %v28_v26  ;;  %vm241_vm11 = vcmask 261120   ;;  %vm5449_vm12 = vcmask 130048  }
   0x3   :  { %v79_v6 = vld [vmem:[%s8307_s1 + $0x8] sm:$0xff]  ;;  %v81_v8 = vld [vmem:[%s8307_s1 + $0x18] sm:$0xff]  ;;  %v82_v11 = vld [vmem:[%s8307_s1 + $0x20] sm:$0xff]  ;;  %vm5529_vm13 = vcmask 7168  }
   0x4   :  { %v6662_v9 = vpack.c.bf16 %v79_v6, %v78_v5  ;;  %v6666_v10 = vpack.c.bf16 %v81_v8, %v80_v7  ;;  %v83_v12 = vld [vmem:[%s8307_s1 + $0x28] sm:$0xff]  ;;  %v24_v14 = vld [vmem:[%s8306_s0 + $0x20] sm:$0xff]  ;;  %v27_v16 = vld [vmem:[%s8306_s0 + $0x38] sm:$0xff] }
   0x5   :  { %v25_v13 = vld [vmem:[%s8306_s0 + $0x28] sm:$0xff]  ;;  %v6670_v15 = vpack.c.bf16 %v83_v12, %v82_v11  ;;  %v26_v17 = vld [vmem:[%s8306_s0 + $0x30] sm:$0xff]  ;;  %v219_v19 = vld [vmem:[%s8308_s2] sm:$0xff] }
   0x6   :  { %40 = vperm.xlu1 %7018, %v23_v3   ;;  %34 = vperm.xlu0 %7017, %v21_v4   ;;  %v84_v18 = vld [vmem:[%s8307_s1 + $0x30] sm:$0x3]  ;;  %v220_v20 = vld [vmem:[%s8308_s2 + $0x8] sm:$0xff]  ;;  %v222_v24 = vld [vmem:[%s8308_s2 + $0x18] sm:$0xff] }
   0x7   :  { %6663 = vmatprep.subr.bf16.mxu0 %v6662_v9  ;;  %v221_v21 = vld [vmem:[%s8308_s2 + $0x10] sm:$0xff]  ;;  %v6674_v23 = vpack.c.bf16 %v220_v20, %v219_v19  ;;  %v223_v30 = vld [vmem:[%s8308_s2 + $0x20] sm:$0xff]  ;;  %v224_v31 = vld [vmem:[%s8308_s2 + $0x28] sm:$0xff] }
   0x8   :  { %6665 = vmatpush3.bf16.msra.mxu0 %v6662_v9  ;;  %v6678_v25 = vpack.c.bf16 %v222_v24, %v221_v21  ;;  %v7445_v36 = vpack.c.bf16 %v224_v31, %v223_v30  ;;  %v225_v48 = vld [vmem:[%s8308_s2 + $0x30] sm:$0xff]  ;;  %v226_v49 = vld [vmem:[%s8308_s2 + $0x38] sm:$0xff]  ;;  %v228_v51 = vld [vmem:[%s8308_s2 + $0x48] sm:$0xff] }
   0x9   :  { %6667 = vmatprep.subr.bf16.mxu0 %v6666_v10  ;;  %6675 = vmatprep.subr.bf16.mxu1 %v6674_v23  ;;  %v7469_v50 = vpack.c.bf16 %v226_v49, %v225_v48  ;;  %v229_v52 = vld [vmem:[%s8308_s2 + $0x50] sm:$0xff]  ;;  %v232_v54 = vld [vmem:[%s8308_s2 + $0x68] sm:$0xff]  ;;  %v234_v57 = vld [vmem:[%s8308_s2 + $0x78] sm:$0xff] }
   0xa   :  { %46 = vperm.xlu1 %7018, %v25_v13   ;;  %43 = vperm.xlu0 %7017, %v24_v14   ;;  %v6682_v53 = vpack.c.bf16 %v229_v52, %v228_v51  ;;  %v233_v55 = vld [vmem:[%s8308_s2 + $0x70] sm:$0xff]  ;;  %v235_v58 = vld [vmem:[%s8308_s2 + $0x80] sm:$0xff]  ;;  %v230_v60 = vld [vmem:[%s8308_s2 + $0x58] sm:$0xff] }
   0xb   :  { %6677 = vmatpush3.bf16.msra.mxu1 %v6674_v23  ;;  %v7490_v56 = vpack.c.bf16 %v233_v55, %v232_v54  ;;  %v7500_v59 = vpack.c.bf16 %v235_v58, %v234_v57  ;;  %v231_v61 = vld [vmem:[%s8308_s2 + $0x60] sm:$0xff]  ;;  %v5561_v30 = vld [vmem:[%s8308_s2 + $0x88] ss:$0 sm:$0xff] }
   0xc   :  { %6669 = vmatpush3.bf16.msra.mxu0 %v6666_v10  ;;  %6679 = vmatprep.subr.bf16.mxu1 %v6678_v25  ;;  %v6686_v0 = vpack.c.bf16 %v231_v61, %v230_v60  ;;  %v5552_v11 = vld [vmem:[%s8308_s2 + $0x40] ss:$0 sm:$0xff] }
   0xd   :  { %6671 = vmatprep.subr.bf16.mxu0 %v6670_v15 }
   0xe   :  { %52 = vperm.xlu1 %7018, %v27_v16   ;;  %49 = vperm.xlu0 %7017, %v26_v17  }
   0xf   :  { %6681 = vmatpush3.bf16.msra.mxu1 %v6678_v25 }
  0x10   :  { %6673 = vmatpush3.bf16.msra.mxu0 %v6670_v15  ;;  %6683 = vmatprep.subr.bf16.mxu1 %v6682_v53 }
  0x11   :  { %6030 = vmatprep.subr.msk.mxu0 %vm110_vm0, %v84_v18 }
  0x14   :  { %6031 = vmatpush3.msk.msra.mxu0 %vm110_vm0, %v84_v18 }
  0x15   :  { %6690 = vmatprep.subr.bf16.mxu0 %v7344_v22 }
  0x81   :  { %v38_v28 = vpop.permute.xlu1 %37  ;;  %v32_v29 = vpop.permute.xlu0 %31 }
  0x82   :  { %vm54_vm2 = vcmp.eq.s32.totalorder %v29_v27, %v32_v29  ;;  %vm56_vm3 = vcmp.eq.s32.totalorder %v29_v27, %v38_v28 }
  0x83   :  { %v5535_v33 = vsel %vm54_vm2, 1.0, %v7345_v32  ;;  %v5537_v37 = vsel %vm56_vm3, 1.0, %v7345_v32 }
  0x84   :  { %6032 = vmatprep.mubr.msk.f32.mxu0 %vm85_vm1, %v5535_v33 }
  0x85   :  { %v41_v34 = vpop.permute.xlu1 %40  ;;  %v35_v35 = vpop.permute.xlu0 %34 }
  0x86   :  { %vm55_vm4 = vcmp.eq.s32.totalorder %v29_v27, %v35_v35  ;;  %vm57_vm5 = vcmp.eq.s32.totalorder %v29_v27, %v41_v34 }
  0x87   :  { %v5536_v38 = vsel %vm55_vm4, 1.0, %v7345_v32  ;;  %v5538_v41 = vsel %vm57_vm5, 1.0, %v7345_v32 }
  0x88   :  { %6033 = vmatmul.mubr.msk.f32.vlgmr.msra.gmra.mrb[0].mxu0 %vm85_vm1, %v5536_v38 }
  0x89   :  { %v47_v39 = vpop.permute.xlu1 %46  ;;  %6035 = vmatprep.mubr.msk.f32.mxu0 %vm85_vm1, %v5537_v37  ;;  %v44_v40 = vpop.permute.xlu0 %43  ;;  %6692 = vmatpush3.bf16.msra.mxu0 %v7445_v36 }
  0x8a   :  { %vm58_vm6 = vcmp.eq.s32.totalorder %v29_v27, %v44_v40  ;;  %6693 = vmatprep.subr.bf16.mxu0 %v7344_v22  ;;  %vm59_vm7 = vcmp.eq.s32.totalorder %v29_v27, %v47_v39 }
  0x8b   :  { %v5539_v42 = vsel %vm58_vm6, 1.0, %v7345_v32  ;;  %v5540_v45 = vsel %vm59_vm7, 1.0, %v7345_v32 }
  0x8c   :  { %6036 = vmatmul.mubr.msk.f32.gmra.mrb[2].mxu0 %vm85_vm1, %v5538_v41 }
  0x8d   :  { %v53_v43 = vpop.permute.xlu1 %52  ;;  %6038 = vmatprep.mubr.msk.f32.mxu0 %vm85_vm1, %v5539_v42  ;;  %v50_v44 = vpop.permute.xlu0 %49  ;;  %6695 = vmatpush3.bf16.msra.mxu0 %v7469_v50 }
  0x8e   :  { %vm60_vm8 = vcmp.eq.s32.totalorder %v29_v27, %v50_v44  ;;  %vm61_vm9 = vcmp.eq.s32.totalorder %v29_v27, %v53_v43  ;;  %6696 = vmatprep.subr.bf16.mxu0 %v7344_v22 }
  0x8f   :  { %v5541_v46 = vsel %vm60_vm8, 1.0, %v7345_v32  ;;  %v5542_v47 = vsel %vm61_vm9, 1.0, %v7345_v32 }
  0x90   :  { %6039 = vmatmul.mubr.msk.f32.gmra.mrb[4].mxu0 %vm85_vm1, %v5540_v45 }
  0x91   :  { %6041 = vmatprep.mubr.msk.f32.mxu0 %vm85_vm1, %v5541_v46 }
  0x94   :  { %6042 = vmatmul.mubr.msk.f32.gmra.mrb[6].mxu0 %vm85_vm1, %v5542_v47 }
  0x95   :  { %6092 = vmatprep.mubr.msk.f32.mxu0 %vm7346_vm10, %v7345_v32 }
  0x98   :  { %6093 = vmatmul.mubr.f32.vlgmr.msra.gmra.mrb[8].mxu0 %v7345_v32 }
  0x99   :  { %6103 = vmatprep.mubr.msk.f32.mxu0 %vm7346_vm10, %v7345_v32  ;;  %6698 = vmatpush3.bf16.msra.mxu0 %v7490_v56 }
  0x9a   :  { %6699 = vmatprep.subr.bf16.mxu0 %v7344_v22 }
  0x9d   :  { %6701 = vmatpush3.bf16.msra.mxu0 %v7500_v59 }
  0x9e   :  { %6708 = vmatprep.subr.bf16.mxu0 %v7344_v22 }
  0xa0   :  { %6104 = vmatmul.mubr.f32.vlgmr.msra.gmra.mrb[10].mxu0 %v7345_v32 }
  0xa1   :  { %6710 = vmatpush3.bf16.msra.mxu0 %v7490_v56  ;;  %6125 = vmatprep.mubr.msk.f32.mxu0 %vm7346_vm10, %v7345_v32 }
  0xa2   :  { %6711 = vmatprep.subr.bf16.mxu0 %v7344_v22 }
  0xa5   :  { %6713 = vmatpush3.bf16.msra.mxu0 %v7500_v59 }
  0xa6   :  { %6720 = vmatprep.subr.bf16.mxu0 %v7344_v22 }
 0x15b   :  { %v6034_v62 = vpop.f32.mrb[0].mxu0 }
 0x15c   :  { %v180_v63 = vpop.f32.mrb[1].mxu0 }
 0x15d   :  { %6052 = vmatprep.mubr.msk.f32.mxu1 %vm241_vm11, %v180_v63 }
 0x15e   :  { %6053 = vmatmul.mubr.msk.f32.vlgmr.msra.gmra.mrb[0].mxu1 %vm241_vm11, %v6034_v62 }
 0x15f   :  { %6685 = vmatpush3.bf16.msra.mxu1 %v6682_v53  ;;  %v6037_v1 = vpop.f32.mrb[2].mxu0 }
 0x160   :  { %v190_v2 = vpop.f32.mrb[3].mxu0  ;;  %6687 = vmatprep.subr.bf16.mxu1 %v6686_v0 }
 0x161   :  { %6055 = vmatprep.mubr.msk.f32.mxu1 %vm241_vm11, %v190_v2 }
 0x162   :  { %6056 = vmatmul.mubr.msk.f32.gmra.mrb[2].mxu1 %vm241_vm11, %v6037_v1 }
 0x163   :  { %v6040_v3 = vpop.f32.mrb[4].mxu0  ;;  %6689 = vmatpush3.bf16.msra.mxu1 %v6686_v0 }
 0x164   :  { %v200_v4 = vpop.f32.mrb[5].mxu0  ;;  %6702 = vmatprep.subr.bf16.mxu1 %v7344_v22 }
 0x165   :  { %6058 = vmatprep.mubr.msk.f32.mxu1 %vm241_vm11, %v200_v4 }
 0x166   :  { %6059 = vmatmul.mubr.msk.f32.gmra.mrb[4].mxu1 %vm241_vm11, %v6040_v3 }
 0x167   :  { %v6043_v5 = vpop.f32.mrb[6].mxu0 }
 0x168   :  { %v210_v6 = vpop.f32.mrb[7].mxu0 }
 0x169   :  { %6061 = vmatprep.mubr.msk.f32.mxu1 %vm241_vm11, %v210_v6 }
 0x16a   :  { %6062 = vmatmul.mubr.msk.f32.gmra.mrb[6].mxu1 %vm241_vm11, %v6043_v5 }
 0x16b   :  { %6072 = vmatprep.mubr.msk.f32.mxu1 %vm241_vm11, %v180_v63  ;;  %v549_v7 = vpop.f32.mrb[8].mxu0 }
 0x16c   :  { %v6094_v8 = vpop.f32.mrb[9].mxu0 }
 0x16e   :  { %6073 = vmatmul.mubr.msk.f32.vlgmr.msra.gmra.mrb[8].mxu1 %vm241_vm11, %v6034_v62 }
 0x16f   :  { %6075 = vmatprep.mubr.msk.f32.mxu1 %vm241_vm11, %v190_v2  ;;  %6704 = vmatpush3.bf16.msra.mxu1 %v7445_v36 }
 0x170   :  { %6705 = vmatprep.subr.bf16.mxu1 %v7344_v22 }
 0x172   :  { %6076 = vmatmul.mubr.msk.f32.gmra.mrb[10].mxu1 %vm241_vm11, %v6037_v1 }
 0x173   :  { %6078 = vmatprep.mubr.msk.f32.mxu1 %vm241_vm11, %v200_v4  ;;  %6707 = vmatpush3.bf16.msra.mxu1 %v7469_v50  ;;  %v620_v9 = vpop.f32.mrb[10].mxu0 }
 0x174   :  { %6714 = vmatprep.subr.bf16.mxu1 %v7344_v22  ;;  %v6105_v10 = vpop.f32.mrb[11].mxu0 }
 0x176   :  { %6079 = vmatmul.mubr.msk.f32.gmra.mrb[12].mxu1 %vm241_vm11, %v6040_v3 }
 0x177   :  { %6081 = vmatprep.mubr.msk.f32.mxu1 %vm241_vm11, %v210_v6 }
 0x17a   :  { %6082 = vmatmul.mubr.msk.f32.gmra.mrb[14].mxu1 %vm241_vm11, %v6043_v5 }
 0x17b   :  { %6114 = vmatprep.mubr.msk.f32.mxu1 %vm7346_vm10, %v7345_v32 }
 0x231   :  { %v6054_v12 = vpop.f32.mrb[0].mxu1 }
 0x232   :  { %v7543_v13 = vadd.f32 %v6054_v12, %v5552_v11  ;;  %v332_v14 = vpop.f32.mrb[1].mxu1 }
 0x233   :  { %v333_v15 = vadd.f32 %v5552_v11, %v332_v14 }
 0x235   :  { %v553_v16 = vadd.f32 %v549_v7, %v333_v15  ;;  %v6057_v17 = vpop.f32.mrb[2].mxu1 }
 0x236   :  { %v7545_v18 = vadd.f32 %v6057_v17, %v5552_v11  ;;  %v342_v19 = vpop.f32.mrb[3].mxu1 }
 0x237   :  { %7019 = vtanh.f32 %v553_v16  ;;  %v7547_v20 = vadd.f32 %v5552_v11, %v342_v19  ;;  %v5570_v53 = vmul.f32 -1.442695, %v553_v16 }
 0x239   :  { %v6060_v21 = vpop.f32.mrb[4].mxu1 }
 0x23a   :  { %v7549_v23 = vadd.f32 %v6060_v21, %v5552_v11  ;;  %v352_v24 = vpop.f32.mrb[5].mxu1 }
 0x23b   :  { %v7551_v25 = vadd.f32 %v5552_v11, %v352_v24 }
 0x23d   :  { %v6063_v26 = vpop.f32.mrb[6].mxu1 }
 0x23e   :  { %v7553_v27 = vadd.f32 %v6063_v26, %v5552_v11  ;;  %v362_v28 = vpop.f32.mrb[7].mxu1 }
 0x23f   :  { %v7555_v29 = vadd.f32 %v5552_v11, %v362_v28 }
 0x241   :  { %v7020_v31 = vpop.eup %7019  ;;  %v6074_v33 = vpop.f32.mrb[8].mxu1 }
 0x242   :  { %v7560_v34 = vadd.f32 %v6074_v33, %v5561_v30  ;;  %634 = vrot.lane.b32.xlu1 %v7020_v31, %s7347_s30  ;;  %v441_v35 = vpop.f32.mrb[9].mxu1 }
 0x243   :  { %v7563_v37 = vadd.f32 %v5561_v30, %v441_v35 }
 0x245   :  { %v6077_v38 = vpop.f32.mrb[10].mxu1 }
 0x246   :  { %v7565_v39 = vadd.f32 %v6077_v38, %v5561_v30  ;;  %v451_v40 = vpop.f32.mrb[11].mxu1 }
 0x247   :  { %v7567_v41 = vadd.f32 %v5561_v30, %v451_v40 }
 0x249   :  { %v6080_v42 = vpop.f32.mrb[12].mxu1 }
 0x24a   :  { %v7569_v43 = vadd.f32 %v6080_v42, %v5561_v30  ;;  %v461_v44 = vpop.f32.mrb[13].mxu1 }
 0x24b   :  { %v7571_v45 = vadd.f32 %v5561_v30, %v461_v44 }
 0x24d   :  { %v6083_v46 = vpop.f32.mrb[14].mxu1 }
 0x24e   :  { %v477_v47 = vadd.f32 %v6083_v46, %v5561_v30  ;;  %v471_v48 = vpop.f32.mrb[15].mxu1 }
 0x24f   :  { %v7573_v49 = vadd.f32 %v5561_v30, %v471_v48 }
 0x250   :  { %v624_v51 = vadd.f32 %v620_v9, %v477_v47 }
 0x252   :  { %7021 = vtanh.f32 %v624_v51  ;;  %v5571_v57 = vmul.f32 -1.442695, %v624_v51 }
 0x253   :  { %7023 = vpow2.f32 %v5570_v53 }
 0x25c   :  { %v7022_v52 = vpop.eup %7021 }
 0x25d   :  { %658 = vrot.lane.b32.xlu0 %v7022_v52, %s7347_s30  ;;  %v7024_v54 = vpop.eup %7023 }
 0x25e   :  { %v628_v55 = vadd.f32 1.0, %v7024_v54 }
 0x260   :  { %7025 = vrcp.f32 %v628_v55 }
 0x261   :  { %7027 = vpow2.f32 %v5571_v57 }
 0x26a   :  { %v7026_v58 = vpop.eup %7025 }
 0x26b   :  { %v7028_v62 = vpop.eup %7027  ;;  %v632_v3 = vmul.f32 0.0, %v7026_v58 }
 0x26c   :  { %v652_v63 = vadd.f32 1.0, %v7028_v62 }
 0x26e   :  { %7029 = vrcp.f32 %v652_v63 }
 0x278   :  { %v7030_v0 = vpop.eup %7029 }
 0x279   :  { %v656_v7 = vmul.f32 0.0, %v7030_v0 }
 0x2b4   :  { %v635_v60 = vpop.permute.xlu1 %634 }
 0x2b5   :  { %v637_v61 = vmul.f32 %v7026_v58, %v635_v60 }
 0x2b7   :  { %639 = vrot.lane.b32.xlu1 %v637_v61, %s7347_s30 }
 0x2cf   :  { %v659_v1 = vpop.permute.xlu0 %658 }
 0x2d0   :  { %v661_v2 = vmul.f32 %v7030_v0, %v659_v1 }
 0x2d2   :  { %663 = vrot.lane.b32.xlu0 %v661_v2, %s7347_s30 }
 0x329   :  { %v640_v4 = vpop.permute.xlu1 %639 }
 0x32a   :  { %v7578_v5 = vadd.f32 %v640_v4, %v632_v3 }
 0x32c   :  { %7031 = vtanh.f32 %v7578_v5 }
 0x336   :  { %v7032_v6 = vpop.eup %7031 }
 0x337   :  { %645 = vrot.lane.b32.xlu1 %v7032_v6, %s7347_s30 }
 0x344   :  { %v664_v8 = vpop.permute.xlu0 %663 }
 0x345   :  { %v7582_v9 = vadd.f32 %v664_v8, %v656_v7 }
 0x347   :  { %7033 = vtanh.f32 %v7582_v9 }
 0x351   :  { %v7034_v10 = vpop.eup %7033 }
 0x352   :  { %669 = vrot.lane.b32.xlu0 %v7034_v10, %s7347_s30 }
 0x3a9   :  { %v646_v11 = vpop.permute.xlu1 %645 }
 0x3aa   :  { %v648_v12 = vmul.f32 %v7026_v58, %v646_v11 }
 0x3ac   :  { %674 = vrot.lane.b32.xlu1 %v648_v12, %s7348_s6 }
 0x3c4   :  { %v670_v14 = vpop.permute.xlu0 %669 }
 0x3c5   :  { %v672_v15 = vmul.f32 %v7030_v0, %v670_v14 }
 0x3c7   :  { %679 = vrot.lane.b32.xlu0 %v672_v15, %s7348_s6 }
 0x41e   :  { %v675_v16 = vpop.permute.xlu1 %674 }
 0x41f   :  { %677 = vst.msk [vmem:[#allocation2] sm:$0xff] %vm241_vm11, %v675_v16  ;;  %6115 = vmatmul.mubr.msk.f32.vlgmr.msra.gmra.mrb[16].mxu1 %vm241_vm11, %v675_v16 }
 0x420   :  { %6716 = vmatpush3.bf16.msra.mxu1 %v7445_v36  ;;  %6136 = vmatprep.mubr.msk.f32.mxu1 %vm7346_vm10, %v7345_v32 }
 0x421   :  { %6717 = vmatprep.subr.bf16.mxu1 %v7344_v22 }
 0x424   :  { %6719 = vmatpush3.bf16.msra.mxu1 %v7469_v50 }
 0x425   :  { %6726 = vmatprep.subr.bf16.mxu1 %v7344_v22 }
 0x439   :  { %v680_v17 = vpop.permute.xlu0 %679 }
 0x43a   :  { %682 = vst.msk [vmem:[#allocation3 + $0x38] sm:$0xff] %vm241_vm11, %v680_v17  ;;  %6126 = vmatmul.mubr.msk.f32.vlgmr.msra.gmra.mrb[12].mxu0 %vm241_vm11, %v680_v17 }
 0x43b   :  { %6722 = vmatpush3.bf16.msra.mxu0 %v7490_v56  ;;  %6147 = vmatprep.mubr.msk.f32.mxu0 %vm7346_vm10, %v7345_v32 }
 0x43c   :  { %6723 = vmatprep.subr.bf16.mxu0 %v7344_v22 }
 0x43f   :  { %6725 = vmatpush3.bf16.msra.mxu0 %v7500_v59 }
 0x440   :  { %6732 = vmatprep.subr.bf16.mxu0 %v7344_v22 }
 0x4f2   :  { %v751_v19 = vpop.f32.mrb[16].mxu1 }
 0x4f3   :  { %v755_v21 = vadd.f32 %v751_v19, %v7543_v13  ;;  %v6116_v24 = vpop.f32.mrb[17].mxu1 }
 0x4f5   :  { %7035 = vtanh.f32 %v755_v21  ;;  %v5574_v35 = vmul.f32 -1.442695, %v755_v21 }
 0x4ff   :  { %v7036_v26 = vpop.eup %7035 }
 0x500   :  { %838 = vrot.lane.b32.xlu1 %v7036_v26, %s7347_s30 }
 0x50d   :  { %v824_v28 = vpop.f32.mrb[12].mxu0 }
 0x50e   :  { %v828_v30 = vadd.f32 %v824_v28, %v7573_v49  ;;  %v6127_v31 = vpop.f32.mrb[13].mxu0 }
 0x510   :  { %7037 = vtanh.f32 %v828_v30  ;;  %v5575_v42 = vmul.f32 -1.442695, %v828_v30 }
 0x511   :  { %7039 = vpow2.f32 %v5574_v35 }
 0x51a   :  { %v7038_v33 = vpop.eup %7037 }
 0x51b   :  { %862 = vrot.lane.b32.xlu0 %v7038_v33, %s7347_s30  ;;  %v7040_v38 = vpop.eup %7039 }
 0x51c   :  { %v832_v40 = vadd.f32 1.0, %v7040_v38 }
 0x51e   :  { %7041 = vrcp.f32 %v832_v40 }
 0x51f   :  { %7043 = vpow2.f32 %v5575_v42 }
 0x528   :  { %v7042_v13 = vpop.eup %7041 }
 0x529   :  { %v7044_v47 = vpop.eup %7043  ;;  %v836_v53 = vmul.f32 %v7042_v13, %v7578_v5 }
 0x52a   :  { %v856_v48 = vadd.f32 1.0, %v7044_v47 }
 0x52c   :  { %7045 = vrcp.f32 %v856_v48 }
 0x536   :  { %v7046_v49 = vpop.eup %7045 }
 0x537   :  { %v860_v58 = vmul.f32 %v7046_v49, %v7582_v9 }
 0x572   :  { %v839_v44 = vpop.permute.xlu1 %838 }
 0x573   :  { %v841_v46 = vmul.f32 %v7042_v13, %v839_v44 }
 0x575   :  { %843 = vrot.lane.b32.xlu1 %v841_v46, %s7347_s30 }
 0x58d   :  { %v863_v51 = vpop.permute.xlu0 %862 }
 0x58e   :  { %v865_v52 = vmul.f32 %v7046_v49, %v863_v51 }
 0x590   :  { %867 = vrot.lane.b32.xlu0 %v865_v52, %s7347_s30 }
 0x5e7   :  { %v844_v54 = vpop.permute.xlu1 %843 }
 0x5e8   :  { %v846_v55 = vadd.f32 %v844_v54, %v836_v53 }
 0x5ea   :  { %7047 = vtanh.f32 %v846_v55 }
 0x5f4   :  { %v7048_v57 = vpop.eup %7047 }
 0x5f5   :  { %849 = vrot.lane.b32.xlu1 %v7048_v57, %s7347_s30 }
 0x602   :  { %v868_v60 = vpop.permute.xlu0 %867 }
 0x603   :  { %v870_v61 = vadd.f32 %v868_v60, %v860_v58 }
 0x605   :  { %7049 = vtanh.f32 %v870_v61 }
 0x60f   :  { %v7050_v62 = vpop.eup %7049 }
 0x610   :  { %873 = vrot.lane.b32.xlu0 %v7050_v62, %s7347_s30 }
 0x667   :  { %v850_v63 = vpop.permute.xlu1 %849 }
 0x668   :  { %v852_v0 = vmul.f32 %v7042_v13, %v850_v63 }
 0x66a   :  { %878 = vrot.lane.b32.xlu1 %v852_v0, %s7348_s6 }
 0x682   :  { %v874_v1 = vpop.permute.xlu0 %873 }
 0x683   :  { %v876_v2 = vmul.f32 %v7046_v49, %v874_v1 }
 0x685   :  { %883 = vrot.lane.b32.xlu0 %v876_v2, %s7348_s6 }
 0x6dc   :  { %v879_v3 = vpop.permute.xlu1 %878 }
 0x6dd   :  { %881 = vst.msk [vmem:[#allocation2 + $0x8] sm:$0xff] %vm241_vm11, %v879_v3  ;;  %6137 = vmatmul.mubr.msk.f32.vlgmr.msra.gmra.mrb[18].mxu1 %vm241_vm11, %v879_v3 }
 0x6de   :  { %6728 = vmatpush3.bf16.msra.mxu1 %v7445_v36  ;;  %6158 = vmatprep.mubr.msk.f32.mxu1 %vm7346_vm10, %v7345_v32 }
 0x6df   :  { %6729 = vmatprep.subr.bf16.mxu1 %v7344_v22 }
 0x6e2   :  { %6731 = vmatpush3.bf16.msra.mxu1 %v7469_v50 }
 0x6e3   :  { %6738 = vmatprep.subr.bf16.mxu1 %v7344_v22 }
 0x6f7   :  { %v884_v4 = vpop.permute.xlu0 %883 }
 0x6f8   :  { %886 = vst.msk [vmem:[#allocation3 + $0x30] sm:$0xff] %vm241_vm11, %v884_v4  ;;  %6148 = vmatmul.mubr.msk.f32.vlgmr.msra.gmra.mrb[14].mxu0 %vm241_vm11, %v884_v4 }
 0x6f9   :  { %6734 = vmatpush3.bf16.msra.mxu0 %v7490_v56  ;;  %6169 = vmatprep.mubr.msk.f32.mxu0 %vm7346_vm10, %v7345_v32 }
 0x6fa   :  { %6735 = vmatprep.subr.bf16.mxu0 %v7344_v22 }
 0x6fd   :  { %6737 = vmatpush3.bf16.msra.mxu0 %v7500_v59 }
 0x6fe   :  { %6744 = vmatprep.subr.bf16.mxu0 %v7344_v22 }
 0x7b0   :  { %v955_v5 = vpop.f32.mrb[18].mxu1 }
 0x7b1   :  { %v959_v6 = vadd.f32 %v955_v5, %v7547_v20  ;;  %v6138_v7 = vpop.f32.mrb[19].mxu1 }
 0x7b3   :  { %7051 = vtanh.f32 %v959_v6  ;;  %v5578_v14 = vmul.f32 -1.442695, %v959_v6 }
 0x7bd   :  { %v7052_v8 = vpop.eup %7051 }
 0x7be   :  { %1042 = vrot.lane.b32.xlu1 %v7052_v8, %s7347_s30 }
 0x7cb   :  { %v1028_v9 = vpop.f32.mrb[14].mxu0 }
 0x7cc   :  { %v1032_v10 = vadd.f32 %v1028_v9, %v7569_v43  ;;  %v6149_v11 = vpop.f32.mrb[15].mxu0 }
 0x7ce   :  { %7053 = vtanh.f32 %v1032_v10  ;;  %v5579_v17 = vmul.f32 -1.442695, %v1032_v10 }
 0x7cf   :  { %7055 = vpow2.f32 %v5578_v14 }
 0x7d8   :  { %v7054_v12 = vpop.eup %7053 }
 0x7d9   :  { %1066 = vrot.lane.b32.xlu0 %v7054_v12, %s7347_s30  ;;  %v7056_v15 = vpop.eup %7055 }
 0x7da   :  { %v1036_v16 = vadd.f32 1.0, %v7056_v15 }
 0x7dc   :  { %7057 = vrcp.f32 %v1036_v16 }
 0x7dd   :  { %7059 = vpow2.f32 %v5579_v17 }
 0x7e6   :  { %v7058_v20 = vpop.eup %7057 }
 0x7e7   :  { %v7060_v24 = vpop.eup %7059  ;;  %v1040_v31 = vmul.f32 %v7058_v20, %v846_v55 }
 0x7e8   :  { %v1060_v26 = vadd.f32 1.0, %v7060_v24 }
 0x7ea   :  { %7061 = vrcp.f32 %v1060_v26 }
 0x7f4   :  { %v7062_v43 = vpop.eup %7061 }
 0x7f5   :  { %v1064_v40 = vmul.f32 %v7062_v43, %v870_v61 }
 0x830   :  { %v1043_v19 = vpop.permute.xlu1 %1042 }
 0x831   :  { %v1045_v21 = vmul.f32 %v7058_v20, %v1043_v19 }
 0x833   :  { %1047 = vrot.lane.b32.xlu1 %v1045_v21, %s7347_s30 }
 0x84b   :  { %v1067_v28 = vpop.permute.xlu0 %1066 }
 0x84c   :  { %v1069_v30 = vmul.f32 %v7062_v43, %v1067_v28 }
 0x84e   :  { %1071 = vrot.lane.b32.xlu0 %v1069_v30, %s7347_s30 }
 0x8a5   :  { %v1048_v33 = vpop.permute.xlu1 %1047 }
 0x8a6   :  { %v1050_v35 = vadd.f32 %v1048_v33, %v1040_v31 }
 0x8a8   :  { %7063 = vtanh.f32 %v1050_v35 }
 0x8b2   :  { %v7064_v38 = vpop.eup %7063 }
 0x8b3   :  { %1053 = vrot.lane.b32.xlu1 %v7064_v38, %s7347_s30 }
 0x8c0   :  { %v1072_v42 = vpop.permute.xlu0 %1071 }
 0x8c1   :  { %v1074_v13 = vadd.f32 %v1072_v42, %v1064_v40 }
 0x8c3   :  { %7065 = vtanh.f32 %v1074_v13 }
 0x8cd   :  { %v7066_v44 = vpop.eup %7065 }
 0x8ce   :  { %1077 = vrot.lane.b32.xlu0 %v7066_v44, %s7347_s30 }
 0x925   :  { %v1054_v46 = vpop.permute.xlu1 %1053 }
 0x926   :  { %v1056_v47 = vmul.f32 %v7058_v20, %v1054_v46 }
 0x928   :  { %1082 = vrot.lane.b32.xlu1 %v1056_v47, %s7348_s6 }
 0x940   :  { %v1078_v48 = vpop.permute.xlu0 %1077 }
 0x941   :  { %v1080_v49 = vmul.f32 %v7062_v43, %v1078_v48 }
 0x943   :  { %1087 = vrot.lane.b32.xlu0 %v1080_v49, %s7348_s6 }
 0x99a   :  { %v1083_v51 = vpop.permute.xlu1 %1082 }
 0x99b   :  { %1085 = vst.msk [vmem:[#allocation2 + $0x10] sm:$0xff] %vm241_vm11, %v1083_v51  ;;  %6159 = vmatmul.mubr.msk.f32.vlgmr.msra.gmra.mrb[20].mxu1 %vm241_vm11, %v1083_v51 }
 0x99c   :  { %6740 = vmatpush3.bf16.msra.mxu1 %v7445_v36  ;;  %6180 = vmatprep.mubr.msk.f32.mxu1 %vm7346_vm10, %v7345_v32 }
 0x99d   :  { %6741 = vmatprep.subr.bf16.mxu1 %v7344_v22 }
 0x9a0   :  { %6743 = vmatpush3.bf16.msra.mxu1 %v7469_v50 }
 0x9a1   :  { %6750 = vmatprep.subr.bf16.mxu1 %v7344_v22 }
 0x9b5   :  { %v1088_v52 = vpop.permute.xlu0 %1087 }
 0x9b6   :  { %1090 = vst.msk [vmem:[#allocation3 + $0x28] sm:$0xff] %vm241_vm11, %v1088_v52  ;;  %6170 = vmatmul.mubr.msk.f32.vlgmr.msra.gmra.mrb[16].mxu0 %vm241_vm11, %v1088_v52 }
 0x9b7   :  { %6746 = vmatpush3.bf16.msra.mxu0 %v7490_v56  ;;  %6191 = vmatprep.mubr.msk.f32.mxu0 %vm7346_vm10, %v7345_v32 }
 0x9b8   :  { %6747 = vmatprep.subr.bf16.mxu0 %v7344_v22 }
 0x9bb   :  { %6749 = vmatpush3.bf16.msra.mxu0 %v7500_v59 }
 0x9bc   :  { %6756 = vmatprep.subr.bf16.mxu0 %v7344_v22 }
 0xa6e   :  { %v1159_v53 = vpop.f32.mrb[20].mxu1 }
 0xa6f   :  { %v1163_v54 = vadd.f32 %v1159_v53, %v7545_v18  ;;  %v6160_v55 = vpop.f32.mrb[21].mxu1 }
 0xa71   :  { %7067 = vtanh.f32 %v1163_v54  ;;  %v5582_v63 = vmul.f32 -1.442695, %v1163_v54 }
 0xa7b   :  { %v7068_v57 = vpop.eup %7067 }
 0xa7c   :  { %1246 = vrot.lane.b32.xlu1 %v7068_v57, %s7347_s30 }
 0xa89   :  { %v1232_v58 = vpop.f32.mrb[16].mxu0 }
 0xa8a   :  { %v1236_v60 = vadd.f32 %v1232_v58, %v7571_v45  ;;  %v6171_v61 = vpop.f32.mrb[17].mxu0 }
 0xa8c   :  { %7069 = vtanh.f32 %v1236_v60  ;;  %v5583_v2 = vmul.f32 -1.442695, %v1236_v60 }
 0xa8d   :  { %7071 = vpow2.f32 %v5582_v63 }
 0xa96   :  { %v7070_v62 = vpop.eup %7069 }
 0xa97   :  { %1270 = vrot.lane.b32.xlu0 %v7070_v62, %s7347_s30  ;;  %v7072_v0 = vpop.eup %7071 }
 0xa98   :  { %v1240_v1 = vadd.f32 1.0, %v7072_v0 }
 0xa9a   :  { %7073 = vrcp.f32 %v1240_v1 }
 0xa9b   :  { %7075 = vpow2.f32 %v5583_v2 }
 0xaa4   :  { %v7074_v18 = vpop.eup %7073 }
 0xaa5   :  { %v7076_v5 = vpop.eup %7075  ;;  %v1244_v9 = vmul.f32 %v7074_v18, %v1050_v35 }
 0xaa6   :  { %v1264_v6 = vadd.f32 1.0, %v7076_v5 }
 0xaa8   :  { %7077 = vrcp.f32 %v1264_v6 }
 0xab2   :  { %v7078_v45 = vpop.eup %7077 }
 0xab3   :  { %v1268_v14 = vmul.f32 %v7078_v45, %v1074_v13 }
 0xaee   :  { %v1247_v3 = vpop.permute.xlu1 %1246 }
 0xaef   :  { %v1249_v4 = vmul.f32 %v7074_v18, %v1247_v3 }
 0xaf1   :  { %1251 = vrot.lane.b32.xlu1 %v1249_v4, %s7347_s30 }
 0xb09   :  { %v1271_v7 = vpop.permute.xlu0 %1270 }
 0xb0a   :  { %v1273_v8 = vmul.f32 %v7078_v45, %v1271_v7 }
 0xb0c   :  { %1275 = vrot.lane.b32.xlu0 %v1273_v8, %s7347_s30 }
 0xb63   :  { %v1252_v10 = vpop.permute.xlu1 %1251 }
 0xb64   :  { %v1254_v11 = vadd.f32 %v1252_v10, %v1244_v9 }
 0xb66   :  { %7079 = vtanh.f32 %v1254_v11 }
 0xb70   :  { %v7080_v12 = vpop.eup %7079 }
 0xb71   :  { %1257 = vrot.lane.b32.xlu1 %v7080_v12, %s7347_s30 }
 0xb7e   :  { %v1276_v15 = vpop.permute.xlu0 %1275 }
 0xb7f   :  { %v1278_v16 = vadd.f32 %v1276_v15, %v1268_v14 }
 0xb81   :  { %7081 = vtanh.f32 %v1278_v16 }
 0xb8b   :  { %v7082_v17 = vpop.eup %7081 }
 0xb8c   :  { %1281 = vrot.lane.b32.xlu0 %v7082_v17, %s7347_s30 }
 0xbe3   :  { %v1258_v20 = vpop.permute.xlu1 %1257 }
 0xbe4   :  { %v1260_v19 = vmul.f32 %v7074_v18, %v1258_v20 }
 0xbe6   :  { %1286 = vrot.lane.b32.xlu1 %v1260_v19, %s7348_s6 }
 0xbfe   :  { %v1282_v21 = vpop.permute.xlu0 %1281 }
 0xbff   :  { %v1284_v24 = vmul.f32 %v7078_v45, %v1282_v21 }
 0xc01   :  { %1291 = vrot.lane.b32.xlu0 %v1284_v24, %s7348_s6 }
 0xc58   :  { %v1287_v26 = vpop.permute.xlu1 %1286 }
 0xc59   :  { %1289 = vst.msk [vmem:[#allocation2 + $0x18] sm:$0xff] %vm241_vm11, %v1287_v26  ;;  %6181 = vmatmul.mubr.msk.f32.vlgmr.msra.gmra.mrb[22].mxu1 %vm241_vm11, %v1287_v26 }
 0xc5a   :  { %6752 = vmatpush3.bf16.msra.mxu1 %v7445_v36  ;;  %6202 = vmatprep.mubr.msk.f32.mxu1 %vm7346_vm10, %v7345_v32 }
 0xc5b   :  { %6753 = vmatprep.subr.bf16.mxu1 %v7344_v22 }
 0xc5e   :  { %6755 = vmatpush3.bf16.msra.mxu1 %v7469_v50 }
 0xc5f   :  { %6762 = vmatprep.subr.bf16.mxu1 %v7344_v22 }
 0xc73   :  { %v1292_v43 = vpop.permute.xlu0 %1291 }
 0xc74   :  { %1294 = vst.msk [vmem:[#allocation3 + $0x20] sm:$0xff] %vm241_vm11, %v1292_v43  ;;  %6192 = vmatmul.mubr.msk.f32.vlgmr.msra.gmra.mrb[18].mxu0 %vm241_vm11, %v1292_v43 }
 0xc75   :  { %6758 = vmatpush3.bf16.msra.mxu0 %v7490_v56  ;;  %6213 = vmatprep.mubr.msk.f32.mxu0 %vm7346_vm10, %v7345_v32 }
 0xc76   :  { %6759 = vmatprep.subr.bf16.mxu0 %v7344_v22 }
 0xc79   :  { %6761 = vmatpush3.bf16.msra.mxu0 %v7500_v59 }
 0xc7a   :  { %6768 = vmatprep.subr.bf16.mxu0 %v7344_v22 }
 0xd2c   :  { %v1363_v28 = vpop.f32.mrb[22].mxu1 }
 0xd2d   :  { %v1367_v30 = vadd.f32 %v1363_v28, %v7551_v25  ;;  %v6182_v31 = vpop.f32.mrb[23].mxu1 }
 0xd2f   :  { %7083 = vtanh.f32 %v1367_v30  ;;  %v5586_v13 = vmul.f32 -1.442695, %v1367_v30 }
 0xd39   :  { %v7084_v33 = vpop.eup %7083 }
 0xd3a   :  { %1450 = vrot.lane.b32.xlu1 %v7084_v33, %s7347_s30 }
 0xd47   :  { %v1436_v35 = vpop.f32.mrb[18].mxu0 }
 0xd48   :  { %v1440_v38 = vadd.f32 %v1436_v35, %v7565_v39  ;;  %v6193_v40 = vpop.f32.mrb[19].mxu0 }
 0xd4a   :  { %7085 = vtanh.f32 %v1440_v38  ;;  %v5587_v47 = vmul.f32 -1.442695, %v1440_v38 }
 0xd4b   :  { %7087 = vpow2.f32 %v5586_v13 }
 0xd54   :  { %v7086_v42 = vpop.eup %7085 }
 0xd55   :  { %1474 = vrot.lane.b32.xlu0 %v7086_v42, %s7347_s30  ;;  %v7088_v44 = vpop.eup %7087 }
 0xd56   :  { %v1444_v46 = vadd.f32 1.0, %v7088_v44 }
 0xd58   :  { %7089 = vrcp.f32 %v1444_v46 }
 0xd59   :  { %7091 = vpow2.f32 %v5587_v47 }
 0xd62   :  { %v7090_v25 = vpop.eup %7089 }
 0xd63   :  { %v7092_v51 = vpop.eup %7091  ;;  %v1448_v55 = vmul.f32 %v7090_v25, %v1254_v11 }
 0xd64   :  { %v1468_v52 = vadd.f32 1.0, %v7092_v51 }
 0xd66   :  { %7093 = vrcp.f32 %v1468_v52 }
 0xd70   :  { %v7094_v39 = vpop.eup %7093 }
 0xd71   :  { %v1472_v61 = vmul.f32 %v7094_v39, %v1278_v16 }
 0xdac   :  { %v1451_v48 = vpop.permute.xlu1 %1450 }
 0xdad   :  { %v1453_v49 = vmul.f32 %v7090_v25, %v1451_v48 }
 0xdaf   :  { %1455 = vrot.lane.b32.xlu1 %v1453_v49, %s7347_s30 }
 0xdc7   :  { %v1475_v53 = vpop.permute.xlu0 %1474 }
 0xdc8   :  { %v1477_v54 = vmul.f32 %v7094_v39, %v1475_v53 }
 0xdca   :  { %1479 = vrot.lane.b32.xlu0 %v1477_v54, %s7347_s30 }
 0xe21   :  { %v1456_v57 = vpop.permute.xlu1 %1455 }
 0xe22   :  { %v1458_v58 = vadd.f32 %v1456_v57, %v1448_v55 }
 0xe24   :  { %7095 = vtanh.f32 %v1458_v58 }
 0xe2e   :  { %v7096_v60 = vpop.eup %7095 }
 0xe2f   :  { %1461 = vrot.lane.b32.xlu1 %v7096_v60, %s7347_s30 }
 0xe3c   :  { %v1480_v62 = vpop.permute.xlu0 %1479 }
 0xe3d   :  { %v1482_v63 = vadd.f32 %v1480_v62, %v1472_v61 }
 0xe3f   :  { %7097 = vtanh.f32 %v1482_v63 }
 0xe49   :  { %v7098_v0 = vpop.eup %7097 }
 0xe4a   :  { %1485 = vrot.lane.b32.xlu0 %v7098_v0, %s7347_s30 }
 0xea1   :  { %v1462_v1 = vpop.permute.xlu1 %1461 }
 0xea2   :  { %v1464_v2 = vmul.f32 %v7090_v25, %v1462_v1 }
 0xea4   :  { %1490 = vrot.lane.b32.xlu1 %v1464_v2, %s7348_s6 }
 0xebc   :  { %v1486_v18 = vpop.permute.xlu0 %1485 }
 0xebd   :  { %v1488_v3 = vmul.f32 %v7094_v39, %v1486_v18 }
 0xebf   :  { %1495 = vrot.lane.b32.xlu0 %v1488_v3, %s7348_s6 }
 0xf16   :  { %v1491_v4 = vpop.permute.xlu1 %1490 }
 0xf17   :  { %1493 = vst.msk [vmem:[#allocation2 + $0x20] sm:$0xff] %vm241_vm11, %v1491_v4  ;;  %6203 = vmatmul.mubr.msk.f32.vlgmr.msra.gmra.mrb[24].mxu1 %vm241_vm11, %v1491_v4 }
 0xf18   :  { %6764 = vmatpush3.bf16.msra.mxu1 %v7445_v36  ;;  %6224 = vmatprep.mubr.msk.f32.mxu1 %vm7346_vm10, %v7345_v32 }
 0xf19   :  { %6765 = vmatprep.subr.bf16.mxu1 %v7344_v22 }
 0xf1c   :  { %6767 = vmatpush3.bf16.msra.mxu1 %v7469_v50 }
 0xf1d   :  { %6774 = vmatprep.subr.bf16.mxu1 %v7344_v22 }
 0xf31   :  { %v1496_v5 = vpop.permute.xlu0 %1495 }
 0xf32   :  { %1498 = vst.msk [vmem:[#allocation3 + $0x18] sm:$0xff] %vm241_vm11, %v1496_v5  ;;  %6214 = vmatmul.mubr.msk.f32.vlgmr.msra.gmra.mrb[20].mxu0 %vm241_vm11, %v1496_v5 }
 0xf33   :  { %6770 = vmatpush3.bf16.msra.mxu0 %v7490_v56  ;;  %6235 = vmatprep.mubr.msk.f32.mxu0 %vm7346_vm10, %v7345_v32 }
 0xf34   :  { %6771 = vmatprep.subr.bf16.mxu0 %v7344_v22 }
 0xf37   :  { %6773 = vmatpush3.bf16.msra.mxu0 %v7500_v59 }
 0xf38   :  { %6780 = vmatprep.subr.bf16.mxu0 %v7344_v22 }
 0xfea   :  { %v1567_v6 = vpop.f32.mrb[24].mxu1 }
 0xfeb   :  { %v1571_v45 = vadd.f32 %v1567_v6, %v7549_v23  ;;  %v6204_v7 = vpop.f32.mrb[25].mxu1 }
 0xfed   :  { %7099 = vtanh.f32 %v1571_v45  ;;  %v5590_v14 = vmul.f32 -1.442695, %v1571_v45 }
 0xff7   :  { %v7100_v8 = vpop.eup %7099 }
 0xff8   :  { %1654 = vrot.lane.b32.xlu1 %v7100_v8, %s7347_s30 }
0x1005   :  { %v1640_v9 = vpop.f32.mrb[20].mxu0 }
0x1006   :  { %v1644_v10 = vadd.f32 %v1640_v9, %v7567_v41  ;;  %v6215_v11 = vpop.f32.mrb[21].mxu0 }
0x1008   :  { %7101 = vtanh.f32 %v1644_v10  ;;  %v5591_v17 = vmul.f32 -1.442695, %v1644_v10 }
0x1009   :  { %7103 = vpow2.f32 %v5590_v14 }
0x1012   :  { %v7102_v12 = vpop.eup %7101 }
0x1013   :  { %1678 = vrot.lane.b32.xlu0 %v7102_v12, %s7347_s30  ;;  %v7104_v15 = vpop.eup %7103 }
0x1014   :  { %v1648_v16 = vadd.f32 1.0, %v7104_v15 }
0x1016   :  { %7105 = vrcp.f32 %v1648_v16 }
0x1017   :  { %7107 = vpow2.f32 %v5591_v17 }
0x1020   :  { %v7106_v23 = vpop.eup %7105 }
0x1021   :  { %v7108_v21 = vpop.eup %7107  ;;  %v1652_v28 = vmul.f32 %v7106_v23, %v1458_v58 }
0x1022   :  { %v1672_v24 = vadd.f32 1.0, %v7108_v21 }
0x1024   :  { %7109 = vrcp.f32 %v1672_v24 }
0x102e   :  { %v7110_v41 = vpop.eup %7109 }
0x102f   :  { %v1676_v35 = vmul.f32 %v7110_v41, %v1482_v63 }
0x106a   :  { %v1655_v20 = vpop.permute.xlu1 %1654 }
0x106b   :  { %v1657_v19 = vmul.f32 %v7106_v23, %v1655_v20 }
0x106d   :  { %1659 = vrot.lane.b32.xlu1 %v1657_v19, %s7347_s30 }
0x1085   :  { %v1679_v26 = vpop.permute.xlu0 %1678 }
0x1086   :  { %v1681_v43 = vmul.f32 %v7110_v41, %v1679_v26 }
0x1088   :  { %1683 = vrot.lane.b32.xlu0 %v1681_v43, %s7347_s30 }
0x10df   :  { %v1660_v30 = vpop.permute.xlu1 %1659 }
0x10e0   :  { %v1662_v31 = vadd.f32 %v1660_v30, %v1652_v28 }
0x10e2   :  { %7111 = vtanh.f32 %v1662_v31 }
0x10ec   :  { %v7112_v33 = vpop.eup %7111 }
0x10ed   :  { %1665 = vrot.lane.b32.xlu1 %v7112_v33, %s7347_s30 }
0x10fa   :  { %v1684_v38 = vpop.permute.xlu0 %1683 }
0x10fb   :  { %v1686_v40 = vadd.f32 %v1684_v38, %v1676_v35 }
0x10fd   :  { %7113 = vtanh.f32 %v1686_v40 }
0x1107   :  { %v7114_v42 = vpop.eup %7113 }
0x1108   :  { %1689 = vrot.lane.b32.xlu0 %v7114_v42, %s7347_s30 }
0x115f   :  { %v1666_v13 = vpop.permute.xlu1 %1665 }
0x1160   :  { %v1668_v44 = vmul.f32 %v7106_v23, %v1666_v13 }
0x1162   :  { %1694 = vrot.lane.b32.xlu1 %v1668_v44, %s7348_s6 }
0x117a   :  { %v1690_v46 = vpop.permute.xlu0 %1689 }
0x117b   :  { %v1692_v47 = vmul.f32 %v7110_v41, %v1690_v46 }
0x117d   :  { %1699 = vrot.lane.b32.xlu0 %v1692_v47, %s7348_s6 }
0x11d4   :  { %v1695_v25 = vpop.permute.xlu1 %1694 }
0x11d5   :  { %1697 = vst.msk [vmem:[#allocation2 + $0x28] sm:$0xff] %vm241_vm11, %v1695_v25  ;;  %6225 = vmatmul.mubr.msk.f32.vlgmr.msra.gmra.mrb[26].mxu1 %vm241_vm11, %v1695_v25 }
0x11d6   :  { %6776 = vmatpush3.bf16.msra.mxu1 %v7445_v36  ;;  %6246 = vmatprep.mubr.msk.f32.mxu1 %vm7346_vm10, %v7345_v32 }
0x11d7   :  { %6777 = vmatprep.subr.bf16.mxu1 %v7344_v22 }
0x11da   :  { %6779 = vmatpush3.bf16.msra.mxu1 %v7469_v50 }
0x11ef   :  { %v1700_v48 = vpop.permute.xlu0 %1699 }
0x11f0   :  { %1702 = vst.msk [vmem:[#allocation3 + $0x10] sm:$0xff] %vm241_vm11, %v1700_v48  ;;  %6236 = vmatmul.mubr.msk.f32.vlgmr.msra.gmra.mrb[22].mxu0 %vm241_vm11, %v1700_v48 }
0x11f1   :  { %6782 = vmatpush3.bf16.msra.mxu0 %v7490_v56  ;;  %6257 = vmatprep.mubr.msk.f32.mxu0 %vm7346_vm10, %v7345_v32 }
0x11f2   :  { %6783 = vmatprep.subr.bf16.mxu0 %v7344_v22 }
0x11f5   :  { %6785 = vmatpush3.bf16.msra.mxu0 %v7500_v59 }
0x12a8   :  { %v1771_v36 = vpop.f32.mrb[26].mxu1 }
0x12a9   :  { %v1775_v49 = vadd.f32 %v1771_v36, %v7555_v29  ;;  %v6226_v51 = vpop.f32.mrb[27].mxu1 }
0x12aa   :  { %v2128_v51 = vld [vmem:[%s8308_s2 + $0x118] sm:$0xff] }
0x12ab   :  { %7115 = vtanh.f32 %v1775_v49  ;;  %v5594_v54 = vmul.f32 -1.442695, %v1775_v49 }
0x12b5   :  { %v7116_v50 = vpop.eup %7115 }
0x12b6   :  { %1858 = vrot.lane.b32.xlu1 %v7116_v50, %s7347_s30  ;;  %v2129_v50 = vld [vmem:[%s8308_s2 + $0x120] sm:$0xff] }
0x12c3   :  { %v1844_v52 = vpop.f32.mrb[22].mxu0 }
0x12c4   :  { %v1848_v39 = vadd.f32 %v1844_v52, %v7560_v34  ;;  %v6237_v53 = vpop.f32.mrb[23].mxu0  ;;  %v2115_v52 = vld [vmem:[%s8308_s2 + $0xb0] sm:$0xff] }
0x12c5   :  { %v2116_v53 = vld [vmem:[%s8308_s2 + $0xb8] sm:$0xff] }
0x12c6   :  { %7117 = vtanh.f32 %v1848_v39  ;;  %v5595_v57 = vmul.f32 -1.442695, %v1848_v39  ;;  %v6802_v39 = vpack.c.bf16 %v2129_v50, %v2128_v51 }
0x12c7   :  { %7119 = vpow2.f32 %v5594_v54  ;;  %v2130_v54 = vld [vmem:[%s8308_s2 + $0x128] sm:$0xff] }
0x12c8   :  { %6803 = vmatprep.subr.bf16.mxu0 %v6802_v39 }
0x12d0   :  { %v7118_v56 = vpop.eup %7117 }
0x12d1   :  { %1882 = vrot.lane.b32.xlu0 %v7118_v56, %s7347_s30  ;;  %v7120_v55 = vpop.eup %7119  ;;  %v6786_v56 = vpack.c.bf16 %v2116_v53, %v2115_v52 }
0x12d2   :  { %v1852_v59 = vadd.f32 1.0, %v7120_v55  ;;  %v2131_v55 = vld [vmem:[%s8308_s2 + $0x130] sm:$0xff] }
0x12d3   :  { %6787 = vmatprep.subr.bf16.mxu1 %v6786_v56 }
0x12d4   :  { %7121 = vrcp.f32 %v1852_v59  ;;  %v2117_v59 = vld [vmem:[%s8308_s2 + $0xc0] sm:$0xff] }
0x12d5   :  { %7123 = vpow2.f32 %v5595_v57  ;;  %v6806_v57 = vpack.c.bf16 %v2131_v55, %v2130_v54 }
0x12de   :  { %v7122_v29 = vpop.eup %7121 }
0x12df   :  { %v7124_v61 = vpop.eup %7123  ;;  %v1856_v1 = vmul.f32 %v7122_v29, %v1662_v31 }
0x12e0   :  { %v1876_v62 = vadd.f32 1.0, %v7124_v61  ;;  %v2125_v61 = vld [vmem:[%s8308_s2 + $0x100] sm:$0xff] }
0x12e2   :  { %7125 = vrcp.f32 %v1876_v62 }
0x12ec   :  { %v7126_v34 = vpop.eup %7125 }
0x12ed   :  { %v1880_v4 = vmul.f32 %v7126_v34, %v1686_v40 }
0x1328   :  { %v1859_v58 = vpop.permute.xlu1 %1858 }
0x1329   :  { %v1861_v60 = vmul.f32 %v7122_v29, %v1859_v58 }
0x132b   :  { %1863 = vrot.lane.b32.xlu1 %v1861_v60, %s7347_s30  ;;  %v2124_v60 = vld [vmem:[%s8308_s2 + $0xf8] sm:$0xff] }
0x132c   :  { %v6810_v62 = vpack.c.bf16 %v2125_v61, %v2124_v60 }
0x1343   :  { %v1883_v63 = vpop.permute.xlu0 %1882 }
0x1344   :  { %v1885_v0 = vmul.f32 %v7126_v34, %v1883_v63 }
0x1346   :  { %1887 = vrot.lane.b32.xlu0 %v1885_v0, %s7347_s30  ;;  %v2111_v0 = vld [vmem:[%s8308_s2 + $0x90] sm:$0xff] }
0x139d   :  { %v1864_v2 = vpop.permute.xlu1 %1863 }
0x139e   :  { %v1866_v18 = vadd.f32 %v1864_v2, %v1856_v1  ;;  %v2112_v1 = vld [vmem:[%s8308_s2 + $0x98] sm:$0xff] }
0x139f   :  { %v6794_v2 = vpack.c.bf16 %v2112_v1, %v2111_v0 }
0x13a0   :  { %7127 = vtanh.f32 %v1866_v18 }
0x13aa   :  { %v7128_v3 = vpop.eup %7127 }
0x13ab   :  { %1869 = vrot.lane.b32.xlu1 %v7128_v3, %s7347_s30 }
0x13b8   :  { %v1888_v5 = vpop.permute.xlu0 %1887 }
0x13b9   :  { %v1890_v6 = vadd.f32 %v1888_v5, %v1880_v4  ;;  %v2126_v4 = vld [vmem:[%s8308_s2 + $0x108] sm:$0xff]  ;;  %v2127_v5 = vld [vmem:[%s8308_s2 + $0x110] sm:$0xff] }
0x13bb   :  { %7129 = vtanh.f32 %v1890_v6 }
0x13c5   :  { %v7130_v45 = vpop.eup %7129 }
0x13c6   :  { %1893 = vrot.lane.b32.xlu0 %v7130_v45, %s7347_s30  ;;  %v6814_v45 = vpack.c.bf16 %v2127_v5, %v2126_v4 }
0x141d   :  { %v1870_v7 = vpop.permute.xlu1 %1869 }
0x141e   :  { %v1872_v8 = vmul.f32 %v7122_v29, %v1870_v7  ;;  %v2118_v29 = vld [vmem:[%s8308_s2 + $0xc8] sm:$0xff] }
0x141f   :  { %v6790_v58 = vpack.c.bf16 %v2118_v29, %v2117_v59 }
0x1420   :  { %1898 = vrot.lane.b32.xlu1 %v1872_v8, %s7348_s6  ;;  %v2113_v8 = vld [vmem:[%s8308_s2 + $0xa0] sm:$0xff] }
0x1438   :  { %v1894_v9 = vpop.permute.xlu0 %1893 }
0x1439   :  { %v1896_v10 = vmul.f32 %v7126_v34, %v1894_v9  ;;  %v2114_v9 = vld [vmem:[%s8308_s2 + $0xa8] sm:$0xff] }
0x143b   :  { %1903 = vrot.lane.b32.xlu0 %v1896_v10, %s7348_s6  ;;  %v2147_v10 = vld [vmem:[#allocation3 + $0x10] sm:$0xff] }
0x1492   :  { %v1899_v11 = vpop.permute.xlu1 %1898 }
0x1493   :  { %1901 = vst.msk [vmem:[#allocation2 + $0x30] sm:$0xff] %vm241_vm11, %v1899_v11  ;;  %6247 = vmatmul.mubr.msk.f32.vlgmr.msra.gmra.mrb[28].mxu1 %vm241_vm11, %v1899_v11  ;;  %v6798_v11 = vpack.c.bf16 %v2114_v9, %v2113_v8 }
0x1494   :  { %6789 = vmatpush3.bf16.msra.mxu1 %v6786_v56 }
0x1495   :  { %6791 = vmatprep.subr.bf16.mxu1 %v6790_v58 }
0x1498   :  { %6793 = vmatpush3.bf16.msra.mxu1 %v6790_v58 }
0x1499   :  { %6795 = vmatprep.subr.bf16.mxu1 %v6794_v2 }
0x14ad   :  { %v1904_v12 = vpop.permute.xlu0 %1903 }
0x14ae   :  { %1906 = vst.msk [vmem:[#allocation3 + $0x8] sm:$0xff] %vm241_vm11, %v1904_v12  ;;  %6258 = vmatmul.mubr.msk.f32.vlgmr.msra.gmra.mrb[24].mxu0 %vm241_vm11, %v1904_v12  ;;  %v2148_v12 = vld [vmem:[#allocation3 + $0x18] sm:$0xff] }
0x14af   :  { %6805 = vmatpush3.bf16.msra.mxu0 %v6802_v39 }
0x14b0   :  { %6807 = vmatprep.subr.bf16.mxu0 %v6806_v57 }
0x14b3   :  { %6809 = vmatpush3.bf16.msra.mxu0 %v6806_v57 }
0x14b4   :  { %6811 = vmatprep.subr.bf16.mxu0 %v6810_v62 }
0x14b5   :  { %v2146_v7 = vld [vmem:[#allocation3 + $0x8] sm:$0xff] }
0x1566   :  { %v1975_v14 = vpop.f32.mrb[28].mxu1 }
0x1567   :  { %v1979_v15 = vadd.f32 %v1975_v14, %v7553_v27  ;;  %v6248_v16 = vpop.f32.mrb[29].mxu1  ;;  %v2149_v14 = vld [vmem:[#allocation3 + $0x20] sm:$0xff] }
0x1568   :  { %v2151_v16 = vld [vmem:[#allocation3 + $0x30] sm:$0xff] }
0x1569   :  { %7131 = vtanh.f32 %v1979_v15  ;;  %v5598_v24 = vmul.f32 -1.442695, %v1979_v15  ;;  %v2150_v15 = vld [vmem:[#allocation3 + $0x28] sm:$0xff] }
0x1573   :  { %v7132_v17 = vpop.eup %7131 }
0x1574   :  { %2062 = vrot.lane.b32.xlu1 %v7132_v17, %s7347_s30  ;;  %v2132_v17 = vld [vmem:[%s8308_s2 + $0x138] sm:$0xff] }
0x1581   :  { %v2048_v23 = vpop.f32.mrb[24].mxu0 }
0x1582   :  { %v2052_v20 = vadd.f32 %v2048_v23, %v7563_v37  ;;  %v6259_v19 = vpop.f32.mrb[25].mxu0  ;;  %v2133_v23 = vld [vmem:[%s8308_s2 + $0x140] sm:$0xff] }
0x1583   :  { %v2137_v19 = vld [vmem:[#allocation2] sm:$0xff] }
0x1584   :  { %7133 = vtanh.f32 %v2052_v20  ;;  %v5599_v43 = vmul.f32 -1.442695, %v2052_v20  ;;  %v2152_v20 = vld [vmem:[#allocation3 + $0x38] sm:$0xff] }
0x1585   :  { %7135 = vpow2.f32 %v5598_v24  ;;  %v2120_v24 = vld [vmem:[%s8308_s2 + $0xd8] sm:$0xff] }
0x158e   :  { %v7134_v21 = vpop.eup %7133 }
0x158f   :  { %2086 = vrot.lane.b32.xlu0 %v7134_v21, %s7347_s30  ;;  %v7136_v41 = vpop.eup %7135  ;;  %v2119_v21 = vld [vmem:[%s8308_s2 + $0xd0] sm:$0xff] }
0x1590   :  { %v2056_v26 = vadd.f32 1.0, %v7136_v41  ;;  %v7840_v41 = vpack.c.bf16 %v2133_v23, %v2132_v17 }
0x1592   :  { %7137 = vrcp.f32 %v2056_v26  ;;  %v2138_v26 = vld [vmem:[#allocation2 + $0x8] sm:$0xff] }
0x1593   :  { %7139 = vpow2.f32 %v5599_v43  ;;  %v2134_v43 = vld [vmem:[%s8308_s2 + $0x148] sm:$0xff] }
0x159c   :  { %v7138_v27 = vpop.eup %7137 }
0x159d   :  { %v7140_v31 = vpop.eup %7139  ;;  %v2060_v40 = vmul.f32 %v7138_v27, %v1866_v18 }
0x159e   :  { %v2080_v33 = vadd.f32 1.0, %v7140_v31  ;;  %v2121_v31 = vld [vmem:[%s8308_s2 + $0xe0] sm:$0xff] }
0x15a0   :  { %7141 = vrcp.f32 %v2080_v33  ;;  %v2122_v33 = vld [vmem:[%s8308_s2 + $0xe8] sm:$0xff] }
0x15aa   :  { %v7142_v37 = vpop.eup %7141 }
0x15ab   :  { %v2084_v46 = vmul.f32 %v7142_v37, %v1890_v6 }
0x15e6   :  { %v2063_v28 = vpop.permute.xlu1 %2062 }
0x15e7   :  { %v2065_v30 = vmul.f32 %v7138_v27, %v2063_v28  ;;  %v7848_v28 = vpack.c.bf16 %v2120_v24, %v2119_v21 }
0x15e9   :  { %2067 = vrot.lane.b32.xlu1 %v2065_v30, %s7347_s30  ;;  %v2139_v30 = vld [vmem:[#allocation2 + $0x10] sm:$0xff] }
0x1601   :  { %v2087_v35 = vpop.permute.xlu0 %2086 }
0x1602   :  { %v2089_v38 = vmul.f32 %v7142_v37, %v2087_v35  ;;  %v2140_v35 = vld [vmem:[#allocation2 + $0x18] sm:$0xff] }
0x1604   :  { %2091 = vrot.lane.b32.xlu0 %v2089_v38, %s7347_s30  ;;  %v7865_v38 = vpack.c.bf16 %v2122_v33, %v2121_v31 }
0x165b   :  { %v2068_v42 = vpop.permute.xlu1 %2067 }
0x165c   :  { %v2070_v13 = vadd.f32 %v2068_v42, %v2060_v40  ;;  %v2141_v40 = vld [vmem:[#allocation2 + $0x20] sm:$0xff]  ;;  %v2142_v42 = vld [vmem:[#allocation2 + $0x28] sm:$0xff] }
0x165e   :  { %7143 = vtanh.f32 %v2070_v13  ;;  %v2143_v13 = vld [vmem:[#allocation2 + $0x30] sm:$0xff] }
0x1668   :  { %v7144_v44 = vpop.eup %7143 }
0x1669   :  { %2073 = vrot.lane.b32.xlu1 %v7144_v44, %s7347_s30 }
0x1676   :  { %v2092_v47 = vpop.permute.xlu0 %2091 }
0x1677   :  { %v2094_v25 = vadd.f32 %v2092_v47, %v2084_v46  ;;  %v5616_v46 = vld [vmem:[%s8308_s2 + $0xf0] ss:$0 sm:$0xff]  ;;  %v5633_v47 = vld [vmem:[%s8308_s2 + $0x158] ss:$0 sm:$0xff] }
0x1679   :  { %7145 = vtanh.f32 %v2094_v25 }
0x1683   :  { %v7146_v48 = vpop.eup %7145 }
0x1684   :  { %2097 = vrot.lane.b32.xlu0 %v7146_v48, %s7347_s30 }
0x16db   :  { %v2074_v36 = vpop.permute.xlu1 %2073 }
0x16dc   :  { %v2076_v49 = vmul.f32 %v7138_v27, %v2074_v36  ;;  %v2135_v27 = vld [vmem:[%s8308_s2 + $0x150] sm:$0xff] }
0x16de   :  { %2102 = vrot.lane.b32.xlu1 %v2076_v49, %s7348_s6 }
0x16f6   :  { %v2098_v34 = vpop.permute.xlu0 %2097 }
0x16f7   :  { %v2100_v63 = vmul.f32 %v7142_v37, %v2098_v34  ;;  %v7862_v37 = vpack.c.bf16 %v2135_v27, %v2134_v43 }
0x16f9   :  { %2107 = vrot.lane.b32.xlu0 %v2100_v63, %s7348_s6 }
0x1750   :  { %v2103_v18 = vpop.permute.xlu1 %2102 }
0x1751   :  { %2105 = vst.msk [vmem:[#allocation2 + $0x38] sm:$0xff] %vm241_vm11, %v2103_v18 }
0x1758   :  { %v2144_v44 = vld [vmem:[#allocation2 + $0x38] sm:$0xff] }
0x176b   :  { %v2108_v3 = vpop.permute.xlu0 %2107 }
0x176c   :  { %2110 = vst.msk [vmem:[#allocation3] sm:$0xff] %vm241_vm11, %v2108_v3 }
0x1773   :  { %v2145_v6 = vld [vmem:[#allocation3] sm:$0xff] }
0x1774   :  { %6268 = vmatprep.mubr.msk.f32.mxu1 %vm241_vm11, %v2145_v6  ;;  %6308 = vmatprep.mubr.msk.f32.mxu0 %vm241_vm11, %v2145_v6 }
0x1775   :  { %6269 = vmatmul.mubr.msk.f32.vlgmr.msra.gmra.mrb[30].mxu1 %vm241_vm11, %v2146_v7  ;;  %6309 = vmatmul.mubr.msk.f32.vlgmr.msra.gmra.mrb[26].mxu0 %vm241_vm11, %v2146_v7 }
0x1776   :  { %6813 = vmatpush3.bf16.msra.mxu0 %v6810_v62  ;;  %6271 = vmatprep.mubr.msk.f32.mxu1 %vm241_vm11, %v2147_v10 }
0x1777   :  { %6311 = vmatprep.mubr.msk.f32.mxu0 %vm241_vm11, %v2147_v10  ;;  %6815 = vmatprep.subr.bf16.mxu0 %v6814_v45 }
0x1778   :  { %6797 = vmatpush3.bf16.msra.mxu1 %v6794_v2 }
0x1779   :  { %6272 = vmatmul.mubr.msk.f32.gmra.mrb[32].mxu1 %vm241_vm11, %v2148_v12  ;;  %6312 = vmatmul.mubr.msk.f32.gmra.mrb[28].mxu0 %vm241_vm11, %v2148_v12 }
0x177a   :  { %6274 = vmatprep.mubr.msk.f32.mxu1 %vm241_vm11, %v2149_v14  ;;  %6314 = vmatprep.mubr.msk.f32.mxu0 %vm241_vm11, %v2149_v14 }
0x177b   :  { %6817 = vmatpush3.bf16.msra.mxu0 %v6814_v45  ;;  %6799 = vmatprep.subr.bf16.mxu1 %v6798_v11 }
0x177c   :  { %6801 = vmatpush3.bf16.msra.mxu1 %v6798_v11  ;;  %6824 = vmatprep.subr.bf16.mxu0 %v7344_v22 }
0x177d   :  { %6275 = vmatmul.mubr.msk.f32.gmra.mrb[34].mxu1 %vm241_vm11, %v2150_v15  ;;  %6315 = vmatmul.mubr.msk.f32.gmra.mrb[30].mxu0 %vm241_vm11, %v2150_v15 }
0x177e   :  { %6277 = vmatprep.mubr.msk.f32.mxu1 %vm241_vm11, %v2151_v16  ;;  %6317 = vmatprep.mubr.msk.f32.mxu0 %vm241_vm11, %v2151_v16 }
0x177f   :  { %6818 = vmatprep.subr.bf16.mxu1 %v7344_v22 }
0x1781   :  { %6278 = vmatmul.mubr.msk.f32.gmra.mrb[36].mxu1 %vm241_vm11, %v2152_v20  ;;  %6318 = vmatmul.mubr.msk.f32.gmra.mrb[32].mxu0 %vm241_vm11, %v2152_v20 }
0x1782   :  { %6288 = vmatprep.mubr.msk.f32.mxu1 %vm241_vm11, %v2137_v19  ;;  %6328 = vmatprep.mubr.msk.f32.mxu0 %vm241_vm11, %v2137_v19 }
0x1785   :  { %6289 = vmatmul.mubr.msk.f32.vlgmr.msra.gmra.mrb[30].mxu1 %vm241_vm11, %v2138_v26  ;;  %6329 = vmatmul.mubr.msk.f32.vlgmr.msra.gmra.mrb[26].mxu0 %vm241_vm11, %v2138_v26 }
0x1786   :  { %6826 = vmatpush3.bf16.msra.mxu0 %v7840_v41  ;;  %6291 = vmatprep.mubr.msk.f32.mxu1 %vm241_vm11, %v2139_v30 }
0x1787   :  { %6331 = vmatprep.mubr.msk.f32.mxu0 %vm241_vm11, %v2139_v30  ;;  %6827 = vmatprep.subr.bf16.mxu0 %v7344_v22 }
0x1788   :  { %6820 = vmatpush3.bf16.msra.mxu1 %v7848_v28 }
0x1789   :  { %6292 = vmatmul.mubr.msk.f32.gmra.mrb[32].mxu1 %vm241_vm11, %v2140_v35  ;;  %6332 = vmatmul.mubr.msk.f32.gmra.mrb[28].mxu0 %vm241_vm11, %v2140_v35 }
0x178a   :  { %6294 = vmatprep.mubr.msk.f32.mxu1 %vm241_vm11, %v2141_v40  ;;  %6334 = vmatprep.mubr.msk.f32.mxu0 %vm241_vm11, %v2141_v40 }
0x178b   :  { %6829 = vmatpush3.bf16.msra.mxu0 %v7862_v37  ;;  %6821 = vmatprep.subr.bf16.mxu1 %v7344_v22 }
0x178c   :  { %6823 = vmatpush3.bf16.msra.mxu1 %v7865_v38  ;;  %6836 = vmatprep.subr.bf16.mxu0 %v7344_v22 }
0x178d   :  { %6295 = vmatmul.mubr.msk.f32.gmra.mrb[34].mxu1 %vm241_vm11, %v2142_v42  ;;  %6335 = vmatmul.mubr.msk.f32.gmra.mrb[30].mxu0 %vm241_vm11, %v2142_v42 }
0x178e   :  { %6297 = vmatprep.mubr.msk.f32.mxu1 %vm241_vm11, %v2143_v13  ;;  %6337 = vmatprep.mubr.msk.f32.mxu0 %vm241_vm11, %v2143_v13 }
0x178f   :  { %6830 = vmatprep.subr.bf16.mxu1 %v7344_v22 }
0x1791   :  { %6298 = vmatmul.mubr.msk.f32.gmra.mrb[36].mxu1 %vm241_vm11, %v2144_v44  ;;  %6338 = vmatmul.mubr.msk.f32.gmra.mrb[32].mxu0 %vm241_vm11, %v2144_v44 }
0x1792   :  { %6348 = vmatprep.mubr.msk.f32.mxu1 %vm7346_vm10, %v7345_v32  ;;  %6359 = vmatprep.mubr.msk.f32.mxu0 %vm7346_vm10, %v7345_v32 }
0x1795   :  { %6349 = vmatmul.mubr.f32.vlgmr.msra.gmra.mrb[38].mxu1 %v7345_v32  ;;  %6360 = vmatmul.mubr.f32.vlgmr.msra.gmra.mrb[34].mxu0 %v7345_v32 }
0x1796   :  { %6832 = vmatpush3.bf16.msra.mxu1 %v7848_v28  ;;  %6838 = vmatpush3.bf16.msra.mxu0 %v7840_v41 }
0x1797   :  { %6833 = vmatprep.subr.bf16.mxu1 %v7344_v22  ;;  %6839 = vmatprep.subr.bf16.mxu0 %v7344_v22 }
0x1798   :  { %6381 = vmatprep.mubr.msk.f32.mxu0 %vm7346_vm10, %v7345_v32  ;;  %6370 = vmatprep.mubr.msk.f32.mxu1 %vm7346_vm10, %v7345_v32 }
0x179a   :  { %6835 = vmatpush3.bf16.msra.mxu1 %v7865_v38  ;;  %6841 = vmatpush3.bf16.msra.mxu0 %v7862_v37 }
0x179b   :  { %6842 = vmatprep.subr.bf16.mxu1 %v7344_v22  ;;  %6848 = vmatprep.subr.bf16.mxu0 %v7344_v22 }
0x1858   :  { %v6290_v25 = vpop.f32.mrb[30].mxu1  ;;  %v6330_v48 = vpop.f32.mrb[26].mxu0 }
0x1859   :  { %v7906_v36 = vadd.f32 %v6290_v25, %v5616_v46  ;;  %v7908_v49 = vadd.f32 %v6330_v48, %v5633_v47  ;;  %v2372_v51 = vpop.f32.mrb[31].mxu1  ;;  %v2594_v50 = vpop.f32.mrb[27].mxu0 }
0x185a   :  { %v7910_v52 = vadd.f32 %v5633_v47, %v2594_v50  ;;  %v2415_v7 = vadd.f32 %v5616_v46, %v2372_v51 }
0x185c   :  { %v6293_v39 = vpop.f32.mrb[32].mxu1  ;;  %v6333_v53 = vpop.f32.mrb[28].mxu0 }
0x185d   :  { %v7912_v56 = vadd.f32 %v6293_v39, %v5616_v46  ;;  %v7914_v54 = vadd.f32 %v6333_v53, %v5633_v47  ;;  %v2382_v55 = vpop.f32.mrb[33].mxu1  ;;  %v2604_v59 = vpop.f32.mrb[29].mxu0 }
0x185e   :  { %v7916_v57 = vadd.f32 %v5616_v46, %v2382_v55  ;;  %v7918_v29 = vadd.f32 %v5633_v47, %v2604_v59 }
0x1860   :  { %v6296_v58 = vpop.f32.mrb[34].mxu1  ;;  %v6336_v60 = vpop.f32.mrb[30].mxu0 }
0x1861   :  { %v7920_v61 = vadd.f32 %v6296_v58, %v5616_v46  ;;  %v7922_v62 = vadd.f32 %v6336_v60, %v5633_v47  ;;  %v2392_v34 = vpop.f32.mrb[35].mxu1  ;;  %v2614_v63 = vpop.f32.mrb[31].mxu0 }
0x1862   :  { %v7924_v0 = vadd.f32 %v5616_v46, %v2392_v34  ;;  %v7926_v1 = vadd.f32 %v5633_v47, %v2614_v63 }
0x1864   :  { %v6299_v2 = vpop.f32.mrb[36].mxu1  ;;  %v6339_v18 = vpop.f32.mrb[32].mxu0 }
0x1865   :  { %v7928_v3 = vadd.f32 %v6299_v2, %v5616_v46  ;;  %v2402_v4 = vpop.f32.mrb[37].mxu1  ;;  %v2624_v5 = vpop.f32.mrb[33].mxu0  ;;  %v2644_v8 = vadd.f32 %v6339_v18, %v5633_v47 }
0x1866   :  { %v7930_v6 = vadd.f32 %v5616_v46, %v2402_v4  ;;  %v7932_v45 = vadd.f32 %v5633_v47, %v2624_v5 }
0x1868   :  { %v2711_v9 = vpop.f32.mrb[38].mxu1  ;;  %v2782_v10 = vpop.f32.mrb[34].mxu0 }
0x1869   :  { %v2715_v11 = vadd.f32 %v2711_v9, %v2415_v7  ;;  %v2786_v12 = vadd.f32 %v2782_v10, %v2644_v8  ;;  %v6361_v14 = vpop.f32.mrb[35].mxu0  ;;  %v6350_v15 = vpop.f32.mrb[39].mxu1 }
0x186b   :  { %7147 = vtanh.f32 %v2715_v11  ;;  %v5634_v23 = vmul.f32 -1.442695, %v2715_v11  ;;  %v5635_v20 = vmul.f32 -1.442695, %v2786_v12 }
0x186c   :  { %7149 = vtanh.f32 %v2786_v12 }
0x186d   :  { %7151 = vpow2.f32 %v5634_v23 }
0x186e   :  { %7153 = vpow2.f32 %v5635_v20 }
0x1875   :  { %v7148_v16 = vpop.eup %7147 }
0x1876   :  { %v7150_v17 = vpop.eup %7149  ;;  %2796 = vrot.lane.b32.xlu1 %v7148_v16, %s7347_s30 }
0x1877   :  { %2820 = vrot.lane.b32.xlu0 %v7150_v17, %s7347_s30  ;;  %v7152_v19 = vpop.eup %7151 }
0x1878   :  { %v7154_v21 = vpop.eup %7153  ;;  %v2790_v24 = vadd.f32 1.0, %v7152_v19 }
0x1879   :  { %v2814_v26 = vadd.f32 1.0, %v7154_v21 }
0x187a   :  { %7155 = vrcp.f32 %v2790_v24 }
0x187b   :  { %7157 = vrcp.f32 %v2814_v26 }
0x1884   :  { %v7156_v43 = vpop.eup %7155 }
0x1885   :  { %v7158_v30 = vpop.eup %7157  ;;  %v2794_v40 = vmul.f32 0.0, %v7156_v43 }
0x1886   :  { %v2818_v42 = vmul.f32 0.0, %v7158_v30 }
0x18e8   :  { %v2797_v27 = vpop.permute.xlu1 %2796 }
0x18e9   :  { %v2821_v31 = vpop.permute.xlu0 %2820  ;;  %v2799_v33 = vmul.f32 %v7156_v43, %v2797_v27 }
0x18ea   :  { %v2823_v35 = vmul.f32 %v7158_v30, %v2821_v31 }
0x18eb   :  { %2801 = vrot.lane.b32.xlu1 %v2799_v33, %s7347_s30 }
0x18ec   :  { %2825 = vrot.lane.b32.xlu0 %v2823_v35, %s7347_s30 }
0x195d   :  { %v2802_v13 = vpop.permute.xlu1 %2801 }
0x195e   :  { %v2826_v44 = vpop.permute.xlu0 %2825  ;;  %v2804_v46 = vadd.f32 %v2802_v13, %v2794_v40 }
0x195f   :  { %v2828_v47 = vadd.f32 %v2826_v44, %v2818_v42 }
0x1960   :  { %7159 = vtanh.f32 %v2804_v46 }
0x1961   :  { %7161 = vtanh.f32 %v2828_v47 }
0x196a   :  { %v7160_v25 = vpop.eup %7159 }
0x196b   :  { %v7162_v48 = vpop.eup %7161  ;;  %2807 = vrot.lane.b32.xlu1 %v7160_v25, %s7347_s30 }
0x196c   :  { %2831 = vrot.lane.b32.xlu0 %v7162_v48, %s7347_s30 }
0x19dd   :  { %v2808_v51 = vpop.permute.xlu1 %2807 }
0x19de   :  { %v2832_v50 = vpop.permute.xlu0 %2831  ;;  %v2810_v39 = vmul.f32 %v7156_v43, %v2808_v51 }
0x19df   :  { %v2834_v53 = vmul.f32 %v7158_v30, %v2832_v50 }
0x19e0   :  { %2836 = vrot.lane.b32.xlu1 %v2810_v39, %s7348_s6 }
0x19e1   :  { %2841 = vrot.lane.b32.xlu0 %v2834_v53, %s7348_s6 }
0x1a52   :  { %v2837_v55 = vpop.permute.xlu1 %2836 }
0x1a53   :  { %v2842_v59 = vpop.permute.xlu0 %2841  ;;  %2839 = vst.msk [vmem:[#allocation4] sm:$0xff] %vm241_vm11, %v2837_v55  ;;  %6371 = vmatmul.mubr.msk.f32.vlgmr.msra.gmra.mrb[40].mxu1 %vm241_vm11, %v2837_v55 }
0x1a54   :  { %2844 = vst.msk [vmem:[#allocation5 + $0x38] sm:$0xff] %vm241_vm11, %v2842_v59  ;;  %6382 = vmatmul.mubr.msk.f32.vlgmr.msra.gmra.mrb[36].mxu0 %vm241_vm11, %v2842_v59  ;;  %6844 = vmatpush3.bf16.msra.mxu1 %v7848_v28 }
0x1a55   :  { %6850 = vmatpush3.bf16.msra.mxu0 %v7840_v41  ;;  %6845 = vmatprep.subr.bf16.mxu1 %v7344_v22 }
0x1a56   :  { %6851 = vmatprep.subr.bf16.mxu0 %v7344_v22  ;;  %6403 = vmatprep.mubr.msk.f32.mxu0 %vm7346_vm10, %v7345_v32 }
0x1a57   :  { %6392 = vmatprep.mubr.msk.f32.mxu1 %vm7346_vm10, %v7345_v32 }
0x1a58   :  { %6847 = vmatpush3.bf16.msra.mxu1 %v7865_v38 }
0x1a59   :  { %6853 = vmatpush3.bf16.msra.mxu0 %v7862_v37  ;;  %6854 = vmatprep.subr.bf16.mxu1 %v7344_v22 }
0x1a5a   :  { %6860 = vmatprep.subr.bf16.mxu0 %v7344_v22 }
0x1b26   :  { %v2913_v58 = vpop.f32.mrb[40].mxu1 }
0x1b27   :  { %v2917_v60 = vadd.f32 %v2913_v58, %v7906_v36  ;;  %v2986_v34 = vpop.f32.mrb[36].mxu0  ;;  %v6372_v63 = vpop.f32.mrb[41].mxu1 }
0x1b28   :  { %v2990_v2 = vadd.f32 %v2986_v34, %v7932_v45  ;;  %v6383_v18 = vpop.f32.mrb[37].mxu0 }
0x1b29   :  { %7163 = vtanh.f32 %v2917_v60  ;;  %v5638_v7 = vmul.f32 -1.442695, %v2917_v60 }
0x1b2a   :  { %7165 = vtanh.f32 %v2990_v2  ;;  %v5639_v8 = vmul.f32 -1.442695, %v2990_v2 }
0x1b2b   :  { %7167 = vpow2.f32 %v5638_v7 }
0x1b2c   :  { %7169 = vpow2.f32 %v5639_v8 }
0x1b33   :  { %v7164_v4 = vpop.eup %7163 }
0x1b34   :  { %v7166_v5 = vpop.eup %7165  ;;  %3000 = vrot.lane.b32.xlu1 %v7164_v4, %s7347_s30 }
0x1b35   :  { %3024 = vrot.lane.b32.xlu0 %v7166_v5, %s7347_s30  ;;  %v7168_v9 = vpop.eup %7167 }
0x1b36   :  { %v7170_v10 = vpop.eup %7169  ;;  %v2994_v36 = vadd.f32 1.0, %v7168_v9 }
0x1b37   :  { %v3018_v11 = vadd.f32 1.0, %v7170_v10 }
0x1b38   :  { %7171 = vrcp.f32 %v2994_v36 }
0x1b39   :  { %7173 = vrcp.f32 %v3018_v11 }
0x1b42   :  { %v7172_v45 = vpop.eup %7171 }
0x1b43   :  { %v7174_v14 = vpop.eup %7173  ;;  %v2998_v23 = vmul.f32 %v7172_v45, %v2804_v46 }
0x1b44   :  { %v3022_v20 = vmul.f32 %v7174_v14, %v2828_v47 }
0x1ba6   :  { %v3001_v12 = vpop.permute.xlu1 %3000 }
0x1ba7   :  { %v3025_v15 = vpop.permute.xlu0 %3024  ;;  %v3003_v16 = vmul.f32 %v7172_v45, %v3001_v12 }
0x1ba8   :  { %v3027_v17 = vmul.f32 %v7174_v14, %v3025_v15 }
0x1ba9   :  { %3005 = vrot.lane.b32.xlu1 %v3003_v16, %s7347_s30 }
0x1baa   :  { %3029 = vrot.lane.b32.xlu0 %v3027_v17, %s7347_s30 }
0x1c1b   :  { %v3006_v19 = vpop.permute.xlu1 %3005 }
0x1c1c   :  { %v3030_v21 = vpop.permute.xlu0 %3029  ;;  %v3008_v24 = vadd.f32 %v3006_v19, %v2998_v23 }
0x1c1d   :  { %v3032_v26 = vadd.f32 %v3030_v21, %v3022_v20 }
0x1c1e   :  { %7175 = vtanh.f32 %v3008_v24 }
0x1c1f   :  { %7177 = vtanh.f32 %v3032_v26 }
0x1c28   :  { %v7176_v43 = vpop.eup %7175 }
0x1c29   :  { %v7178_v27 = vpop.eup %7177  ;;  %3011 = vrot.lane.b32.xlu1 %v7176_v43, %s7347_s30 }
0x1c2a   :  { %3035 = vrot.lane.b32.xlu0 %v7178_v27, %s7347_s30 }
0x1c9b   :  { %v3012_v30 = vpop.permute.xlu1 %3011 }
0x1c9c   :  { %v3036_v31 = vpop.permute.xlu0 %3035  ;;  %v3014_v33 = vmul.f32 %v7172_v45, %v3012_v30 }
0x1c9d   :  { %v3038_v35 = vmul.f32 %v7174_v14, %v3036_v31 }
0x1c9e   :  { %3040 = vrot.lane.b32.xlu1 %v3014_v33, %s7348_s6 }
0x1c9f   :  { %3045 = vrot.lane.b32.xlu0 %v3038_v35, %s7348_s6 }
0x1d10   :  { %v3041_v40 = vpop.permute.xlu1 %3040 }
0x1d11   :  { %v3046_v42 = vpop.permute.xlu0 %3045  ;;  %3043 = vst.msk [vmem:[#allocation4 + $0x8] sm:$0xff] %vm241_vm11, %v3041_v40  ;;  %6393 = vmatmul.mubr.msk.f32.vlgmr.msra.gmra.mrb[42].mxu1 %vm241_vm11, %v3041_v40 }
0x1d12   :  { %3048 = vst.msk [vmem:[#allocation5 + $0x30] sm:$0xff] %vm241_vm11, %v3046_v42  ;;  %6404 = vmatmul.mubr.msk.f32.vlgmr.msra.gmra.mrb[38].mxu0 %vm241_vm11, %v3046_v42  ;;  %6856 = vmatpush3.bf16.msra.mxu1 %v7848_v28 }
0x1d13   :  { %6862 = vmatpush3.bf16.msra.mxu0 %v7840_v41  ;;  %6857 = vmatprep.subr.bf16.mxu1 %v7344_v22 }
0x1d14   :  { %6863 = vmatprep.subr.bf16.mxu0 %v7344_v22  ;;  %6425 = vmatprep.mubr.msk.f32.mxu0 %vm7346_vm10, %v7345_v32 }
0x1d15   :  { %6414 = vmatprep.mubr.msk.f32.mxu1 %vm7346_vm10, %v7345_v32 }
0x1d16   :  { %6859 = vmatpush3.bf16.msra.mxu1 %v7865_v38 }
0x1d17   :  { %6865 = vmatpush3.bf16.msra.mxu0 %v7862_v37  ;;  %6866 = vmatprep.subr.bf16.mxu1 %v7344_v22 }
0x1d18   :  { %6872 = vmatprep.subr.bf16.mxu0 %v7344_v22 }
0x1de4   :  { %v3117_v13 = vpop.f32.mrb[42].mxu1 }
0x1de5   :  { %v3121_v44 = vadd.f32 %v3117_v13, %v7916_v57  ;;  %v3190_v46 = vpop.f32.mrb[38].mxu0  ;;  %v6394_v47 = vpop.f32.mrb[43].mxu1 }
0x1de6   :  { %v3194_v25 = vadd.f32 %v3190_v46, %v7922_v62  ;;  %v6405_v48 = vpop.f32.mrb[39].mxu0 }
0x1de7   :  { %7179 = vtanh.f32 %v3121_v44  ;;  %v5642_v39 = vmul.f32 -1.442695, %v3121_v44 }
0x1de8   :  { %7181 = vtanh.f32 %v3194_v25  ;;  %v5643_v53 = vmul.f32 -1.442695, %v3194_v25 }
0x1de9   :  { %7183 = vpow2.f32 %v5642_v39 }
0x1dea   :  { %7185 = vpow2.f32 %v5643_v53 }
0x1df1   :  { %v7180_v51 = vpop.eup %7179 }
0x1df2   :  { %v7182_v50 = vpop.eup %7181  ;;  %3204 = vrot.lane.b32.xlu1 %v7180_v51, %s7347_s30 }
0x1df3   :  { %3228 = vrot.lane.b32.xlu0 %v7182_v50, %s7347_s30  ;;  %v7184_v55 = vpop.eup %7183 }
0x1df4   :  { %v7186_v59 = vpop.eup %7185  ;;  %v3198_v57 = vadd.f32 1.0, %v7184_v55 }
0x1df5   :  { %v3222_v58 = vadd.f32 1.0, %v7186_v59 }
0x1df6   :  { %7187 = vrcp.f32 %v3198_v57 }
0x1df7   :  { %7189 = vrcp.f32 %v3222_v58 }
0x1e00   :  { %v7188_v62 = vpop.eup %7187 }
0x1e01   :  { %v7190_v34 = vpop.eup %7189  ;;  %v3202_v4 = vmul.f32 %v7188_v62, %v3008_v24 }
0x1e02   :  { %v3226_v5 = vmul.f32 %v7190_v34, %v3032_v26 }
0x1e64   :  { %v3205_v60 = vpop.permute.xlu1 %3204 }
0x1e65   :  { %v3229_v63 = vpop.permute.xlu0 %3228  ;;  %v3207_v2 = vmul.f32 %v7188_v62, %v3205_v60 }
0x1e66   :  { %v3231_v18 = vmul.f32 %v7190_v34, %v3229_v63 }
0x1e67   :  { %3209 = vrot.lane.b32.xlu1 %v3207_v2, %s7347_s30 }
0x1e68   :  { %3233 = vrot.lane.b32.xlu0 %v3231_v18, %s7347_s30 }
0x1ed9   :  { %v3210_v7 = vpop.permute.xlu1 %3209 }
0x1eda   :  { %v3234_v8 = vpop.permute.xlu0 %3233  ;;  %v3212_v9 = vadd.f32 %v3210_v7, %v3202_v4 }
0x1edb   :  { %v3236_v10 = vadd.f32 %v3234_v8, %v3226_v5 }
0x1edc   :  { %7191 = vtanh.f32 %v3212_v9 }
0x1edd   :  { %7193 = vtanh.f32 %v3236_v10 }
0x1ee6   :  { %v7192_v36 = vpop.eup %7191 }
0x1ee7   :  { %v7194_v11 = vpop.eup %7193  ;;  %3215 = vrot.lane.b32.xlu1 %v7192_v36, %s7347_s30 }
0x1ee8   :  { %3239 = vrot.lane.b32.xlu0 %v7194_v11, %s7347_s30 }
0x1f59   :  { %v3216_v45 = vpop.permute.xlu1 %3215 }
0x1f5a   :  { %v3240_v12 = vpop.permute.xlu0 %3239  ;;  %v3218_v14 = vmul.f32 %v7188_v62, %v3216_v45 }
0x1f5b   :  { %v3242_v15 = vmul.f32 %v7190_v34, %v3240_v12 }
0x1f5c   :  { %3244 = vrot.lane.b32.xlu1 %v3218_v14, %s7348_s6 }
0x1f5d   :  { %3249 = vrot.lane.b32.xlu0 %v3242_v15, %s7348_s6 }
0x1fce   :  { %v3245_v16 = vpop.permute.xlu1 %3244 }
0x1fcf   :  { %v3250_v17 = vpop.permute.xlu0 %3249  ;;  %3247 = vst.msk [vmem:[#allocation4 + $0x10] sm:$0xff] %vm241_vm11, %v3245_v16  ;;  %6415 = vmatmul.mubr.msk.f32.vlgmr.msra.gmra.mrb[44].mxu1 %vm241_vm11, %v3245_v16 }
0x1fd0   :  { %3252 = vst.msk [vmem:[#allocation5 + $0x28] sm:$0xff] %vm241_vm11, %v3250_v17  ;;  %6426 = vmatmul.mubr.msk.f32.vlgmr.msra.gmra.mrb[40].mxu0 %vm241_vm11, %v3250_v17  ;;  %6868 = vmatpush3.bf16.msra.mxu1 %v7848_v28 }
0x1fd1   :  { %6874 = vmatpush3.bf16.msra.mxu0 %v7840_v41  ;;  %6869 = vmatprep.subr.bf16.mxu1 %v7344_v22 }
0x1fd2   :  { %6875 = vmatprep.subr.bf16.mxu0 %v7344_v22  ;;  %6447 = vmatprep.mubr.msk.f32.mxu0 %vm7346_vm10, %v7345_v32 }
0x1fd3   :  { %6436 = vmatprep.mubr.msk.f32.mxu1 %vm7346_vm10, %v7345_v32 }
0x1fd4   :  { %6871 = vmatpush3.bf16.msra.mxu1 %v7865_v38 }
0x1fd5   :  { %6877 = vmatpush3.bf16.msra.mxu0 %v7862_v37  ;;  %6878 = vmatprep.subr.bf16.mxu1 %v7344_v22 }
0x1fd6   :  { %6884 = vmatprep.subr.bf16.mxu0 %v7344_v22 }
0x20a2   :  { %v3321_v23 = vpop.f32.mrb[44].mxu1 }
0x20a3   :  { %v3325_v20 = vadd.f32 %v3321_v23, %v7912_v56  ;;  %v3394_v19 = vpop.f32.mrb[40].mxu0  ;;  %v6416_v21 = vpop.f32.mrb[45].mxu1 }
0x20a4   :  { %v3398_v24 = vadd.f32 %v3394_v19, %v7926_v1  ;;  %v6427_v26 = vpop.f32.mrb[41].mxu0 }
0x20a5   :  { %7195 = vtanh.f32 %v3325_v20  ;;  %v5646_v30 = vmul.f32 -1.442695, %v3325_v20 }
0x20a6   :  { %7197 = vtanh.f32 %v3398_v24  ;;  %v5647_v31 = vmul.f32 -1.442695, %v3398_v24 }
0x20a7   :  { %7199 = vpow2.f32 %v5646_v30 }
0x20a8   :  { %7201 = vpow2.f32 %v5647_v31 }
0x20af   :  { %v7196_v43 = vpop.eup %7195 }
0x20b0   :  { %v7198_v27 = vpop.eup %7197  ;;  %3408 = vrot.lane.b32.xlu1 %v7196_v43, %s7347_s30 }
0x20b1   :  { %3432 = vrot.lane.b32.xlu0 %v7198_v27, %s7347_s30  ;;  %v7200_v33 = vpop.eup %7199 }
0x20b2   :  { %v7202_v35 = vpop.eup %7201  ;;  %v3402_v56 = vadd.f32 1.0, %v7200_v33 }
0x20b3   :  { %v3426_v40 = vadd.f32 1.0, %v7202_v35 }
0x20b4   :  { %7203 = vrcp.f32 %v3402_v56 }
0x20b5   :  { %7205 = vrcp.f32 %v3426_v40 }
0x20be   :  { %v7204_v1 = vpop.eup %7203 }
0x20bf   :  { %v7206_v13 = vpop.eup %7205  ;;  %v3406_v25 = vmul.f32 %v7204_v1, %v3212_v9 }
0x20c0   :  { %v3430_v48 = vmul.f32 %v7206_v13, %v3236_v10 }
0x2122   :  { %v3409_v42 = vpop.permute.xlu1 %3408 }
0x2123   :  { %v3433_v44 = vpop.permute.xlu0 %3432  ;;  %v3411_v46 = vmul.f32 %v7204_v1, %v3409_v42 }
0x2124   :  { %v3435_v47 = vmul.f32 %v7206_v13, %v3433_v44 }
0x2125   :  { %3413 = vrot.lane.b32.xlu1 %v3411_v46, %s7347_s30 }
0x2126   :  { %3437 = vrot.lane.b32.xlu0 %v3435_v47, %s7347_s30 }
0x2197   :  { %v3414_v51 = vpop.permute.xlu1 %3413 }
0x2198   :  { %v3438_v50 = vpop.permute.xlu0 %3437  ;;  %v3416_v39 = vadd.f32 %v3414_v51, %v3406_v25 }
0x2199   :  { %v3440_v53 = vadd.f32 %v3438_v50, %v3430_v48 }
0x219a   :  { %7207 = vtanh.f32 %v3416_v39 }
0x219b   :  { %7209 = vtanh.f32 %v3440_v53 }
0x21a4   :  { %v7208_v55 = vpop.eup %7207 }
0x21a5   :  { %v7210_v59 = vpop.eup %7209  ;;  %3419 = vrot.lane.b32.xlu1 %v7208_v55, %s7347_s30 }
0x21a6   :  { %3443 = vrot.lane.b32.xlu0 %v7210_v59, %s7347_s30 }
0x2217   :  { %v3420_v57 = vpop.permute.xlu1 %3419 }
0x2218   :  { %v3444_v58 = vpop.permute.xlu0 %3443  ;;  %v3422_v62 = vmul.f32 %v7204_v1, %v3420_v57 }
0x2219   :  { %v3446_v60 = vmul.f32 %v7206_v13, %v3444_v58 }
0x221a   :  { %3448 = vrot.lane.b32.xlu1 %v3422_v62, %s7348_s6 }
0x221b   :  { %3453 = vrot.lane.b32.xlu0 %v3446_v60, %s7348_s6 }
0x228c   :  { %v3449_v34 = vpop.permute.xlu1 %3448 }
0x228d   :  { %v3454_v63 = vpop.permute.xlu0 %3453  ;;  %3451 = vst.msk [vmem:[#allocation4 + $0x18] sm:$0xff] %vm241_vm11, %v3449_v34  ;;  %6437 = vmatmul.mubr.msk.f32.vlgmr.msra.gmra.mrb[46].mxu1 %vm241_vm11, %v3449_v34 }
0x228e   :  { %3456 = vst.msk [vmem:[#allocation5 + $0x20] sm:$0xff] %vm241_vm11, %v3454_v63  ;;  %6448 = vmatmul.mubr.msk.f32.vlgmr.msra.gmra.mrb[42].mxu0 %vm241_vm11, %v3454_v63  ;;  %6880 = vmatpush3.bf16.msra.mxu1 %v7848_v28 }
0x228f   :  { %6886 = vmatpush3.bf16.msra.mxu0 %v7840_v41  ;;  %6881 = vmatprep.subr.bf16.mxu1 %v7344_v22 }
0x2290   :  { %6887 = vmatprep.subr.bf16.mxu0 %v7344_v22  ;;  %6469 = vmatprep.mubr.msk.f32.mxu0 %vm7346_vm10, %v7345_v32 }
0x2291   :  { %6458 = vmatprep.mubr.msk.f32.mxu1 %vm7346_vm10, %v7345_v32 }
0x2292   :  { %6883 = vmatpush3.bf16.msra.mxu1 %v7865_v38 }
0x2293   :  { %6889 = vmatpush3.bf16.msra.mxu0 %v7862_v37  ;;  %6890 = vmatprep.subr.bf16.mxu1 %v7344_v22 }
0x2294   :  { %6896 = vmatprep.subr.bf16.mxu0 %v7344_v22 }
0x2360   :  { %v3525_v2 = vpop.f32.mrb[46].mxu1 }
0x2361   :  { %v3529_v18 = vadd.f32 %v3525_v2, %v7924_v0  ;;  %v3598_v4 = vpop.f32.mrb[42].mxu0  ;;  %v6438_v5 = vpop.f32.mrb[47].mxu1 }
0x2362   :  { %v3602_v7 = vadd.f32 %v3598_v4, %v7914_v54  ;;  %v6449_v8 = vpop.f32.mrb[43].mxu0 }
0x2363   :  { %7211 = vtanh.f32 %v3529_v18  ;;  %v5650_v36 = vmul.f32 -1.442695, %v3529_v18 }
0x2364   :  { %7213 = vtanh.f32 %v3602_v7  ;;  %v5651_v11 = vmul.f32 -1.442695, %v3602_v7 }
0x2365   :  { %7215 = vpow2.f32 %v5650_v36 }
0x2366   :  { %7217 = vpow2.f32 %v5651_v11 }
0x236d   :  { %v7212_v9 = vpop.eup %7211 }
0x236e   :  { %v7214_v10 = vpop.eup %7213  ;;  %3612 = vrot.lane.b32.xlu1 %v7212_v9, %s7347_s30 }
0x236f   :  { %3636 = vrot.lane.b32.xlu0 %v7214_v10, %s7347_s30  ;;  %v7216_v45 = vpop.eup %7215 }
0x2370   :  { %v7218_v12 = vpop.eup %7217  ;;  %v3606_v0 = vadd.f32 1.0, %v7216_v45 }
0x2371   :  { %v3630_v14 = vadd.f32 1.0, %v7218_v12 }
0x2372   :  { %7219 = vrcp.f32 %v3606_v0 }
0x2373   :  { %7221 = vrcp.f32 %v3630_v14 }
0x237c   :  { %v7220_v54 = vpop.eup %7219 }
0x237d   :  { %v7222_v16 = vpop.eup %7221  ;;  %v3610_v19 = vmul.f32 %v7220_v54, %v3416_v39 }
0x237e   :  { %v3634_v21 = vmul.f32 %v7222_v16, %v3440_v53 }
0x23e0   :  { %v3613_v15 = vpop.permute.xlu1 %3612 }
0x23e1   :  { %v3637_v17 = vpop.permute.xlu0 %3636  ;;  %v3615_v23 = vmul.f32 %v7220_v54, %v3613_v15 }
0x23e2   :  { %v3639_v20 = vmul.f32 %v7222_v16, %v3637_v17 }
0x23e3   :  { %3617 = vrot.lane.b32.xlu1 %v3615_v23, %s7347_s30 }
0x23e4   :  { %3641 = vrot.lane.b32.xlu0 %v3639_v20, %s7347_s30 }
0x2455   :  { %v3618_v24 = vpop.permute.xlu1 %3617 }
0x2456   :  { %v3642_v26 = vpop.permute.xlu0 %3641  ;;  %v3620_v43 = vadd.f32 %v3618_v24, %v3610_v19 }
0x2457   :  { %v3644_v27 = vadd.f32 %v3642_v26, %v3634_v21 }
0x2458   :  { %7223 = vtanh.f32 %v3620_v43 }
0x2459   :  { %7225 = vtanh.f32 %v3644_v27 }
0x2462   :  { %v7224_v30 = vpop.eup %7223 }
0x2463   :  { %v7226_v31 = vpop.eup %7225  ;;  %3623 = vrot.lane.b32.xlu1 %v7224_v30, %s7347_s30 }
0x2464   :  { %3647 = vrot.lane.b32.xlu0 %v7226_v31, %s7347_s30 }
0x24d5   :  { %v3624_v33 = vpop.permute.xlu1 %3623 }
0x24d6   :  { %v3648_v35 = vpop.permute.xlu0 %3647  ;;  %v3626_v56 = vmul.f32 %v7220_v54, %v3624_v33 }
0x24d7   :  { %v3650_v40 = vmul.f32 %v7222_v16, %v3648_v35 }
0x24d8   :  { %3652 = vrot.lane.b32.xlu1 %v3626_v56, %s7348_s6 }
0x24d9   :  { %3657 = vrot.lane.b32.xlu0 %v3650_v40, %s7348_s6 }
0x254a   :  { %v3653_v1 = vpop.permute.xlu1 %3652 }
0x254b   :  { %v3658_v42 = vpop.permute.xlu0 %3657  ;;  %3655 = vst.msk [vmem:[#allocation4 + $0x20] sm:$0xff] %vm241_vm11, %v3653_v1  ;;  %6459 = vmatmul.mubr.msk.f32.vlgmr.msra.gmra.mrb[48].mxu1 %vm241_vm11, %v3653_v1 }
0x254c   :  { %3660 = vst.msk [vmem:[#allocation5 + $0x18] sm:$0xff] %vm241_vm11, %v3658_v42  ;;  %6470 = vmatmul.mubr.msk.f32.vlgmr.msra.gmra.mrb[44].mxu0 %vm241_vm11, %v3658_v42  ;;  %6892 = vmatpush3.bf16.msra.mxu1 %v7848_v28 }
0x254d   :  { %6898 = vmatpush3.bf16.msra.mxu0 %v7840_v41  ;;  %6893 = vmatprep.subr.bf16.mxu1 %v7344_v22 }
0x254e   :  { %6899 = vmatprep.subr.bf16.mxu0 %v7344_v22  ;;  %6491 = vmatprep.mubr.msk.f32.mxu0 %vm7346_vm10, %v7345_v32 }
0x254f   :  { %6480 = vmatprep.mubr.msk.f32.mxu1 %vm7346_vm10, %v7345_v32 }
0x2550   :  { %6895 = vmatpush3.bf16.msra.mxu1 %v7865_v38 }
0x2551   :  { %6901 = vmatpush3.bf16.msra.mxu0 %v7862_v37  ;;  %6902 = vmatprep.subr.bf16.mxu1 %v7344_v22 }
0x2552   :  { %6908 = vmatprep.subr.bf16.mxu0 %v7344_v22 }
0x261e   :  { %v3729_v13 = vpop.f32.mrb[48].mxu1 }
0x261f   :  { %v3733_v44 = vadd.f32 %v3729_v13, %v7920_v61  ;;  %v3802_v46 = vpop.f32.mrb[44].mxu0  ;;  %v6460_v47 = vpop.f32.mrb[49].mxu1 }
0x2620   :  { %v3806_v25 = vadd.f32 %v3802_v46, %v7918_v29  ;;  %v6471_v48 = vpop.f32.mrb[45].mxu0 }
0x2621   :  { %7227 = vtanh.f32 %v3733_v44  ;;  %v5654_v39 = vmul.f32 -1.442695, %v3733_v44 }
0x2622   :  { %7229 = vtanh.f32 %v3806_v25  ;;  %v5655_v53 = vmul.f32 -1.442695, %v3806_v25 }
0x2623   :  { %7231 = vpow2.f32 %v5654_v39 }
0x2624   :  { %7233 = vpow2.f32 %v5655_v53 }
0x262b   :  { %v7228_v51 = vpop.eup %7227 }
0x262c   :  { %v7230_v50 = vpop.eup %7229  ;;  %3816 = vrot.lane.b32.xlu1 %v7228_v51, %s7347_s30 }
0x262d   :  { %3840 = vrot.lane.b32.xlu0 %v7230_v50, %s7347_s30  ;;  %v7232_v55 = vpop.eup %7231 }
0x262e   :  { %v7234_v59 = vpop.eup %7233  ;;  %v3810_v61 = vadd.f32 1.0, %v7232_v55 }
0x262f   :  { %v3834_v57 = vadd.f32 1.0, %v7234_v59 }
0x2630   :  { %7235 = vrcp.f32 %v3810_v61 }
0x2631   :  { %7237 = vrcp.f32 %v3834_v57 }
0x263a   :  { %v7236_v29 = vpop.eup %7235 }
0x263b   :  { %v7238_v62 = vpop.eup %7237  ;;  %v3814_v2 = vmul.f32 %v7236_v29, %v3620_v43 }
0x263c   :  { %v3838_v18 = vmul.f32 %v7238_v62, %v3644_v27 }
0x269e   :  { %v3817_v58 = vpop.permute.xlu1 %3816 }
0x269f   :  { %v3841_v60 = vpop.permute.xlu0 %3840  ;;  %v3819_v34 = vmul.f32 %v7236_v29, %v3817_v58 }
0x26a0   :  { %v3843_v63 = vmul.f32 %v7238_v62, %v3841_v60 }
0x26a1   :  { %3821 = vrot.lane.b32.xlu1 %v3819_v34, %s7347_s30 }
0x26a2   :  { %3845 = vrot.lane.b32.xlu0 %v3843_v63, %s7347_s30 }
0x2713   :  { %v3822_v4 = vpop.permute.xlu1 %3821 }
0x2714   :  { %v3846_v5 = vpop.permute.xlu0 %3845  ;;  %v3824_v7 = vadd.f32 %v3822_v4, %v3814_v2 }
0x2715   :  { %v3848_v8 = vadd.f32 %v3846_v5, %v3838_v18 }
0x2716   :  { %7239 = vtanh.f32 %v3824_v7 }
0x2717   :  { %7241 = vtanh.f32 %v3848_v8 }
0x2720   :  { %v7240_v9 = vpop.eup %7239 }
0x2721   :  { %v7242_v10 = vpop.eup %7241  ;;  %3827 = vrot.lane.b32.xlu1 %v7240_v9, %s7347_s30 }
0x2722   :  { %3851 = vrot.lane.b32.xlu0 %v7242_v10, %s7347_s30 }
0x2793   :  { %v3828_v36 = vpop.permute.xlu1 %3827 }
0x2794   :  { %v3852_v11 = vpop.permute.xlu0 %3851  ;;  %v3830_v45 = vmul.f32 %v7236_v29, %v3828_v36 }
0x2795   :  { %v3854_v12 = vmul.f32 %v7238_v62, %v3852_v11 }
0x2796   :  { %3856 = vrot.lane.b32.xlu1 %v3830_v45, %s7348_s6 }
0x2797   :  { %3861 = vrot.lane.b32.xlu0 %v3854_v12, %s7348_s6 }
0x2808   :  { %v3857_v0 = vpop.permute.xlu1 %3856 }
0x2809   :  { %v3862_v14 = vpop.permute.xlu0 %3861  ;;  %3859 = vst.msk [vmem:[#allocation4 + $0x28] sm:$0xff] %vm241_vm11, %v3857_v0  ;;  %6481 = vmatmul.mubr.msk.f32.vlgmr.msra.gmra.mrb[50].mxu1 %vm241_vm11, %v3857_v0 }
0x280a   :  { %3864 = vst.msk [vmem:[#allocation5 + $0x10] sm:$0xff] %vm241_vm11, %v3862_v14  ;;  %6492 = vmatmul.mubr.msk.f32.vlgmr.msra.gmra.mrb[46].mxu0 %vm241_vm11, %v3862_v14  ;;  %6904 = vmatpush3.bf16.msra.mxu1 %v7848_v28 }
0x280b   :  { %6910 = vmatpush3.bf16.msra.mxu0 %v7840_v41  ;;  %6905 = vmatprep.subr.bf16.mxu1 %v7344_v22 }
0x280c   :  { %6911 = vmatprep.subr.bf16.mxu0 %v7344_v22  ;;  %6513 = vmatprep.mubr.msk.f32.mxu0 %vm7346_vm10, %v7345_v32 }
0x280d   :  { %6502 = vmatprep.mubr.msk.f32.mxu1 %vm7346_vm10, %v7345_v32 }
0x280e   :  { %6907 = vmatpush3.bf16.msra.mxu1 %v7865_v38 }
0x280f   :  { %6913 = vmatpush3.bf16.msra.mxu0 %v7862_v37 }
0x2810   :  { %6930 = vmatprep.subr.bf16.mxu0 %v7344_v22 }
0x28dc   :  { %v3933_v54 = vpop.f32.mrb[50].mxu1 }
0x28dd   :  { %v3937_v28 = vadd.f32 %v3933_v54, %v7930_v6  ;;  %v4006_v41 = vpop.f32.mrb[46].mxu0  ;;  %v6482_v15 = vpop.f32.mrb[51].mxu1  ;;  %v4277_v54 = vld [vmem:[%s8308_s2 + $0x180] sm:$0xff] }
0x28de   :  { %v4010_v16 = vadd.f32 %v4006_v41, %v7908_v49  ;;  %v6493_v17 = vpop.f32.mrb[47].mxu0  ;;  %v4279_v15 = vld [vmem:[%s8308_s2 + $0x190] sm:$0xff] }
0x28df   :  { %7243 = vtanh.f32 %v3937_v28  ;;  %v5658_v38 = vmul.f32 -1.442695, %v3937_v28  ;;  %v4278_v28 = vld [vmem:[%s8308_s2 + $0x188] sm:$0xff] }
0x28e0   :  { %7245 = vtanh.f32 %v4010_v16  ;;  %v5659_v37 = vmul.f32 -1.442695, %v4010_v16  ;;  %v6914_v41 = vpack.c.bf16 %v4278_v28, %v4277_v54  ;;  %v4280_v16 = vld [vmem:[%s8308_s2 + $0x198] sm:$0xff] }
0x28e1   :  { %7247 = vpow2.f32 %v5658_v38  ;;  %v6918_v17 = vpack.c.bf16 %v4280_v16, %v4279_v15 }
0x28e2   :  { %7249 = vpow2.f32 %v5659_v37  ;;  %6915 = vmatprep.subr.bf16.mxu1 %v6914_v41 }
0x28e9   :  { %v7244_v23 = vpop.eup %7243 }
0x28ea   :  { %v7246_v20 = vpop.eup %7245  ;;  %4020 = vrot.lane.b32.xlu1 %v7244_v23, %s7347_s30  ;;  %v4273_v23 = vld [vmem:[%s8308_s2 + $0x160] sm:$0xff] }
0x28eb   :  { %4044 = vrot.lane.b32.xlu0 %v7246_v20, %s7347_s30  ;;  %v7248_v19 = vpop.eup %7247  ;;  %v4274_v20 = vld [vmem:[%s8308_s2 + $0x168] sm:$0xff] }
0x28ec   :  { %v7250_v21 = vpop.eup %7249  ;;  %v4014_v6 = vadd.f32 1.0, %v7248_v19  ;;  %v6922_v37 = vpack.c.bf16 %v4274_v20, %v4273_v23 }
0x28ed   :  { %v4038_v24 = vadd.f32 1.0, %v7250_v21 }
0x28ee   :  { %7251 = vrcp.f32 %v4014_v6 }
0x28ef   :  { %7253 = vrcp.f32 %v4038_v24  ;;  %v4281_v24 = vld [vmem:[%s8308_s2 + $0x1a0] sm:$0xff] }
0x28f8   :  { %v7252_v49 = vpop.eup %7251 }
0x28f9   :  { %v7254_v43 = vpop.eup %7253  ;;  %v4018_v33 = vmul.f32 %v7252_v49, %v3824_v7 }
0x28fa   :  { %v4042_v35 = vmul.f32 %v7254_v43, %v3848_v8 }
0x295c   :  { %v4021_v26 = vpop.permute.xlu1 %4020 }
0x295d   :  { %v4045_v27 = vpop.permute.xlu0 %4044  ;;  %v4023_v30 = vmul.f32 %v7252_v49, %v4021_v26 }
0x295e   :  { %v4047_v31 = vmul.f32 %v7254_v43, %v4045_v27  ;;  %v4284_v27 = vld [vmem:[%s8308_s2 + $0x1b8] sm:$0xff] }
0x295f   :  { %4025 = vrot.lane.b32.xlu1 %v4023_v30, %s7347_s30 }
0x2960   :  { %4049 = vrot.lane.b32.xlu0 %v4047_v31, %s7347_s30 }
0x29d1   :  { %v4026_v56 = vpop.permute.xlu1 %4025 }
0x29d2   :  { %v4050_v40 = vpop.permute.xlu0 %4049  ;;  %v4028_v1 = vadd.f32 %v4026_v56, %v4018_v33  ;;  %v4276_v56 = vld [vmem:[%s8308_s2 + $0x178] sm:$0xff] }
0x29d3   :  { %v4052_v42 = vadd.f32 %v4050_v40, %v4042_v35  ;;  %v4275_v35 = vld [vmem:[%s8308_s2 + $0x170] sm:$0xff] }
0x29d4   :  { %7255 = vtanh.f32 %v4028_v1 }
0x29d5   :  { %7257 = vtanh.f32 %v4052_v42 }
0x29de   :  { %v7256_v13 = vpop.eup %7255 }
0x29df   :  { %v7258_v44 = vpop.eup %7257  ;;  %4031 = vrot.lane.b32.xlu1 %v7256_v13, %s7347_s30  ;;  %v4296_v13 = vld [vmem:[#allocation5 + $0x10] sm:$0xff] }
0x29e0   :  { %4055 = vrot.lane.b32.xlu0 %v7258_v44, %s7347_s30  ;;  %v4297_v44 = vld [vmem:[#allocation5 + $0x18] sm:$0xff] }
0x2a51   :  { %v4032_v46 = vpop.permute.xlu1 %4031 }
0x2a52   :  { %v4056_v47 = vpop.permute.xlu0 %4055  ;;  %v4034_v25 = vmul.f32 %v7252_v49, %v4032_v46  ;;  %v4282_v49 = vld [vmem:[%s8308_s2 + $0x1a8] sm:$0xff]  ;;  %v4298_v46 = vld [vmem:[#allocation5 + $0x20] sm:$0xff] }
0x2a53   :  { %v4058_v48 = vmul.f32 %v7254_v43, %v4056_v47  ;;  %v8137_v26 = vpack.c.bf16 %v4282_v49, %v4281_v24  ;;  %v4283_v43 = vld [vmem:[%s8308_s2 + $0x1b0] sm:$0xff]  ;;  %v4299_v47 = vld [vmem:[#allocation5 + $0x28] sm:$0xff] }
0x2a54   :  { %4060 = vrot.lane.b32.xlu1 %v4034_v25, %s7348_s6  ;;  %v8147_v30 = vpack.c.bf16 %v4284_v27, %v4283_v43  ;;  %v4300_v25 = vld [vmem:[#allocation5 + $0x30] sm:$0xff] }
0x2a55   :  { %4065 = vrot.lane.b32.xlu0 %v4058_v48, %s7348_s6  ;;  %v4301_v48 = vld [vmem:[#allocation5 + $0x38] sm:$0xff] }
0x2ac6   :  { %v4061_v51 = vpop.permute.xlu1 %4060 }
0x2ac7   :  { %v4066_v50 = vpop.permute.xlu0 %4065  ;;  %4063 = vst.msk [vmem:[#allocation4 + $0x30] sm:$0xff] %vm241_vm11, %v4061_v51  ;;  %6503 = vmatmul.mubr.msk.f32.vlgmr.msra.gmra.mrb[52].mxu1 %vm241_vm11, %v4061_v51  ;;  %v4286_v51 = vld [vmem:[#allocation4] sm:$0xff] }
0x2ac8   :  { %4068 = vst.msk [vmem:[#allocation5 + $0x8] sm:$0xff] %vm241_vm11, %v4066_v50  ;;  %6514 = vmatmul.mubr.msk.f32.vlgmr.msra.gmra.mrb[48].mxu0 %vm241_vm11, %v4066_v50  ;;  %6917 = vmatpush3.bf16.msra.mxu1 %v6914_v41  ;;  %v4287_v50 = vld [vmem:[#allocation4 + $0x8] sm:$0xff] }
0x2ac9   :  { %6564 = vmatprep.mubr.msk.f32.mxu0 %vm7346_vm10, %v7345_v32  ;;  %6919 = vmatprep.subr.bf16.mxu1 %v6918_v17 }
0x2aca   :  { %6932 = vmatpush3.bf16.msra.mxu0 %v8137_v26 }
0x2acb   :  { %6933 = vmatprep.subr.bf16.mxu0 %v7344_v22 }
0x2acc   :  { %6921 = vmatpush3.bf16.msra.mxu1 %v6918_v17 }
0x2acd   :  { %6923 = vmatprep.subr.bf16.mxu1 %v6922_v37 }
0x2ace   :  { %6935 = vmatpush3.bf16.msra.mxu0 %v8147_v30 }
0x2acf   :  { %6936 = vmatprep.subr.bf16.mxu0 %v7344_v22 }
0x2ad1   :  { %6565 = vmatmul.mubr.f32.vlgmr.msra.gmra.mrb[50].mxu0 %v7345_v32 }
0x2ad2   :  { %6938 = vmatpush3.bf16.msra.mxu0 %v8137_v26  ;;  %6575 = vmatprep.mubr.msk.f32.mxu0 %vm7346_vm10, %v7345_v32 }
0x2ad3   :  { %6939 = vmatprep.subr.bf16.mxu0 %v7344_v22 }
0x2ad6   :  { %6941 = vmatpush3.bf16.msra.mxu0 %v8147_v30 }
0x2ad7   :  { %6942 = vmatprep.subr.bf16.mxu0 %v7344_v22 }
0x2b9a   :  { %v4137_v39 = vpop.f32.mrb[52].mxu1 }
0x2b9b   :  { %v4141_v53 = vadd.f32 %v4137_v39, %v7928_v3  ;;  %v4210_v55 = vpop.f32.mrb[48].mxu0  ;;  %v6504_v59 = vpop.f32.mrb[53].mxu1  ;;  %v4288_v39 = vld [vmem:[#allocation4 + $0x10] sm:$0xff] }
0x2b9c   :  { %v4214_v61 = vadd.f32 %v4210_v55, %v7910_v52  ;;  %v6515_v57 = vpop.f32.mrb[49].mxu0  ;;  %v4290_v55 = vld [vmem:[#allocation4 + $0x20] sm:$0xff]  ;;  %v4291_v59 = vld [vmem:[#allocation4 + $0x28] sm:$0xff] }
0x2b9d   :  { %7259 = vtanh.f32 %v4141_v53  ;;  %v5662_v62 = vmul.f32 -1.442695, %v4141_v53  ;;  %v4289_v53 = vld [vmem:[#allocation4 + $0x18] sm:$0xff] }
0x2b9e   :  { %7261 = vtanh.f32 %v4214_v61  ;;  %v5663_v60 = vmul.f32 -1.442695, %v4214_v61  ;;  %v4292_v61 = vld [vmem:[#allocation4 + $0x30] sm:$0xff] }
0x2b9f   :  { %7263 = vpow2.f32 %v5662_v62  ;;  %v5680_v62 = vld [vmem:[%s8308_s2 + $0x1c0] ss:$0 sm:$0xff] }
0x2ba0   :  { %7265 = vpow2.f32 %v5663_v60 }
0x2ba7   :  { %v7260_v29 = vpop.eup %7259 }
0x2ba8   :  { %v7262_v58 = vpop.eup %7261  ;;  %4224 = vrot.lane.b32.xlu1 %v7260_v29, %s7347_s30  ;;  %v4638_v29 = vpop.f32.mrb[50].mxu0 }
0x2ba9   :  { %4248 = vrot.lane.b32.xlu0 %v7262_v58, %s7347_s30  ;;  %v7264_v34 = vpop.eup %7263  ;;  %v6566_v58 = vpop.f32.mrb[51].mxu0 }
0x2baa   :  { %v7266_v63 = vpop.eup %7265  ;;  %v4218_v3 = vadd.f32 1.0, %v7264_v34 }
0x2bab   :  { %v4242_v2 = vadd.f32 1.0, %v7266_v63 }
0x2bac   :  { %7267 = vrcp.f32 %v4218_v3 }
0x2bad   :  { %7269 = vrcp.f32 %v4242_v2 }
0x2bb6   :  { %v7268_v52 = vpop.eup %7267 }
0x2bb7   :  { %v7270_v4 = vpop.eup %7269  ;;  %v4222_v9 = vmul.f32 %v7268_v52, %v4028_v1  ;;  %v6926_v1 = vpack.c.bf16 %v4276_v56, %v4275_v35 }
0x2bb8   :  { %v4246_v10 = vmul.f32 %v7270_v4, %v4052_v42  ;;  %v4295_v42 = vld [vmem:[#allocation5 + $0x8] sm:$0xff] }
0x2c1a   :  { %v4225_v18 = vpop.permute.xlu1 %4224 }
0x2c1b   :  { %v4249_v5 = vpop.permute.xlu0 %4248  ;;  %v4227_v7 = vmul.f32 %v7268_v52, %v4225_v18 }
0x2c1c   :  { %v4251_v8 = vmul.f32 %v7270_v4, %v4249_v5 }
0x2c1d   :  { %4229 = vrot.lane.b32.xlu1 %v4227_v7, %s7347_s30 }
0x2c1e   :  { %4253 = vrot.lane.b32.xlu0 %v4251_v8, %s7347_s30 }
0x2c8f   :  { %v4230_v36 = vpop.permute.xlu1 %4229 }
0x2c90   :  { %v4254_v11 = vpop.permute.xlu0 %4253  ;;  %v4232_v45 = vadd.f32 %v4230_v36, %v4222_v9 }
0x2c91   :  { %v4256_v12 = vadd.f32 %v4254_v11, %v4246_v10 }
0x2c92   :  { %7271 = vtanh.f32 %v4232_v45 }
0x2c93   :  { %7273 = vtanh.f32 %v4256_v12 }
0x2c9c   :  { %v7272_v0 = vpop.eup %7271 }
0x2c9d   :  { %v7274_v14 = vpop.eup %7273  ;;  %4235 = vrot.lane.b32.xlu1 %v7272_v0, %s7347_s30 }
0x2c9e   :  { %4259 = vrot.lane.b32.xlu0 %v7274_v14, %s7347_s30 }
0x2d0f   :  { %v4236_v38 = vpop.permute.xlu1 %4235 }
0x2d10   :  { %v4260_v19 = vpop.permute.xlu0 %4259  ;;  %v4238_v21 = vmul.f32 %v7268_v52, %v4236_v38 }
0x2d11   :  { %v4262_v6 = vmul.f32 %v7270_v4, %v4260_v19 }
0x2d12   :  { %4264 = vrot.lane.b32.xlu1 %v4238_v21, %s7348_s6 }
0x2d13   :  { %4269 = vrot.lane.b32.xlu0 %v4262_v6, %s7348_s6 }
0x2d84   :  { %v4265_v31 = vpop.permute.xlu1 %4264 }
0x2d85   :  { %v4270_v33 = vpop.permute.xlu0 %4269  ;;  %4267 = vst.msk [vmem:[#allocation4 + $0x38] sm:$0xff] %vm241_vm11, %v4265_v31 }
0x2d86   :  { %4272 = vst.msk [vmem:[#allocation5] sm:$0xff] %vm241_vm11, %v4270_v33 }
0x2d8c   :  { %v4293_v57 = vld [vmem:[#allocation4 + $0x38] sm:$0xff] }
0x2d8d   :  { %v4294_v40 = vld [vmem:[#allocation5] sm:$0xff] }
0x2d8e   :  { %6524 = vmatprep.mubr.msk.f32.mxu1 %vm241_vm11, %v4294_v40 }
0x2d8f   :  { %6525 = vmatmul.mubr.msk.f32.vlgmr.msra.gmra.mrb[54].mxu1 %vm241_vm11, %v4295_v42 }
0x2d90   :  { %6925 = vmatpush3.bf16.msra.mxu1 %v6922_v37  ;;  %6527 = vmatprep.mubr.msk.f32.mxu1 %vm241_vm11, %v4296_v13 }
0x2d91   :  { %6927 = vmatprep.subr.bf16.mxu1 %v6926_v1 }
0x2d93   :  { %6528 = vmatmul.mubr.msk.f32.gmra.mrb[56].mxu1 %vm241_vm11, %v4297_v44 }
0x2d94   :  { %6530 = vmatprep.mubr.msk.f32.mxu1 %vm241_vm11, %v4298_v46  ;;  %6929 = vmatpush3.bf16.msra.mxu1 %v6926_v1 }
0x2d95   :  { %6954 = vmatprep.subr.bf16.mxu1 %v7344_v22 }
0x2d97   :  { %6531 = vmatmul.mubr.msk.f32.gmra.mrb[58].mxu1 %vm241_vm11, %v4299_v47 }
0x2d98   :  { %6533 = vmatprep.mubr.msk.f32.mxu1 %vm241_vm11, %v4300_v25 }
0x2d9b   :  { %6534 = vmatmul.mubr.msk.f32.gmra.mrb[60].mxu1 %vm241_vm11, %v4301_v48 }
0x2d9c   :  { %6544 = vmatprep.mubr.msk.f32.mxu1 %vm241_vm11, %v4286_v51 }
0x2d9f   :  { %6545 = vmatmul.mubr.msk.f32.vlgmr.msra.gmra.mrb[54].mxu1 %vm241_vm11, %v4287_v50 }
0x2da0   :  { %6547 = vmatprep.mubr.msk.f32.mxu1 %vm241_vm11, %v4288_v39  ;;  %6956 = vmatpush3.bf16.msra.mxu1 %v8137_v26 }
0x2da1   :  { %6957 = vmatprep.subr.bf16.mxu1 %v7344_v22 }
0x2da3   :  { %6548 = vmatmul.mubr.msk.f32.gmra.mrb[56].mxu1 %vm241_vm11, %v4289_v53 }
0x2da4   :  { %6550 = vmatprep.mubr.msk.f32.mxu1 %vm241_vm11, %v4290_v55  ;;  %6959 = vmatpush3.bf16.msra.mxu1 %v8147_v30 }
0x2da5   :  { %6966 = vmatprep.subr.bf16.mxu1 %v7344_v22 }
0x2da7   :  { %6551 = vmatmul.mubr.msk.f32.gmra.mrb[58].mxu1 %vm241_vm11, %v4291_v59 }
0x2da8   :  { %6553 = vmatprep.mubr.msk.f32.mxu1 %vm241_vm11, %v4292_v61 }
0x2dab   :  { %6554 = vmatmul.mubr.msk.f32.gmra.mrb[60].mxu1 %vm241_vm11, %v4293_v57 }
0x2dac   :  { %6608 = vmatprep.mubr.msk.f32.mxu1 %vm7346_vm10, %v7345_v32 }
0x2e72   :  { %v6546_v60 = vpop.f32.mrb[54].mxu1 }
0x2e73   :  { %v8192_v34 = vadd.f32 %v6546_v60, %v5680_v62  ;;  %v4521_v63 = vpop.f32.mrb[55].mxu1 }
0x2e74   :  { %v8194_v3 = vadd.f32 %v5680_v62, %v4521_v63 }
0x2e76   :  { %v6549_v2 = vpop.f32.mrb[56].mxu1 }
0x2e77   :  { %v8196_v52 = vadd.f32 %v6549_v2, %v5680_v62  ;;  %v4531_v18 = vpop.f32.mrb[57].mxu1 }
0x2e78   :  { %v8198_v4 = vadd.f32 %v5680_v62, %v4531_v18 }
0x2e7a   :  { %v6552_v5 = vpop.f32.mrb[58].mxu1 }
0x2e7b   :  { %v8200_v7 = vadd.f32 %v6552_v5, %v5680_v62  ;;  %v4541_v8 = vpop.f32.mrb[59].mxu1 }
0x2e7c   :  { %v8202_v9 = vadd.f32 %v5680_v62, %v4541_v8 }
0x2e7e   :  { %v6555_v10 = vpop.f32.mrb[60].mxu1 }
0x2e7f   :  { %v4571_v36 = vadd.f32 %v6555_v10, %v5680_v62  ;;  %v4551_v11 = vpop.f32.mrb[61].mxu1 }
0x2e80   :  { %v4570_v45 = vadd.f32 %v5680_v62, %v4551_v11 }
0x2e81   :  { %v4642_v12 = vadd.f32 %v4638_v29, %v4571_v36 }
0x2e83   :  { %7275 = vtanh.f32 %v4642_v12  ;;  %v5681_v14 = vmul.f32 -1.442695, %v4642_v12 }
0x2e85   :  { %7277 = vpow2.f32 %v5681_v14 }
0x2e8d   :  { %v7276_v0 = vpop.eup %7275 }
0x2e8e   :  { %4652 = vrot.lane.b32.xlu0 %v7276_v0, %s7347_s30 }
0x2e8f   :  { %v7278_v54 = vpop.eup %7277 }
0x2e90   :  { %v4646_v28 = vadd.f32 1.0, %v7278_v54 }
0x2e92   :  { %7279 = vrcp.f32 %v4646_v28 }
0x2e9c   :  { %v7280_v41 = vpop.eup %7279 }
0x2e9d   :  { %v4650_v17 = vmul.f32 0.0, %v7280_v41 }
0x2f00   :  { %v4653_v15 = vpop.permute.xlu0 %4652 }
0x2f01   :  { %v4655_v16 = vmul.f32 %v7280_v41, %v4653_v15 }
0x2f03   :  { %4657 = vrot.lane.b32.xlu1 %v4655_v16, %s7347_s30 }
0x2f75   :  { %v4658_v23 = vpop.permute.xlu1 %4657 }
0x2f76   :  { %v4660_v20 = vadd.f32 %v4658_v23, %v4650_v17 }
0x2f78   :  { %7281 = vtanh.f32 %v4660_v20 }
0x2f82   :  { %v7282_v38 = vpop.eup %7281 }
0x2f83   :  { %4663 = vrot.lane.b32.xlu0 %v7282_v38, %s7347_s30 }
0x2ff5   :  { %v4664_v37 = vpop.permute.xlu0 %4663 }
0x2ff6   :  { %v4666_v19 = vmul.f32 %v7280_v41, %v4664_v37 }
0x2ff8   :  { %4668 = vrot.lane.b32.xlu1 %v4666_v19, %s7348_s6 }
0x306a   :  { %v4669_v21 = vpop.permute.xlu1 %4668 }
0x306b   :  { %6576 = vmatmul.mubr.msk.f32.vlgmr.msra.gmra.mrb[52].mxu0 %vm241_vm11, %v4669_v21 }
0x306c   :  { %6944 = vmatpush3.bf16.msra.mxu0 %v8137_v26  ;;  %6586 = vmatprep.mubr.msk.f32.mxu0 %vm7346_vm10, %v7345_v32 }
0x306d   :  { %6945 = vmatprep.subr.bf16.mxu0 %v7344_v22 }
0x3070   :  { %6947 = vmatpush3.bf16.msra.mxu0 %v8147_v30 }
0x3071   :  { %6948 = vmatprep.subr.bf16.mxu0 %v7344_v22 }
0x313e   :  { %v4738_v6 = vpop.f32.mrb[52].mxu0 }
0x313f   :  { %v4742_v24 = vadd.f32 %v4738_v6, %v4570_v45  ;;  %v6577_v49 = vpop.f32.mrb[53].mxu0 }
0x3141   :  { %7283 = vtanh.f32 %v4742_v24  ;;  %v5683_v27 = vmul.f32 -1.442695, %v4742_v24 }
0x3143   :  { %7285 = vpow2.f32 %v5683_v27 }
0x314b   :  { %v7284_v43 = vpop.eup %7283 }
0x314c   :  { %4752 = vrot.lane.b32.xlu0 %v7284_v43, %s7347_s30 }
0x314d   :  { %v7286_v31 = vpop.eup %7285 }
0x314e   :  { %v4746_v33 = vadd.f32 1.0, %v7286_v31 }
0x3150   :  { %7287 = vrcp.f32 %v4746_v33 }
0x315a   :  { %v7288_v35 = vpop.eup %7287 }
0x315b   :  { %v4750_v1 = vmul.f32 %v7288_v35, %v4660_v20 }
0x31be   :  { %v4753_v56 = vpop.permute.xlu0 %4752 }
0x31bf   :  { %v4755_v40 = vmul.f32 %v7288_v35, %v4753_v56 }
0x31c1   :  { %4757 = vrot.lane.b32.xlu1 %v4755_v40, %s7347_s30 }
0x3233   :  { %v4758_v42 = vpop.permute.xlu1 %4757 }
0x3234   :  { %v4760_v13 = vadd.f32 %v4758_v42, %v4750_v1 }
0x3236   :  { %7289 = vtanh.f32 %v4760_v13 }
0x3240   :  { %v7290_v44 = vpop.eup %7289 }
0x3241   :  { %4763 = vrot.lane.b32.xlu0 %v7290_v44, %s7347_s30 }
0x32b3   :  { %v4764_v46 = vpop.permute.xlu0 %4763 }
0x32b4   :  { %v4766_v47 = vmul.f32 %v7288_v35, %v4764_v46 }
0x32b6   :  { %4768 = vrot.lane.b32.xlu1 %v4766_v47, %s7348_s6 }
0x3328   :  { %v4769_v25 = vpop.permute.xlu1 %4768 }
0x3329   :  { %6587 = vmatmul.mubr.msk.f32.vlgmr.msra.gmra.mrb[54].mxu0 %vm241_vm11, %v4769_v25 }
0x332a   :  { %6950 = vmatpush3.bf16.msra.mxu0 %v8137_v26  ;;  %6597 = vmatprep.mubr.msk.f32.mxu0 %vm7346_vm10, %v7345_v32 }
0x332b   :  { %6951 = vmatprep.subr.bf16.mxu0 %v7344_v22 }
0x332e   :  { %6953 = vmatpush3.bf16.msra.mxu0 %v8147_v30 }
0x332f   :  { %6960 = vmatprep.subr.bf16.mxu0 %v7344_v22 }
0x33fc   :  { %v4838_v48 = vpop.f32.mrb[54].mxu0 }
0x33fd   :  { %v4842_v51 = vadd.f32 %v4838_v48, %v8200_v7  ;;  %v6588_v50 = vpop.f32.mrb[55].mxu0 }
0x33ff   :  { %7291 = vtanh.f32 %v4842_v51  ;;  %v5685_v53 = vmul.f32 -1.442695, %v4842_v51 }
0x3401   :  { %7293 = vpow2.f32 %v5685_v53 }
0x3409   :  { %v7292_v39 = vpop.eup %7291 }
0x340a   :  { %4852 = vrot.lane.b32.xlu0 %v7292_v39, %s7347_s30 }
0x340b   :  { %v7294_v55 = vpop.eup %7293 }
0x340c   :  { %v4846_v59 = vadd.f32 1.0, %v7294_v55 }
0x340e   :  { %7295 = vrcp.f32 %v4846_v59 }
0x3418   :  { %v7296_v61 = vpop.eup %7295 }
0x3419   :  { %v4850_v58 = vmul.f32 %v7296_v61, %v4760_v13 }
0x347c   :  { %v4853_v57 = vpop.permute.xlu0 %4852 }
0x347d   :  { %v4855_v29 = vmul.f32 %v7296_v61, %v4853_v57 }
0x347f   :  { %4857 = vrot.lane.b32.xlu1 %v4855_v29, %s7347_s30 }
0x34f1   :  { %v4858_v62 = vpop.permute.xlu1 %4857 }
0x34f2   :  { %v4860_v60 = vadd.f32 %v4858_v62, %v4850_v58 }
0x34f4   :  { %7297 = vtanh.f32 %v4860_v60 }
0x34fe   :  { %v7298_v63 = vpop.eup %7297 }
0x34ff   :  { %4863 = vrot.lane.b32.xlu0 %v7298_v63, %s7347_s30 }
0x3571   :  { %v4864_v2 = vpop.permute.xlu0 %4863 }
0x3572   :  { %v4866_v18 = vmul.f32 %v7296_v61, %v4864_v2 }
0x3574   :  { %4868 = vrot.lane.b32.xlu1 %v4866_v18, %s7348_s6 }
0x35e6   :  { %v4869_v5 = vpop.permute.xlu1 %4868 }
0x35e7   :  { %6598 = vmatmul.mubr.msk.f32.vlgmr.msra.gmra.mrb[56].mxu0 %vm241_vm11, %v4869_v5 }
0x35e8   :  { %6962 = vmatpush3.bf16.msra.mxu0 %v8137_v26  ;;  %6619 = vmatprep.mubr.msk.f32.mxu0 %vm7346_vm10, %v7345_v32 }
0x35e9   :  { %6963 = vmatprep.subr.bf16.mxu0 %v7344_v22 }
0x35ec   :  { %6965 = vmatpush3.bf16.msra.mxu0 %v8147_v30 }
0x35ed   :  { %6972 = vmatprep.subr.bf16.mxu0 %v7344_v22 }
0x36ba   :  { %v4938_v7 = vpop.f32.mrb[56].mxu0 }
0x36bb   :  { %v4942_v8 = vadd.f32 %v4938_v7, %v8202_v9  ;;  %v6599_v10 = vpop.f32.mrb[57].mxu0 }
0x36bd   :  { %7299 = vtanh.f32 %v4942_v8  ;;  %v5687_v11 = vmul.f32 -1.442695, %v4942_v8 }
0x36bf   :  { %7301 = vpow2.f32 %v5687_v11 }
0x36c7   :  { %v7300_v36 = vpop.eup %7299 }
0x36c8   :  { %4952 = vrot.lane.b32.xlu0 %v7300_v36, %s7347_s30 }
0x36c9   :  { %v7302_v45 = vpop.eup %7301 }
0x36ca   :  { %v4946_v12 = vadd.f32 1.0, %v7302_v45 }
0x36cc   :  { %7303 = vrcp.f32 %v4946_v12 }
0x36d6   :  { %v7304_v0 = vpop.eup %7303 }
0x36d7   :  { %v4950_v28 = vmul.f32 %v7304_v0, %v4860_v60 }
0x373a   :  { %v4953_v14 = vpop.permute.xlu0 %4952 }
0x373b   :  { %v4955_v54 = vmul.f32 %v7304_v0, %v4953_v14 }
0x373d   :  { %4957 = vrot.lane.b32.xlu1 %v4955_v54, %s7347_s30 }
0x37af   :  { %v4958_v41 = vpop.permute.xlu1 %4957 }
0x37b0   :  { %v4960_v15 = vadd.f32 %v4958_v41, %v4950_v28 }
0x37b2   :  { %7305 = vtanh.f32 %v4960_v15 }
0x37bc   :  { %v7306_v9 = vpop.eup %7305 }
0x37bd   :  { %4963 = vrot.lane.b32.xlu0 %v7306_v9, %s7347_s30 }
0x382f   :  { %v4964_v16 = vpop.permute.xlu0 %4963 }
0x3830   :  { %v4966_v17 = vmul.f32 %v7304_v0, %v4964_v16 }
0x3832   :  { %4968 = vrot.lane.b32.xlu1 %v4966_v17, %s7348_s6 }
0x38a4   :  { %v4969_v23 = vpop.permute.xlu1 %4968 }
0x38a5   :  { %6609 = vmatmul.mubr.msk.f32.vlgmr.msra.gmra.mrb[62].mxu1 %vm241_vm11, %v4969_v23 }
0x38a6   :  { %6968 = vmatpush3.bf16.msra.mxu1 %v8137_v26  ;;  %6630 = vmatprep.mubr.msk.f32.mxu1 %vm7346_vm10, %v7345_v32 }
0x38a7   :  { %6969 = vmatprep.subr.bf16.mxu1 %v7344_v22 }
0x38aa   :  { %6971 = vmatpush3.bf16.msra.mxu1 %v8147_v30 }
0x38ab   :  { %6978 = vmatprep.subr.bf16.mxu1 %v7344_v22 }
0x3978   :  { %v5038_v20 = vpop.f32.mrb[62].mxu1 }
0x3979   :  { %v5042_v38 = vadd.f32 %v5038_v20, %v8196_v52  ;;  %v6610_v37 = vpop.f32.mrb[63].mxu1 }
0x397a   :  { %v5368_v37 = vld [vmem:[%s8309_s3 + $0x8] sm:$0xff] }
0x397b   :  { %7307 = vtanh.f32 %v5042_v38  ;;  %v5689_v21 = vmul.f32 -1.442695, %v5042_v38 }
0x397d   :  { %7309 = vpow2.f32 %v5689_v21 }
0x3985   :  { %v7308_v19 = vpop.eup %7307 }
0x3986   :  { %5052 = vrot.lane.b32.xlu0 %v7308_v19, %s7347_s30  ;;  %v5369_v19 = vld [vmem:[%s8309_s3 + $0x10] sm:$0xff] }
0x3987   :  { %v7310_v6 = vpop.eup %7309 }
0x3988   :  { %v5046_v24 = vadd.f32 1.0, %v7310_v6  ;;  %v5370_v6 = vld [vmem:[%s8309_s3 + $0x18] sm:$0xff] }
0x398a   :  { %7311 = vrcp.f32 %v5046_v24  ;;  %v6982_v24 = vpack.c.bf16 %v5370_v6, %v5369_v19 }
0x3994   :  { %v7312_v49 = vpop.eup %7311 }
0x3995   :  { %v5050_v31 = vmul.f32 %v7312_v49, %v4960_v15 }
0x39f8   :  { %v5053_v43 = vpop.permute.xlu0 %5052 }
0x39f9   :  { %v5055_v27 = vmul.f32 %v7312_v49, %v5053_v43  ;;  %v5447_v43 = vld [vmem:[%s8310_s4] sm:$0xff] }
0x39fb   :  { %5057 = vrot.lane.b32.xlu1 %v5055_v27, %s7347_s30  ;;  %v5448_v27 = vld [vmem:[%s8310_s4 + $0x8] sm:$0xff] }
0x3a6d   :  { %v5058_v33 = vpop.permute.xlu1 %5057 }
0x3a6e   :  { %v5060_v35 = vadd.f32 %v5058_v33, %v5050_v31  ;;  %v6985_v31 = vpack.c.bf16 %v5448_v27, %v5447_v43 }
0x3a70   :  { %7313 = vtanh.f32 %v5060_v35 }
0x3a7a   :  { %v7314_v52 = vpop.eup %7313 }
0x3a7b   :  { %5063 = vrot.lane.b32.xlu0 %v7314_v52, %s7347_s30 }
0x3aed   :  { %v5064_v56 = vpop.permute.xlu0 %5063 }
0x3aee   :  { %v5066_v40 = vmul.f32 %v7312_v49, %v5064_v56 }
0x3af0   :  { %5068 = vrot.lane.b32.xlu1 %v5066_v40, %s7348_s6 }
0x3b62   :  { %v5069_v1 = vpop.permute.xlu1 %5068 }
0x3b63   :  { %6620 = vmatmul.mubr.msk.f32.vlgmr.msra.gmra.mrb[58].mxu0 %vm241_vm11, %v5069_v1 }
0x3b64   :  { %6974 = vmatpush3.bf16.msra.mxu0 %v8137_v26  ;;  %6641 = vmatprep.mubr.msk.f32.mxu0 %vm7346_vm10, %v7345_v32 }
0x3b65   :  { %6975 = vmatprep.subr.bf16.mxu0 %v7344_v22 }
0x3b68   :  { %6977 = vmatpush3.bf16.msra.mxu0 %v8147_v30 }
0x3b69   :  { %6984 = vmatprep.subr.bf16.mxu0 %v7344_v22 }
0x3c36   :  { %v5138_v42 = vpop.f32.mrb[58].mxu0 }
0x3c37   :  { %v5142_v13 = vadd.f32 %v5138_v42, %v8198_v4  ;;  %v6621_v44 = vpop.f32.mrb[59].mxu0 }
0x3c39   :  { %7315 = vtanh.f32 %v5142_v13  ;;  %v5691_v47 = vmul.f32 -1.442695, %v5142_v13 }
0x3c3b   :  { %7317 = vpow2.f32 %v5691_v47 }
0x3c43   :  { %v7316_v46 = vpop.eup %7315 }
0x3c44   :  { %5152 = vrot.lane.b32.xlu0 %v7316_v46, %s7347_s30 }
0x3c45   :  { %v7318_v26 = vpop.eup %7317 }
0x3c46   :  { %v5146_v25 = vadd.f32 1.0, %v7318_v26 }
0x3c48   :  { %7319 = vrcp.f32 %v5146_v25 }
0x3c52   :  { %v7320_v48 = vpop.eup %7319 }
0x3c53   :  { %v5150_v30 = vmul.f32 %v7320_v48, %v5060_v35 }
0x3cb6   :  { %v5153_v51 = vpop.permute.xlu0 %5152 }
0x3cb7   :  { %v5155_v50 = vmul.f32 %v7320_v48, %v5153_v51 }
0x3cb9   :  { %5157 = vrot.lane.b32.xlu1 %v5155_v50, %s7347_s30 }
0x3d2b   :  { %v5158_v39 = vpop.permute.xlu1 %5157 }
0x3d2c   :  { %v5160_v53 = vadd.f32 %v5158_v39, %v5150_v30 }
0x3d2e   :  { %7321 = vtanh.f32 %v5160_v53 }
0x3d38   :  { %v7322_v4 = vpop.eup %7321 }
0x3d39   :  { %5163 = vrot.lane.b32.xlu0 %v7322_v4, %s7347_s30 }
0x3dab   :  { %v5164_v55 = vpop.permute.xlu0 %5163 }
0x3dac   :  { %v5166_v59 = vmul.f32 %v7320_v48, %v5164_v55 }
0x3dae   :  { %5168 = vrot.lane.b32.xlu1 %v5166_v59, %s7348_s6 }
0x3e20   :  { %v5169_v61 = vpop.permute.xlu1 %5168 }
0x3e21   :  { %6631 = vmatmul.mubr.msk.f32.vlgmr.msra.gmra.mrb[64].mxu1 %vm241_vm11, %v5169_v61 }
0x3e22   :  { %6652 = vmatprep.mubr.msk.f32.mxu1 %vm7346_vm10, %v7345_v32 }
0x3ef4   :  { %v5238_v57 = vpop.f32.mrb[64].mxu1 }
0x3ef5   :  { %v5242_v29 = vadd.f32 %v5238_v57, %v8192_v34  ;;  %v6632_v58 = vpop.f32.mrb[65].mxu1 }
0x3ef7   :  { %7323 = vtanh.f32 %v5242_v29  ;;  %v5693_v60 = vmul.f32 -1.442695, %v5242_v29 }
0x3ef9   :  { %7325 = vpow2.f32 %v5693_v60 }
0x3f01   :  { %v7324_v62 = vpop.eup %7323 }
0x3f02   :  { %5252 = vrot.lane.b32.xlu0 %v7324_v62, %s7347_s30 }
0x3f03   :  { %v7326_v63 = vpop.eup %7325 }
0x3f04   :  { %v5246_v2 = vadd.f32 1.0, %v7326_v63 }
0x3f06   :  { %7327 = vrcp.f32 %v5246_v2 }
0x3f10   :  { %v7328_v18 = vpop.eup %7327 }
0x3f11   :  { %v5250_v8 = vmul.f32 %v7328_v18, %v5160_v53 }
0x3f74   :  { %v5253_v5 = vpop.permute.xlu0 %5252 }
0x3f75   :  { %v5255_v7 = vmul.f32 %v7328_v18, %v5253_v5 }
0x3f77   :  { %5257 = vrot.lane.b32.xlu1 %v5255_v7, %s7347_s30 }
0x3fe9   :  { %v5258_v10 = vpop.permute.xlu1 %5257 }
0x3fea   :  { %v5260_v36 = vadd.f32 %v5258_v10, %v5250_v8 }
0x3fec   :  { %7329 = vtanh.f32 %v5260_v36 }
0x3ff6   :  { %v7330_v34 = vpop.eup %7329 }
0x3ff7   :  { %5263 = vrot.lane.b32.xlu0 %v7330_v34, %s7347_s30 }
0x4069   :  { %v5264_v11 = vpop.permute.xlu0 %5263 }
0x406a   :  { %v5266_v45 = vmul.f32 %v7328_v18, %v5264_v11 }
0x406c   :  { %5268 = vrot.lane.b32.xlu1 %v5266_v45, %s7348_s6 }
0x40de   :  { %v5269_v12 = vpop.permute.xlu1 %5268 }
0x40df   :  { %6642 = vmatmul.mubr.msk.f32.vlgmr.msra.gmra.mrb[60].mxu0 %vm241_vm11, %v5269_v12 }
0x40e0   :  { %6659 = vmatprep.mubr.msk.f32.mxu0 %vm7346_vm10, %v7345_v32  ;;  %6986 = vmatpush3.bf16.msra.mxu0 %v6985_v31 }
0x41b2   :  { %v5338_v0 = vpop.f32.mrb[60].mxu0 }
0x41b3   :  { %v5342_v14 = vadd.f32 %v5338_v0, %v8194_v3  ;;  %v6643_v54 = vpop.f32.mrb[61].mxu0  ;;  %v5367_v3 = vld [vmem:[%s8309_s3] sm:$0xff] }
0x41b4   :  { %v6979_v21 = vpack.c.bf16 %v5368_v37, %v5367_v3 }
0x41b5   :  { %7331 = vtanh.f32 %v5342_v14  ;;  %v5695_v41 = vmul.f32 -1.442695, %v5342_v14 }
0x41b6   :  { %6980 = vmatpush3.bf16.msra.mxu1 %v6979_v21 }
0x41b7   :  { %7333 = vpow2.f32 %v5695_v41  ;;  %6981 = vmatprep.subr.bf16.mxu1 %v7344_v22 }
0x41ba   :  { %6983 = vmatpush3.bf16.msra.mxu1 %v6982_v24 }
0x41bf   :  { %v7332_v28 = vpop.eup %7331 }
0x41c0   :  { %5352 = vrot.lane.b32.xlu0 %v7332_v28, %s7347_s30 }
0x41c1   :  { %v7334_v15 = vpop.eup %7333 }
0x41c2   :  { %v5346_v9 = vadd.f32 1.0, %v7334_v15 }
0x41c4   :  { %7335 = vrcp.f32 %v5346_v9 }
0x41ce   :  { %v7336_v16 = vpop.eup %7335 }
0x41cf   :  { %v5350_v20 = vmul.f32 %v7336_v16, %v5260_v36 }
0x4232   :  { %v5353_v17 = vpop.permute.xlu0 %5352 }
0x4233   :  { %v5355_v23 = vmul.f32 %v7336_v16, %v5353_v17 }
0x4235   :  { %5357 = vrot.lane.b32.xlu1 %v5355_v23, %s7347_s30 }
0x42a7   :  { %v5358_v32 = vpop.permute.xlu1 %5357 }
0x42a8   :  { %v5360_v38 = vadd.f32 %v5358_v32, %v5350_v20 }
0x42aa   :  { %7337 = vtanh.f32 %v5360_v38 }
0x42b4   :  { %v7338_v49 = vpop.eup %7337 }
0x42b5   :  { %5363 = vrot.lane.b32.xlu0 %v7338_v49, %s7347_s30 }
0x4327   :  { %v5364_v33 = vpop.permute.xlu0 %5363 }
0x4328   :  { %v5366_v35 = vmul.f32 %v7336_v16, %v5364_v33 }
0x432a   :  { %5372 = vrot.lane.b32.xlu1 %v5366_v35, %s7348_s6 }
0x439c   :  { %v5373_v52 = vpop.permute.xlu1 %5372 }
0x439d   :  { %6653 = vmatmul.mubr.msk.f32.vlgmr.msra.gmra.mrb[66].mxu1 %vm241_vm11, %v5373_v52 }
0x4470   :  { %v5442_v22 = vpop.f32.mrb[66].mxu1 }
0x4471   :  { %v5446_v56 = vmax.f32 %v5442_v22, 0.0  ;;  %v6654_v40 = vpop.f32.mrb[67].mxu1 }
0x4473   :  { %6660 = vmatmul.mubr.msk.f32.vlgmr.msra.gmra.mrb[62].mxu0 %vm5449_vm12, %v5446_v56 }
0x4546   :  { %v5519_v1 = vpop.f32.mrb[62].mxu0 }
0x4547   :  { %v5698_v42 = vmul.f32 -1.442695, %v5519_v1  ;;  %v6661_v13 = vpop.f32.mrb[63].mxu0 }
0x4549   :  { %7339 = vpow2.f32 %v5698_v42 }
0x4553   :  { %v7340_v44 = vpop.eup %7339 }
0x4554   :  { %v5526_v46 = vadd.f32 1.0, %v7340_v44 }
0x4556   :  { %7341 = vrcp.f32 %v5526_v46 }
0x4560   :  { %v7342_v47 = vpop.eup %7341 }
0x4561   :  { %5530 = vst.msk [vmem:[%s8311_s5] sm:$0xff] %vm5529_vm13, %v7342_v47 }

</bundles_post_ra>
